<compile_context>
chip_gen: v6e
topology: v6e:2x2x1
jax: 0.10.0
libtpu: 0.0.40
codegen_flags: <defaults>
</compile_context>

<pallas_src>
import functools

import numpy as np
import jax
import jax.numpy as jnp
from jax.experimental import pallas as pl
from jax.experimental.pallas import tpu as pltpu


def _spatial_attention_kernel(w_ref, b_ref, m_ref, x_ref, o_ref, *, C, H, W, K, TB):
    """One (TB, C, H*W) batch tile per grid step.

    w_ref: (2*K*K,)    conv weights, SMEM (channel-major, then dy, dx)
    b_ref: (1,)        conv bias,    SMEM
    m_ref: (K*K, H*W)  0/1 validity mask per conv tap, VMEM (constant)
    x_ref: (TB, C, H*W) input tile,  VMEM
    o_ref: (TB, C, H*W) output tile, VMEM
    """
    HW = H * W
    P = K // 2

    # Channel-wise mean / max, accumulated plane-by-plane in f32 at (TB, HW)
    # (avoids materialising a full f32 copy of the (TB, C, HW) tile).
    # TODO(synk): for very large C (esp. on v7x's 64 MiB VMEM) switch to a
    # C-blocked two-pass grid instead of holding all C planes per step.
    plane0 = x_ref[:, 0, :]
    acc_sum = plane0.astype(jnp.float32)
    run_max = plane0
    for c in range(1, C):
        plane = x_ref[:, c, :]
        acc_sum = acc_sum + plane.astype(jnp.float32)
        run_max = jnp.maximum(run_max, plane)
    avg = acc_sum * (1.0 / C)             # (TB, HW) f32
    mx = run_max.astype(jnp.float32)      # (TB, HW) f32

    # Direct 7x7 conv (2 -> 1 channels, zero padding) on the flat maps:
    #   out[p] = b + sum_t w[t] * in_flat[(p + s_t) mod HW] * mask_t[p]
    # with s_t = (dy - P) * W + (dx - P).  Shifts are lane rotations of the
    # unpadded maps; boundary handling is a precomputed 0/1 mask multiply.
    acc = jnp.full((TB, HW), b_ref[0], dtype=jnp.float32)   # bias folded in
    for dy in range(K):
        for dx in range(K):
            t = dy * K + dx
            s = (dy - P) * W + (dx - P)
            if s == 0:
                sh_avg, sh_max = avg, mx
            else:
                sh_avg = jnp.roll(avg, -s, axis=-1)
                sh_max = jnp.roll(mx, -s, axis=-1)
            w_avg = w_ref[t]              # scalar (SMEM) -> broadcast multiply
            w_max = w_ref[K * K + t]
            mask = m_ref[t:t + 1, :]      # (1, HW) 0/1 f32
            acc = acc + (w_avg * sh_avg + w_max * sh_max) * mask

    attn = jax.nn.sigmoid(acc)            # (TB, HW) f32

    # Final scale in the native dtype (lane-dense store); only the attention
    # map is cast, never a full copy of x.
    o_ref[...] = (x_ref[...] * attn[:, None, :].astype(o_ref.dtype)).astype(o_ref.dtype)


def _conv_tap_masks(H, W, K):
    """0/1 validity mask per KxK tap of a zero-padded conv, flat (K*K, H*W)."""
    P = K // 2
    p = np.arange(H * W)
    yy, xx = p // W, p % W
    masks = np.zeros((K * K, H * W), np.float32)
    for dy in range(K):
        for dx in range(K):
            oy, ox = dy - P, dx - P
            valid = (yy + oy >= 0) & (yy + oy < H) & (xx + ox >= 0) & (xx + ox < W)
            masks[dy * K + dx] = valid.astype(np.float32)
    return masks


def spatial_attention(x, weight, bias, kernel_size=7):
    """x: (B, C, H, W); weight: (1, 2, K, K); bias: (1,). NCHW like PyTorch."""
    B, C, H, W = x.shape
    K = kernel_size
    HW = H * W

    w_flat = jnp.asarray(weight).reshape(-1).astype(jnp.float32)   # (2*K*K,)
    b = jnp.asarray(bias).reshape(-1).astype(jnp.float32)          # (1,)
    masks = jnp.asarray(_conv_tap_masks(H, W, K))                  # (K*K, HW)

    # Lane-dense layout for the big data path (free reshape, no data movement).
    x_flat = x.reshape(B, C, HW)

    # Block several batch elements per grid step: aim for ~1 MiB input tiles
    # so we are HBM-roofline bound rather than per-step-overhead bound.
    per_batch_bytes = C * HW * x.dtype.itemsize
    tb = max(1, min(B, (1 << 20) // max(per_batch_bytes, 1)))
    while B % tb:
        tb -= 1

    tile_bytes = tb * per_batch_bytes
    # in + out double buffers + masks + headroom; clamp to stay v7x-safe.
    vmem_limit = int(min(64 * 2 ** 20, max(16 * 2 ** 20, 6 * tile_bytes)))

    kernel = functools.partial(_spatial_attention_kernel, C=C, H=H, W=W, K=K, TB=tb)

    out_flat = pl.pallas_call(
        kernel,
        out_shape=jax.ShapeDtypeStruct((B, C, HW), x.dtype),
        grid=(B // tb,),
        in_specs=[
            pl.BlockSpec(memory_space=pltpu.MemorySpace.SMEM),      # weights
            pl.BlockSpec(memory_space=pltpu.MemorySpace.SMEM),      # bias
            pl.BlockSpec((K * K, HW), lambda i: (0, 0)),            # tap masks
            pl.BlockSpec((tb, C, HW), lambda i: (i, 0, 0)),         # x
        ],
        out_specs=pl.BlockSpec((tb, C, HW), lambda i: (i, 0, 0)),
        compiler_params=pltpu.CompilerParams(
            dimension_semantics=("parallel",),
            vmem_limit_bytes=vmem_limit,
        ),
    )(w_flat, b, masks, x_flat)

    return out_flat.reshape(B, C, H, W)


def spatial_attention_reference(x, weight, bias, kernel_size=7):
    """Pure-JAX reference matching the PyTorch forward (NCHW)."""
    P = kernel_size // 2
    avg_out = jnp.mean(x, axis=1, keepdims=True)
    max_out = jnp.max(x, axis=1, keepdims=True)
    concat = jnp.concatenate([avg_out, max_out], axis=1)
    conv = jax.lax.conv_general_dilated(
        concat, weight, window_strides=(1, 1), padding=[(P, P), (P, P)],
        dimension_numbers=("NCHW", "OIHW", "NCHW"),
    ) + bias.reshape(1, 1, 1, 1)
    return x * jax.nn.sigmoid(conv)


if __name__ == "__main__":
    key = jax.random.PRNGKey(0)
    kx, kw, kb = jax.random.split(key, 3)

    B, C, H, W = 2, 4, 16, 16
    K = 7

    x = jax.random.normal(kx, (B, C, H, W), dtype=jnp.float32)
    # Deterministic synthetic parameters (shapes from nn.Conv2d(2, 1, 7, padding=3)).
    weight = 0.1 * jax.random.normal(kw, (1, 2, K, K), dtype=jnp.float32)
    bias = 0.1 * jax.random.normal(kb, (1,), dtype=jnp.float32)

    out = spatial_attention(x, weight, bias, kernel_size=K)
    out = jax.block_until_ready(out)

    ref = spatial_attention_reference(x, weight, bias, kernel_size=K)
    assert out.shape == ref.shape
    assert jnp.allclose(out, ref, rtol=1e-4, atol=1e-4), (
        f"max abs diff = {jnp.max(jnp.abs(out - ref))}"
    )

    print("KERNEL_OK")
</pallas_src>

<mosaic_0001>
module attributes {stable_mosaic.version = 11 : i64} {
  func.func @_spatial_attention_kernel(%arg0: i32, %arg1: memref<98xf32, #tpu.memory_space<smem>>, %arg2: memref<1xf32, #tpu.memory_space<smem>>, %arg3: memref<49x256xf32, #tpu.memory_space<vmem>>, %arg4: memref<2x4x256xf32, #tpu.memory_space<vmem>>, %arg5: memref<2x4x256xf32, #tpu.memory_space<vmem>>) attributes {dimension_semantics = [#tpu.dimension_semantics<parallel>], iteration_bounds = array<i64: 1>, scalar_prefetch = 0 : i64, scratch_operands = 0 : i64, tpu.core_type = #tpu.core_type<tc>, window_params = [{transform_indices = @transform_0, window_bounds = array<i64: 98>}, {transform_indices = @transform_1, window_bounds = array<i64: 1>}, {pipeline_mode = #tpu.pipeline_mode<synchronous>, transform_indices = @transform_2, window_bounds = array<i64: 49, 256>}, {transform_indices = @transform_3, window_bounds = array<i64: 2, 4, 256>}, {transform_indices = @transform_4, window_bounds = array<i64: 2, 4, 256>}]} {
    %c0 = arith.constant 0 : index
    %c0_0 = arith.constant 0 : index
    %c0_1 = arith.constant 0 : index
    %0 = vector.load %arg4[%c0, %c0_0, %c0_1] : memref<2x4x256xf32, #tpu.memory_space<vmem>>, vector<2x1x256xf32>
    %1 = vector.shape_cast %0 : vector<2x1x256xf32> to vector<2x256xf32>
    %c0_2 = arith.constant 0 : index
    %c1 = arith.constant 1 : index
    %c0_3 = arith.constant 0 : index
    %2 = vector.load %arg4[%c0_2, %c1, %c0_3] : memref<2x4x256xf32, #tpu.memory_space<vmem>>, vector<2x1x256xf32>
    %3 = vector.shape_cast %2 : vector<2x1x256xf32> to vector<2x256xf32>
    %4 = arith.addf %1, %3 : vector<2x256xf32>
    %5 = arith.maximumf %1, %3 : vector<2x256xf32>
    %c0_4 = arith.constant 0 : index
    %c2 = arith.constant 2 : index
    %c0_5 = arith.constant 0 : index
    %6 = vector.load %arg4[%c0_4, %c2, %c0_5] : memref<2x4x256xf32, #tpu.memory_space<vmem>>, vector<2x1x256xf32>
    %7 = vector.shape_cast %6 : vector<2x1x256xf32> to vector<2x256xf32>
    %8 = arith.addf %4, %7 : vector<2x256xf32>
    %9 = arith.maximumf %5, %7 : vector<2x256xf32>
    %c0_6 = arith.constant 0 : index
    %c3 = arith.constant 3 : index
    %c0_7 = arith.constant 0 : index
    %10 = vector.load %arg4[%c0_6, %c3, %c0_7] : memref<2x4x256xf32, #tpu.memory_space<vmem>>, vector<2x1x256xf32>
    %11 = vector.shape_cast %10 : vector<2x1x256xf32> to vector<2x256xf32>
    %12 = arith.addf %8, %11 : vector<2x256xf32>
    %13 = arith.maximumf %9, %11 : vector<2x256xf32>
    %cst = arith.constant 2.500000e-01 : f32
    %14 = vector.broadcast %cst : f32 to vector<2x256xf32>
    %15 = arith.mulf %12, %14 : vector<2x256xf32>
    %c0_8 = arith.constant 0 : index
    %16 = memref.load %arg2[%c0_8] : memref<1xf32, #tpu.memory_space<smem>>
    %17 = vector.broadcast %16 : f32 to vector<2x256xf32>
    %18 = vector.extract_strided_slice %15 {offsets = [0, 205], sizes = [2, 51], strides = [1, 1]} : vector<2x256xf32> to vector<2x51xf32>
    %19 = vector.extract_strided_slice %15 {offsets = [0, 0], sizes = [2, 205], strides = [1, 1]} : vector<2x256xf32> to vector<2x205xf32>
    %20 = tpu.concatenate %18, %19 in 1 : vector<2x51xf32>, vector<2x205xf32> -> vector<2x256xf32>
    %21 = vector.extract_strided_slice %13 {offsets = [0, 205], sizes = [2, 51], strides = [1, 1]} : vector<2x256xf32> to vector<2x51xf32>
    %22 = vector.extract_strided_slice %13 {offsets = [0, 0], sizes = [2, 205], strides = [1, 1]} : vector<2x256xf32> to vector<2x205xf32>
    %23 = tpu.concatenate %21, %22 in 1 : vector<2x51xf32>, vector<2x205xf32> -> vector<2x256xf32>
    %c0_9 = arith.constant 0 : index
    %24 = memref.load %arg1[%c0_9] : memref<98xf32, #tpu.memory_space<smem>>
    %c49 = arith.constant 49 : index
    %25 = memref.load %arg1[%c49] : memref<98xf32, #tpu.memory_space<smem>>
    %c0_10 = arith.constant 0 : index
    %c0_11 = arith.constant 0 : index
    %26 = vector.load %arg3[%c0_10, %c0_11] : memref<49x256xf32, #tpu.memory_space<vmem>>, vector<1x256xf32>
    %27 = vector.broadcast %24 : f32 to vector<2x256xf32>
    %28 = arith.mulf %27, %20 : vector<2x256xf32>
    %29 = vector.broadcast %25 : f32 to vector<2x256xf32>
    %30 = arith.mulf %29, %23 : vector<2x256xf32>
    %31 = arith.addf %28, %30 : vector<2x256xf32>
    %32 = vector.broadcast %26 : vector<1x256xf32> to vector<2x256xf32>
    %33 = arith.mulf %31, %32 : vector<2x256xf32>
    %34 = arith.addf %17, %33 : vector<2x256xf32>
    %35 = vector.extract_strided_slice %15 {offsets = [0, 206], sizes = [2, 50], strides = [1, 1]} : vector<2x256xf32> to vector<2x50xf32>
    %36 = vector.extract_strided_slice %15 {offsets = [0, 0], sizes = [2, 206], strides = [1, 1]} : vector<2x256xf32> to vector<2x206xf32>
    %37 = tpu.concatenate %35, %36 in 1 : vector<2x50xf32>, vector<2x206xf32> -> vector<2x256xf32>
    %38 = vector.extract_strided_slice %13 {offsets = [0, 206], sizes = [2, 50], strides = [1, 1]} : vector<2x256xf32> to vector<2x50xf32>
    %39 = vector.extract_strided_slice %13 {offsets = [0, 0], sizes = [2, 206], strides = [1, 1]} : vector<2x256xf32> to vector<2x206xf32>
    %40 = tpu.concatenate %38, %39 in 1 : vector<2x50xf32>, vector<2x206xf32> -> vector<2x256xf32>
    %c1_12 = arith.constant 1 : index
    %41 = memref.load %arg1[%c1_12] : memref<98xf32, #tpu.memory_space<smem>>
    %c50 = arith.constant 50 : index
    %42 = memref.load %arg1[%c50] : memref<98xf32, #tpu.memory_space<smem>>
    %c1_13 = arith.constant 1 : index
    %c0_14 = arith.constant 0 : index
    %43 = vector.load %arg3[%c1_13, %c0_14] : memref<49x256xf32, #tpu.memory_space<vmem>>, vector<1x256xf32>
    %44 = vector.broadcast %41 : f32 to vector<2x256xf32>
    %45 = arith.mulf %44, %37 : vector<2x256xf32>
    %46 = vector.broadcast %42 : f32 to vector<2x256xf32>
    %47 = arith.mulf %46, %40 : vector<2x256xf32>
    %48 = arith.addf %45, %47 : vector<2x256xf32>
    %49 = vector.broadcast %43 : vector<1x256xf32> to vector<2x256xf32>
    %50 = arith.mulf %48, %49 : vector<2x256xf32>
    %51 = arith.addf %34, %50 : vector<2x256xf32>
    %52 = vector.extract_strided_slice %15 {offsets = [0, 207], sizes = [2, 49], strides = [1, 1]} : vector<2x256xf32> to vector<2x49xf32>
    %53 = vector.extract_strided_slice %15 {offsets = [0, 0], sizes = [2, 207], strides = [1, 1]} : vector<2x256xf32> to vector<2x207xf32>
    %54 = tpu.concatenate %52, %53 in 1 : vector<2x49xf32>, vector<2x207xf32> -> vector<2x256xf32>
    %55 = vector.extract_strided_slice %13 {offsets = [0, 207], sizes = [2, 49], strides = [1, 1]} : vector<2x256xf32> to vector<2x49xf32>
    %56 = vector.extract_strided_slice %13 {offsets = [0, 0], sizes = [2, 207], strides = [1, 1]} : vector<2x256xf32> to vector<2x207xf32>
    %57 = tpu.concatenate %55, %56 in 1 : vector<2x49xf32>, vector<2x207xf32> -> vector<2x256xf32>
    %c2_15 = arith.constant 2 : index
    %58 = memref.load %arg1[%c2_15] : memref<98xf32, #tpu.memory_space<smem>>
    %c51 = arith.constant 51 : index
    %59 = memref.load %arg1[%c51] : memref<98xf32, #tpu.memory_space<smem>>
    %c2_16 = arith.constant 2 : index
    %c0_17 = arith.constant 0 : index
    %60 = vector.load %arg3[%c2_16, %c0_17] : memref<49x256xf32, #tpu.memory_space<vmem>>, vector<1x256xf32>
    %61 = vector.broadcast %58 : f32 to vector<2x256xf32>
    %62 = arith.mulf %61, %54 : vector<2x256xf32>
    %63 = vector.broadcast %59 : f32 to vector<2x256xf32>
    %64 = arith.mulf %63, %57 : vector<2x256xf32>
    %65 = arith.addf %62, %64 : vector<2x256xf32>
    %66 = vector.broadcast %60 : vector<1x256xf32> to vector<2x256xf32>
    %67 = arith.mulf %65, %66 : vector<2x256xf32>
    %68 = arith.addf %51, %67 : vector<2x256xf32>
    %69 = vector.extract_strided_slice %15 {offsets = [0, 208], sizes = [2, 48], strides = [1, 1]} : vector<2x256xf32> to vector<2x48xf32>
    %70 = vector.extract_strided_slice %15 {offsets = [0, 0], sizes = [2, 208], strides = [1, 1]} : vector<2x256xf32> to vector<2x208xf32>
    %71 = tpu.concatenate %69, %70 in 1 : vector<2x48xf32>, vector<2x208xf32> -> vector<2x256xf32>
    %72 = vector.extract_strided_slice %13 {offsets = [0, 208], sizes = [2, 48], strides = [1, 1]} : vector<2x256xf32> to vector<2x48xf32>
    %73 = vector.extract_strided_slice %13 {offsets = [0, 0], sizes = [2, 208], strides = [1, 1]} : vector<2x256xf32> to vector<2x208xf32>
    %74 = tpu.concatenate %72, %73 in 1 : vector<2x48xf32>, vector<2x208xf32> -> vector<2x256xf32>
    %c3_18 = arith.constant 3 : index
    %75 = memref.load %arg1[%c3_18] : memref<98xf32, #tpu.memory_space<smem>>
    %c52 = arith.constant 52 : index
    %76 = memref.load %arg1[%c52] : memref<98xf32, #tpu.memory_space<smem>>
    %c3_19 = arith.constant 3 : index
    %c0_20 = arith.constant 0 : index
    %77 = vector.load %arg3[%c3_19, %c0_20] : memref<49x256xf32, #tpu.memory_space<vmem>>, vector<1x256xf32>
    %78 = vector.broadcast %75 : f32 to vector<2x256xf32>
    %79 = arith.mulf %78, %71 : vector<2x256xf32>
    %80 = vector.broadcast %76 : f32 to vector<2x256xf32>
    %81 = arith.mulf %80, %74 : vector<2x256xf32>
    %82 = arith.addf %79, %81 : vector<2x256xf32>
    %83 = vector.broadcast %77 : vector<1x256xf32> to vector<2x256xf32>
    %84 = arith.mulf %82, %83 : vector<2x256xf32>
    %85 = arith.addf %68, %84 : vector<2x256xf32>
    %86 = vector.extract_strided_slice %15 {offsets = [0, 209], sizes = [2, 47], strides = [1, 1]} : vector<2x256xf32> to vector<2x47xf32>
    %87 = vector.extract_strided_slice %15 {offsets = [0, 0], sizes = [2, 209], strides = [1, 1]} : vector<2x256xf32> to vector<2x209xf32>
    %88 = tpu.concatenate %86, %87 in 1 : vector<2x47xf32>, vector<2x209xf32> -> vector<2x256xf32>
    %89 = vector.extract_strided_slice %13 {offsets = [0, 209], sizes = [2, 47], strides = [1, 1]} : vector<2x256xf32> to vector<2x47xf32>
    %90 = vector.extract_strided_slice %13 {offsets = [0, 0], sizes = [2, 209], strides = [1, 1]} : vector<2x256xf32> to vector<2x209xf32>
    %91 = tpu.concatenate %89, %90 in 1 : vector<2x47xf32>, vector<2x209xf32> -> vector<2x256xf32>
    %c4 = arith.constant 4 : index
    %92 = memref.load %arg1[%c4] : memref<98xf32, #tpu.memory_space<smem>>
    %c53 = arith.constant 53 : index
    %93 = memref.load %arg1[%c53] : memref<98xf32, #tpu.memory_space<smem>>
    %c4_21 = arith.constant 4 : index
    %c0_22 = arith.constant 0 : index
    %94 = vector.load %arg3[%c4_21, %c0_22] : memref<49x256xf32, #tpu.memory_space<vmem>>, vector<1x256xf32>
    %95 = vector.broadcast %92 : f32 to vector<2x256xf32>
    %96 = arith.mulf %95, %88 : vector<2x256xf32>
    %97 = vector.broadcast %93 : f32 to vector<2x256xf32>
    %98 = arith.mulf %97, %91 : vector<2x256xf32>
    %99 = arith.addf %96, %98 : vector<2x256xf32>
    %100 = vector.broadcast %94 : vector<1x256xf32> to vector<2x256xf32>
    %101 = arith.mulf %99, %100 : vector<2x256xf32>
    %102 = arith.addf %85, %101 : vector<2x256xf32>
    %103 = vector.extract_strided_slice %15 {offsets = [0, 210], sizes = [2, 46], strides = [1, 1]} : vector<2x256xf32> to vector<2x46xf32>
    %104 = vector.extract_strided_slice %15 {offsets = [0, 0], sizes = [2, 210], strides = [1, 1]} : vector<2x256xf32> to vector<2x210xf32>
    %105 = tpu.concatenate %103, %104 in 1 : vector<2x46xf32>, vector<2x210xf32> -> vector<2x256xf32>
    %106 = vector.extract_strided_slice %13 {offsets = [0, 210], sizes = [2, 46], strides = [1, 1]} : vector<2x256xf32> to vector<2x46xf32>
    %107 = vector.extract_strided_slice %13 {offsets = [0, 0], sizes = [2, 210], strides = [1, 1]} : vector<2x256xf32> to vector<2x210xf32>
    %108 = tpu.concatenate %106, %107 in 1 : vector<2x46xf32>, vector<2x210xf32> -> vector<2x256xf32>
    %c5 = arith.constant 5 : index
    %109 = memref.load %arg1[%c5] : memref<98xf32, #tpu.memory_space<smem>>
    %c54 = arith.constant 54 : index
    %110 = memref.load %arg1[%c54] : memref<98xf32, #tpu.memory_space<smem>>
    %c5_23 = arith.constant 5 : index
    %c0_24 = arith.constant 0 : index
    %111 = vector.load %arg3[%c5_23, %c0_24] : memref<49x256xf32, #tpu.memory_space<vmem>>, vector<1x256xf32>
    %112 = vector.broadcast %109 : f32 to vector<2x256xf32>
    %113 = arith.mulf %112, %105 : vector<2x256xf32>
    %114 = vector.broadcast %110 : f32 to vector<2x256xf32>
    %115 = arith.mulf %114, %108 : vector<2x256xf32>
    %116 = arith.addf %113, %115 : vector<2x256xf32>
    %117 = vector.broadcast %111 : vector<1x256xf32> to vector<2x256xf32>
    %118 = arith.mulf %116, %117 : vector<2x256xf32>
    %119 = arith.addf %102, %118 : vector<2x256xf32>
    %120 = vector.extract_strided_slice %15 {offsets = [0, 211], sizes = [2, 45], strides = [1, 1]} : vector<2x256xf32> to vector<2x45xf32>
    %121 = vector.extract_strided_slice %15 {offsets = [0, 0], sizes = [2, 211], strides = [1, 1]} : vector<2x256xf32> to vector<2x211xf32>
    %122 = tpu.concatenate %120, %121 in 1 : vector<2x45xf32>, vector<2x211xf32> -> vector<2x256xf32>
    %123 = vector.extract_strided_slice %13 {offsets = [0, 211], sizes = [2, 45], strides = [1, 1]} : vector<2x256xf32> to vector<2x45xf32>
    %124 = vector.extract_strided_slice %13 {offsets = [0, 0], sizes = [2, 211], strides = [1, 1]} : vector<2x256xf32> to vector<2x211xf32>
    %125 = tpu.concatenate %123, %124 in 1 : vector<2x45xf32>, vector<2x211xf32> -> vector<2x256xf32>
    %c6 = arith.constant 6 : index
    %126 = memref.load %arg1[%c6] : memref<98xf32, #tpu.memory_space<smem>>
    %c55 = arith.constant 55 : index
    %127 = memref.load %arg1[%c55] : memref<98xf32, #tpu.memory_space<smem>>
    %c6_25 = arith.constant 6 : index
    %c0_26 = arith.constant 0 : index
    %128 = vector.load %arg3[%c6_25, %c0_26] : memref<49x256xf32, #tpu.memory_space<vmem>>, vector<1x256xf32>
    %129 = vector.broadcast %126 : f32 to vector<2x256xf32>
    %130 = arith.mulf %129, %122 : vector<2x256xf32>
    %131 = vector.broadcast %127 : f32 to vector<2x256xf32>
    %132 = arith.mulf %131, %125 : vector<2x256xf32>
    %133 = arith.addf %130, %132 : vector<2x256xf32>
    %134 = vector.broadcast %128 : vector<1x256xf32> to vector<2x256xf32>
    %135 = arith.mulf %133, %134 : vector<2x256xf32>
    %136 = arith.addf %119, %135 : vector<2x256xf32>
    %137 = vector.extract_strided_slice %15 {offsets = [0, 221], sizes = [2, 35], strides = [1, 1]} : vector<2x256xf32> to vector<2x35xf32>
    %138 = vector.extract_strided_slice %15 {offsets = [0, 0], sizes = [2, 221], strides = [1, 1]} : vector<2x256xf32> to vector<2x221xf32>
    %139 = tpu.concatenate %137, %138 in 1 : vector<2x35xf32>, vector<2x221xf32> -> vector<2x256xf32>
    %140 = vector.extract_strided_slice %13 {offsets = [0, 221], sizes = [2, 35], strides = [1, 1]} : vector<2x256xf32> to vector<2x35xf32>
    %141 = vector.extract_strided_slice %13 {offsets = [0, 0], sizes = [2, 221], strides = [1, 1]} : vector<2x256xf32> to vector<2x221xf32>
    %142 = tpu.concatenate %140, %141 in 1 : vector<2x35xf32>, vector<2x221xf32> -> vector<2x256xf32>
    %c7 = arith.constant 7 : index
    %143 = memref.load %arg1[%c7] : memref<98xf32, #tpu.memory_space<smem>>
    %c56 = arith.constant 56 : index
    %144 = memref.load %arg1[%c56] : memref<98xf32, #tpu.memory_space<smem>>
    %c7_27 = arith.constant 7 : index
    %c0_28 = arith.constant 0 : index
    %145 = vector.load %arg3[%c7_27, %c0_28] : memref<49x256xf32, #tpu.memory_space<vmem>>, vector<1x256xf32>
    %146 = vector.broadcast %143 : f32 to vector<2x256xf32>
    %147 = arith.mulf %146, %139 : vector<2x256xf32>
    %148 = vector.broadcast %144 : f32 to vector<2x256xf32>
    %149 = arith.mulf %148, %142 : vector<2x256xf32>
    %150 = arith.addf %147, %149 : vector<2x256xf32>
    %151 = vector.broadcast %145 : vector<1x256xf32> to vector<2x256xf32>
    %152 = arith.mulf %150, %151 : vector<2x256xf32>
    %153 = arith.addf %136, %152 : vector<2x256xf32>
    %154 = vector.extract_strided_slice %15 {offsets = [0, 222], sizes = [2, 34], strides = [1, 1]} : vector<2x256xf32> to vector<2x34xf32>
    %155 = vector.extract_strided_slice %15 {offsets = [0, 0], sizes = [2, 222], strides = [1, 1]} : vector<2x256xf32> to vector<2x222xf32>
    %156 = tpu.concatenate %154, %155 in 1 : vector<2x34xf32>, vector<2x222xf32> -> vector<2x256xf32>
    %157 = vector.extract_strided_slice %13 {offsets = [0, 222], sizes = [2, 34], strides = [1, 1]} : vector<2x256xf32> to vector<2x34xf32>
    %158 = vector.extract_strided_slice %13 {offsets = [0, 0], sizes = [2, 222], strides = [1, 1]} : vector<2x256xf32> to vector<2x222xf32>
    %159 = tpu.concatenate %157, %158 in 1 : vector<2x34xf32>, vector<2x222xf32> -> vector<2x256xf32>
    %c8 = arith.constant 8 : index
    %160 = memref.load %arg1[%c8] : memref<98xf32, #tpu.memory_space<smem>>
    %c57 = arith.constant 57 : index
    %161 = memref.load %arg1[%c57] : memref<98xf32, #tpu.memory_space<smem>>
    %c8_29 = arith.constant 8 : index
    %c0_30 = arith.constant 0 : index
    %162 = vector.load %arg3[%c8_29, %c0_30] : memref<49x256xf32, #tpu.memory_space<vmem>>, vector<1x256xf32>
    %163 = vector.broadcast %160 : f32 to vector<2x256xf32>
    %164 = arith.mulf %163, %156 : vector<2x256xf32>
    %165 = vector.broadcast %161 : f32 to vector<2x256xf32>
    %166 = arith.mulf %165, %159 : vector<2x256xf32>
    %167 = arith.addf %164, %166 : vector<2x256xf32>
    %168 = vector.broadcast %162 : vector<1x256xf32> to vector<2x256xf32>
    %169 = arith.mulf %167, %168 : vector<2x256xf32>
    %170 = arith.addf %153, %169 : vector<2x256xf32>
    %171 = vector.extract_strided_slice %15 {offsets = [0, 223], sizes = [2, 33], strides = [1, 1]} : vector<2x256xf32> to vector<2x33xf32>
    %172 = vector.extract_strided_slice %15 {offsets = [0, 0], sizes = [2, 223], strides = [1, 1]} : vector<2x256xf32> to vector<2x223xf32>
    %173 = tpu.concatenate %171, %172 in 1 : vector<2x33xf32>, vector<2x223xf32> -> vector<2x256xf32>
    %174 = vector.extract_strided_slice %13 {offsets = [0, 223], sizes = [2, 33], strides = [1, 1]} : vector<2x256xf32> to vector<2x33xf32>
    %175 = vector.extract_strided_slice %13 {offsets = [0, 0], sizes = [2, 223], strides = [1, 1]} : vector<2x256xf32> to vector<2x223xf32>
    %176 = tpu.concatenate %174, %175 in 1 : vector<2x33xf32>, vector<2x223xf32> -> vector<2x256xf32>
    %c9 = arith.constant 9 : index
    %177 = memref.load %arg1[%c9] : memref<98xf32, #tpu.memory_space<smem>>
    %c58 = arith.constant 58 : index
    %178 = memref.load %arg1[%c58] : memref<98xf32, #tpu.memory_space<smem>>
    %c9_31 = arith.constant 9 : index
    %c0_32 = arith.constant 0 : index
    %179 = vector.load %arg3[%c9_31, %c0_32] : memref<49x256xf32, #tpu.memory_space<vmem>>, vector<1x256xf32>
    %180 = vector.broadcast %177 : f32 to vector<2x256xf32>
    %181 = arith.mulf %180, %173 : vector<2x256xf32>
    %182 = vector.broadcast %178 : f32 to vector<2x256xf32>
    %183 = arith.mulf %182, %176 : vector<2x256xf32>
    %184 = arith.addf %181, %183 : vector<2x256xf32>
    %185 = vector.broadcast %179 : vector<1x256xf32> to vector<2x256xf32>
    %186 = arith.mulf %184, %185 : vector<2x256xf32>
    %187 = arith.addf %170, %186 : vector<2x256xf32>
    %188 = vector.extract_strided_slice %15 {offsets = [0, 224], sizes = [2, 32], strides = [1, 1]} : vector<2x256xf32> to vector<2x32xf32>
    %189 = vector.extract_strided_slice %15 {offsets = [0, 0], sizes = [2, 224], strides = [1, 1]} : vector<2x256xf32> to vector<2x224xf32>
    %190 = tpu.concatenate %188, %189 in 1 : vector<2x32xf32>, vector<2x224xf32> -> vector<2x256xf32>
    %191 = vector.extract_strided_slice %13 {offsets = [0, 224], sizes = [2, 32], strides = [1, 1]} : vector<2x256xf32> to vector<2x32xf32>
    %192 = vector.extract_strided_slice %13 {offsets = [0, 0], sizes = [2, 224], strides = [1, 1]} : vector<2x256xf32> to vector<2x224xf32>
    %193 = tpu.concatenate %191, %192 in 1 : vector<2x32xf32>, vector<2x224xf32> -> vector<2x256xf32>
    %c10 = arith.constant 10 : index
    %194 = memref.load %arg1[%c10] : memref<98xf32, #tpu.memory_space<smem>>
    %c59 = arith.constant 59 : index
    %195 = memref.load %arg1[%c59] : memref<98xf32, #tpu.memory_space<smem>>
    %c10_33 = arith.constant 10 : index
    %c0_34 = arith.constant 0 : index
    %196 = vector.load %arg3[%c10_33, %c0_34] : memref<49x256xf32, #tpu.memory_space<vmem>>, vector<1x256xf32>
    %197 = vector.broadcast %194 : f32 to vector<2x256xf32>
    %198 = arith.mulf %197, %190 : vector<2x256xf32>
    %199 = vector.broadcast %195 : f32 to vector<2x256xf32>
    %200 = arith.mulf %199, %193 : vector<2x256xf32>
    %201 = arith.addf %198, %200 : vector<2x256xf32>
    %202 = vector.broadcast %196 : vector<1x256xf32> to vector<2x256xf32>
    %203 = arith.mulf %201, %202 : vector<2x256xf32>
    %204 = arith.addf %187, %203 : vector<2x256xf32>
    %205 = vector.extract_strided_slice %15 {offsets = [0, 225], sizes = [2, 31], strides = [1, 1]} : vector<2x256xf32> to vector<2x31xf32>
    %206 = vector.extract_strided_slice %15 {offsets = [0, 0], sizes = [2, 225], strides = [1, 1]} : vector<2x256xf32> to vector<2x225xf32>
    %207 = tpu.concatenate %205, %206 in 1 : vector<2x31xf32>, vector<2x225xf32> -> vector<2x256xf32>
    %208 = vector.extract_strided_slice %13 {offsets = [0, 225], sizes = [2, 31], strides = [1, 1]} : vector<2x256xf32> to vector<2x31xf32>
    %209 = vector.extract_strided_slice %13 {offsets = [0, 0], sizes = [2, 225], strides = [1, 1]} : vector<2x256xf32> to vector<2x225xf32>
    %210 = tpu.concatenate %208, %209 in 1 : vector<2x31xf32>, vector<2x225xf32> -> vector<2x256xf32>
    %c11 = arith.constant 11 : index
    %211 = memref.load %arg1[%c11] : memref<98xf32, #tpu.memory_space<smem>>
    %c60 = arith.constant 60 : index
    %212 = memref.load %arg1[%c60] : memref<98xf32, #tpu.memory_space<smem>>
    %c11_35 = arith.constant 11 : index
    %c0_36 = arith.constant 0 : index
    %213 = vector.load %arg3[%c11_35, %c0_36] : memref<49x256xf32, #tpu.memory_space<vmem>>, vector<1x256xf32>
    %214 = vector.broadcast %211 : f32 to vector<2x256xf32>
    %215 = arith.mulf %214, %207 : vector<2x256xf32>
    %216 = vector.broadcast %212 : f32 to vector<2x256xf32>
    %217 = arith.mulf %216, %210 : vector<2x256xf32>
    %218 = arith.addf %215, %217 : vector<2x256xf32>
    %219 = vector.broadcast %213 : vector<1x256xf32> to vector<2x256xf32>
    %220 = arith.mulf %218, %219 : vector<2x256xf32>
    %221 = arith.addf %204, %220 : vector<2x256xf32>
    %222 = vector.extract_strided_slice %15 {offsets = [0, 226], sizes = [2, 30], strides = [1, 1]} : vector<2x256xf32> to vector<2x30xf32>
    %223 = vector.extract_strided_slice %15 {offsets = [0, 0], sizes = [2, 226], strides = [1, 1]} : vector<2x256xf32> to vector<2x226xf32>
    %224 = tpu.concatenate %222, %223 in 1 : vector<2x30xf32>, vector<2x226xf32> -> vector<2x256xf32>
    %225 = vector.extract_strided_slice %13 {offsets = [0, 226], sizes = [2, 30], strides = [1, 1]} : vector<2x256xf32> to vector<2x30xf32>
    %226 = vector.extract_strided_slice %13 {offsets = [0, 0], sizes = [2, 226], strides = [1, 1]} : vector<2x256xf32> to vector<2x226xf32>
    %227 = tpu.concatenate %225, %226 in 1 : vector<2x30xf32>, vector<2x226xf32> -> vector<2x256xf32>
    %c12 = arith.constant 12 : index
    %228 = memref.load %arg1[%c12] : memref<98xf32, #tpu.memory_space<smem>>
    %c61 = arith.constant 61 : index
    %229 = memref.load %arg1[%c61] : memref<98xf32, #tpu.memory_space<smem>>
    %c12_37 = arith.constant 12 : index
    %c0_38 = arith.constant 0 : index
    %230 = vector.load %arg3[%c12_37, %c0_38] : memref<49x256xf32, #tpu.memory_space<vmem>>, vector<1x256xf32>
    %231 = vector.broadcast %228 : f32 to vector<2x256xf32>
    %232 = arith.mulf %231, %224 : vector<2x256xf32>
    %233 = vector.broadcast %229 : f32 to vector<2x256xf32>
    %234 = arith.mulf %233, %227 : vector<2x256xf32>
    %235 = arith.addf %232, %234 : vector<2x256xf32>
    %236 = vector.broadcast %230 : vector<1x256xf32> to vector<2x256xf32>
    %237 = arith.mulf %235, %236 : vector<2x256xf32>
    %238 = arith.addf %221, %237 : vector<2x256xf32>
    %239 = vector.extract_strided_slice %15 {offsets = [0, 227], sizes = [2, 29], strides = [1, 1]} : vector<2x256xf32> to vector<2x29xf32>
    %240 = vector.extract_strided_slice %15 {offsets = [0, 0], sizes = [2, 227], strides = [1, 1]} : vector<2x256xf32> to vector<2x227xf32>
    %241 = tpu.concatenate %239, %240 in 1 : vector<2x29xf32>, vector<2x227xf32> -> vector<2x256xf32>
    %242 = vector.extract_strided_slice %13 {offsets = [0, 227], sizes = [2, 29], strides = [1, 1]} : vector<2x256xf32> to vector<2x29xf32>
    %243 = vector.extract_strided_slice %13 {offsets = [0, 0], sizes = [2, 227], strides = [1, 1]} : vector<2x256xf32> to vector<2x227xf32>
    %244 = tpu.concatenate %242, %243 in 1 : vector<2x29xf32>, vector<2x227xf32> -> vector<2x256xf32>
    %c13 = arith.constant 13 : index
    %245 = memref.load %arg1[%c13] : memref<98xf32, #tpu.memory_space<smem>>
    %c62 = arith.constant 62 : index
    %246 = memref.load %arg1[%c62] : memref<98xf32, #tpu.memory_space<smem>>
    %c13_39 = arith.constant 13 : index
    %c0_40 = arith.constant 0 : index
    %247 = vector.load %arg3[%c13_39, %c0_40] : memref<49x256xf32, #tpu.memory_space<vmem>>, vector<1x256xf32>
    %248 = vector.broadcast %245 : f32 to vector<2x256xf32>
    %249 = arith.mulf %248, %241 : vector<2x256xf32>
    %250 = vector.broadcast %246 : f32 to vector<2x256xf32>
    %251 = arith.mulf %250, %244 : vector<2x256xf32>
    %252 = arith.addf %249, %251 : vector<2x256xf32>
    %253 = vector.broadcast %247 : vector<1x256xf32> to vector<2x256xf32>
    %254 = arith.mulf %252, %253 : vector<2x256xf32>
    %255 = arith.addf %238, %254 : vector<2x256xf32>
    %256 = vector.extract_strided_slice %15 {offsets = [0, 237], sizes = [2, 19], strides = [1, 1]} : vector<2x256xf32> to vector<2x19xf32>
    %257 = vector.extract_strided_slice %15 {offsets = [0, 0], sizes = [2, 237], strides = [1, 1]} : vector<2x256xf32> to vector<2x237xf32>
    %258 = tpu.concatenate %256, %257 in 1 : vector<2x19xf32>, vector<2x237xf32> -> vector<2x256xf32>
    %259 = vector.extract_strided_slice %13 {offsets = [0, 237], sizes = [2, 19], strides = [1, 1]} : vector<2x256xf32> to vector<2x19xf32>
    %260 = vector.extract_strided_slice %13 {offsets = [0, 0], sizes = [2, 237], strides = [1, 1]} : vector<2x256xf32> to vector<2x237xf32>
    %261 = tpu.concatenate %259, %260 in 1 : vector<2x19xf32>, vector<2x237xf32> -> vector<2x256xf32>
    %c14 = arith.constant 14 : index
    %262 = memref.load %arg1[%c14] : memref<98xf32, #tpu.memory_space<smem>>
    %c63 = arith.constant 63 : index
    %263 = memref.load %arg1[%c63] : memref<98xf32, #tpu.memory_space<smem>>
    %c14_41 = arith.constant 14 : index
    %c0_42 = arith.constant 0 : index
    %264 = vector.load %arg3[%c14_41, %c0_42] : memref<49x256xf32, #tpu.memory_space<vmem>>, vector<1x256xf32>
    %265 = vector.broadcast %262 : f32 to vector<2x256xf32>
    %266 = arith.mulf %265, %258 : vector<2x256xf32>
    %267 = vector.broadcast %263 : f32 to vector<2x256xf32>
    %268 = arith.mulf %267, %261 : vector<2x256xf32>
    %269 = arith.addf %266, %268 : vector<2x256xf32>
    %270 = vector.broadcast %264 : vector<1x256xf32> to vector<2x256xf32>
    %271 = arith.mulf %269, %270 : vector<2x256xf32>
    %272 = arith.addf %255, %271 : vector<2x256xf32>
    %273 = vector.extract_strided_slice %15 {offsets = [0, 238], sizes = [2, 18], strides = [1, 1]} : vector<2x256xf32> to vector<2x18xf32>
    %274 = vector.extract_strided_slice %15 {offsets = [0, 0], sizes = [2, 238], strides = [1, 1]} : vector<2x256xf32> to vector<2x238xf32>
    %275 = tpu.concatenate %273, %274 in 1 : vector<2x18xf32>, vector<2x238xf32> -> vector<2x256xf32>
    %276 = vector.extract_strided_slice %13 {offsets = [0, 238], sizes = [2, 18], strides = [1, 1]} : vector<2x256xf32> to vector<2x18xf32>
    %277 = vector.extract_strided_slice %13 {offsets = [0, 0], sizes = [2, 238], strides = [1, 1]} : vector<2x256xf32> to vector<2x238xf32>
    %278 = tpu.concatenate %276, %277 in 1 : vector<2x18xf32>, vector<2x238xf32> -> vector<2x256xf32>
    %c15 = arith.constant 15 : index
    %279 = memref.load %arg1[%c15] : memref<98xf32, #tpu.memory_space<smem>>
    %c64 = arith.constant 64 : index
    %280 = memref.load %arg1[%c64] : memref<98xf32, #tpu.memory_space<smem>>
    %c15_43 = arith.constant 15 : index
    %c0_44 = arith.constant 0 : index
    %281 = vector.load %arg3[%c15_43, %c0_44] : memref<49x256xf32, #tpu.memory_space<vmem>>, vector<1x256xf32>
    %282 = vector.broadcast %279 : f32 to vector<2x256xf32>
    %283 = arith.mulf %282, %275 : vector<2x256xf32>
    %284 = vector.broadcast %280 : f32 to vector<2x256xf32>
    %285 = arith.mulf %284, %278 : vector<2x256xf32>
    %286 = arith.addf %283, %285 : vector<2x256xf32>
    %287 = vector.broadcast %281 : vector<1x256xf32> to vector<2x256xf32>
    %288 = arith.mulf %286, %287 : vector<2x256xf32>
    %289 = arith.addf %272, %288 : vector<2x256xf32>
    %290 = vector.extract_strided_slice %15 {offsets = [0, 239], sizes = [2, 17], strides = [1, 1]} : vector<2x256xf32> to vector<2x17xf32>
    %291 = vector.extract_strided_slice %15 {offsets = [0, 0], sizes = [2, 239], strides = [1, 1]} : vector<2x256xf32> to vector<2x239xf32>
    %292 = tpu.concatenate %290, %291 in 1 : vector<2x17xf32>, vector<2x239xf32> -> vector<2x256xf32>
    %293 = vector.extract_strided_slice %13 {offsets = [0, 239], sizes = [2, 17], strides = [1, 1]} : vector<2x256xf32> to vector<2x17xf32>
    %294 = vector.extract_strided_slice %13 {offsets = [0, 0], sizes = [2, 239], strides = [1, 1]} : vector<2x256xf32> to vector<2x239xf32>
    %295 = tpu.concatenate %293, %294 in 1 : vector<2x17xf32>, vector<2x239xf32> -> vector<2x256xf32>
    %c16 = arith.constant 16 : index
    %296 = memref.load %arg1[%c16] : memref<98xf32, #tpu.memory_space<smem>>
    %c65 = arith.constant 65 : index
    %297 = memref.load %arg1[%c65] : memref<98xf32, #tpu.memory_space<smem>>
    %c16_45 = arith.constant 16 : index
    %c0_46 = arith.constant 0 : index
    %298 = vector.load %arg3[%c16_45, %c0_46] : memref<49x256xf32, #tpu.memory_space<vmem>>, vector<1x256xf32>
    %299 = vector.broadcast %296 : f32 to vector<2x256xf32>
    %300 = arith.mulf %299, %292 : vector<2x256xf32>
    %301 = vector.broadcast %297 : f32 to vector<2x256xf32>
    %302 = arith.mulf %301, %295 : vector<2x256xf32>
    %303 = arith.addf %300, %302 : vector<2x256xf32>
    %304 = vector.broadcast %298 : vector<1x256xf32> to vector<2x256xf32>
    %305 = arith.mulf %303, %304 : vector<2x256xf32>
    %306 = arith.addf %289, %305 : vector<2x256xf32>
    %307 = vector.extract_strided_slice %15 {offsets = [0, 240], sizes = [2, 16], strides = [1, 1]} : vector<2x256xf32> to vector<2x16xf32>
    %308 = vector.extract_strided_slice %15 {offsets = [0, 0], sizes = [2, 240], strides = [1, 1]} : vector<2x256xf32> to vector<2x240xf32>
    %309 = tpu.concatenate %307, %308 in 1 : vector<2x16xf32>, vector<2x240xf32> -> vector<2x256xf32>
    %310 = vector.extract_strided_slice %13 {offsets = [0, 240], sizes = [2, 16], strides = [1, 1]} : vector<2x256xf32> to vector<2x16xf32>
    %311 = vector.extract_strided_slice %13 {offsets = [0, 0], sizes = [2, 240], strides = [1, 1]} : vector<2x256xf32> to vector<2x240xf32>
    %312 = tpu.concatenate %310, %311 in 1 : vector<2x16xf32>, vector<2x240xf32> -> vector<2x256xf32>
    %c17 = arith.constant 17 : index
    %313 = memref.load %arg1[%c17] : memref<98xf32, #tpu.memory_space<smem>>
    %c66 = arith.constant 66 : index
    %314 = memref.load %arg1[%c66] : memref<98xf32, #tpu.memory_space<smem>>
    %c17_47 = arith.constant 17 : index
    %c0_48 = arith.constant 0 : index
    %315 = vector.load %arg3[%c17_47, %c0_48] : memref<49x256xf32, #tpu.memory_space<vmem>>, vector<1x256xf32>
    %316 = vector.broadcast %313 : f32 to vector<2x256xf32>
    %317 = arith.mulf %316, %309 : vector<2x256xf32>
    %318 = vector.broadcast %314 : f32 to vector<2x256xf32>
    %319 = arith.mulf %318, %312 : vector<2x256xf32>
    %320 = arith.addf %317, %319 : vector<2x256xf32>
    %321 = vector.broadcast %315 : vector<1x256xf32> to vector<2x256xf32>
    %322 = arith.mulf %320, %321 : vector<2x256xf32>
    %323 = arith.addf %306, %322 : vector<2x256xf32>
    %324 = vector.extract_strided_slice %15 {offsets = [0, 241], sizes = [2, 15], strides = [1, 1]} : vector<2x256xf32> to vector<2x15xf32>
    %325 = vector.extract_strided_slice %15 {offsets = [0, 0], sizes = [2, 241], strides = [1, 1]} : vector<2x256xf32> to vector<2x241xf32>
    %326 = tpu.concatenate %324, %325 in 1 : vector<2x15xf32>, vector<2x241xf32> -> vector<2x256xf32>
    %327 = vector.extract_strided_slice %13 {offsets = [0, 241], sizes = [2, 15], strides = [1, 1]} : vector<2x256xf32> to vector<2x15xf32>
    %328 = vector.extract_strided_slice %13 {offsets = [0, 0], sizes = [2, 241], strides = [1, 1]} : vector<2x256xf32> to vector<2x241xf32>
    %329 = tpu.concatenate %327, %328 in 1 : vector<2x15xf32>, vector<2x241xf32> -> vector<2x256xf32>
    %c18 = arith.constant 18 : index
    %330 = memref.load %arg1[%c18] : memref<98xf32, #tpu.memory_space<smem>>
    %c67 = arith.constant 67 : index
    %331 = memref.load %arg1[%c67] : memref<98xf32, #tpu.memory_space<smem>>
    %c18_49 = arith.constant 18 : index
    %c0_50 = arith.constant 0 : index
    %332 = vector.load %arg3[%c18_49, %c0_50] : memref<49x256xf32, #tpu.memory_space<vmem>>, vector<1x256xf32>
    %333 = vector.broadcast %330 : f32 to vector<2x256xf32>
    %334 = arith.mulf %333, %326 : vector<2x256xf32>
    %335 = vector.broadcast %331 : f32 to vector<2x256xf32>
    %336 = arith.mulf %335, %329 : vector<2x256xf32>
    %337 = arith.addf %334, %336 : vector<2x256xf32>
    %338 = vector.broadcast %332 : vector<1x256xf32> to vector<2x256xf32>
    %339 = arith.mulf %337, %338 : vector<2x256xf32>
    %340 = arith.addf %323, %339 : vector<2x256xf32>
    %341 = vector.extract_strided_slice %15 {offsets = [0, 242], sizes = [2, 14], strides = [1, 1]} : vector<2x256xf32> to vector<2x14xf32>
    %342 = vector.extract_strided_slice %15 {offsets = [0, 0], sizes = [2, 242], strides = [1, 1]} : vector<2x256xf32> to vector<2x242xf32>
    %343 = tpu.concatenate %341, %342 in 1 : vector<2x14xf32>, vector<2x242xf32> -> vector<2x256xf32>
    %344 = vector.extract_strided_slice %13 {offsets = [0, 242], sizes = [2, 14], strides = [1, 1]} : vector<2x256xf32> to vector<2x14xf32>
    %345 = vector.extract_strided_slice %13 {offsets = [0, 0], sizes = [2, 242], strides = [1, 1]} : vector<2x256xf32> to vector<2x242xf32>
    %346 = tpu.concatenate %344, %345 in 1 : vector<2x14xf32>, vector<2x242xf32> -> vector<2x256xf32>
    %c19 = arith.constant 19 : index
    %347 = memref.load %arg1[%c19] : memref<98xf32, #tpu.memory_space<smem>>
    %c68 = arith.constant 68 : index
    %348 = memref.load %arg1[%c68] : memref<98xf32, #tpu.memory_space<smem>>
    %c19_51 = arith.constant 19 : index
    %c0_52 = arith.constant 0 : index
    %349 = vector.load %arg3[%c19_51, %c0_52] : memref<49x256xf32, #tpu.memory_space<vmem>>, vector<1x256xf32>
    %350 = vector.broadcast %347 : f32 to vector<2x256xf32>
    %351 = arith.mulf %350, %343 : vector<2x256xf32>
    %352 = vector.broadcast %348 : f32 to vector<2x256xf32>
    %353 = arith.mulf %352, %346 : vector<2x256xf32>
    %354 = arith.addf %351, %353 : vector<2x256xf32>
    %355 = vector.broadcast %349 : vector<1x256xf32> to vector<2x256xf32>
    %356 = arith.mulf %354, %355 : vector<2x256xf32>
    %357 = arith.addf %340, %356 : vector<2x256xf32>
    %358 = vector.extract_strided_slice %15 {offsets = [0, 243], sizes = [2, 13], strides = [1, 1]} : vector<2x256xf32> to vector<2x13xf32>
    %359 = vector.extract_strided_slice %15 {offsets = [0, 0], sizes = [2, 243], strides = [1, 1]} : vector<2x256xf32> to vector<2x243xf32>
    %360 = tpu.concatenate %358, %359 in 1 : vector<2x13xf32>, vector<2x243xf32> -> vector<2x256xf32>
    %361 = vector.extract_strided_slice %13 {offsets = [0, 243], sizes = [2, 13], strides = [1, 1]} : vector<2x256xf32> to vector<2x13xf32>
    %362 = vector.extract_strided_slice %13 {offsets = [0, 0], sizes = [2, 243], strides = [1, 1]} : vector<2x256xf32> to vector<2x243xf32>
    %363 = tpu.concatenate %361, %362 in 1 : vector<2x13xf32>, vector<2x243xf32> -> vector<2x256xf32>
    %c20 = arith.constant 20 : index
    %364 = memref.load %arg1[%c20] : memref<98xf32, #tpu.memory_space<smem>>
    %c69 = arith.constant 69 : index
    %365 = memref.load %arg1[%c69] : memref<98xf32, #tpu.memory_space<smem>>
    %c20_53 = arith.constant 20 : index
    %c0_54 = arith.constant 0 : index
    %366 = vector.load %arg3[%c20_53, %c0_54] : memref<49x256xf32, #tpu.memory_space<vmem>>, vector<1x256xf32>
    %367 = vector.broadcast %364 : f32 to vector<2x256xf32>
    %368 = arith.mulf %367, %360 : vector<2x256xf32>
    %369 = vector.broadcast %365 : f32 to vector<2x256xf32>
    %370 = arith.mulf %369, %363 : vector<2x256xf32>
    %371 = arith.addf %368, %370 : vector<2x256xf32>
    %372 = vector.broadcast %366 : vector<1x256xf32> to vector<2x256xf32>
    %373 = arith.mulf %371, %372 : vector<2x256xf32>
    %374 = arith.addf %357, %373 : vector<2x256xf32>
    %375 = vector.extract_strided_slice %15 {offsets = [0, 253], sizes = [2, 3], strides = [1, 1]} : vector<2x256xf32> to vector<2x3xf32>
    %376 = vector.extract_strided_slice %15 {offsets = [0, 0], sizes = [2, 253], strides = [1, 1]} : vector<2x256xf32> to vector<2x253xf32>
    %377 = tpu.concatenate %375, %376 in 1 : vector<2x3xf32>, vector<2x253xf32> -> vector<2x256xf32>
    %378 = vector.extract_strided_slice %13 {offsets = [0, 253], sizes = [2, 3], strides = [1, 1]} : vector<2x256xf32> to vector<2x3xf32>
    %379 = vector.extract_strided_slice %13 {offsets = [0, 0], sizes = [2, 253], strides = [1, 1]} : vector<2x256xf32> to vector<2x253xf32>
    %380 = tpu.concatenate %378, %379 in 1 : vector<2x3xf32>, vector<2x253xf32> -> vector<2x256xf32>
    %c21 = arith.constant 21 : index
    %381 = memref.load %arg1[%c21] : memref<98xf32, #tpu.memory_space<smem>>
    %c70 = arith.constant 70 : index
    %382 = memref.load %arg1[%c70] : memref<98xf32, #tpu.memory_space<smem>>
    %c21_55 = arith.constant 21 : index
    %c0_56 = arith.constant 0 : index
    %383 = vector.load %arg3[%c21_55, %c0_56] : memref<49x256xf32, #tpu.memory_space<vmem>>, vector<1x256xf32>
    %384 = vector.broadcast %381 : f32 to vector<2x256xf32>
    %385 = arith.mulf %384, %377 : vector<2x256xf32>
    %386 = vector.broadcast %382 : f32 to vector<2x256xf32>
    %387 = arith.mulf %386, %380 : vector<2x256xf32>
    %388 = arith.addf %385, %387 : vector<2x256xf32>
    %389 = vector.broadcast %383 : vector<1x256xf32> to vector<2x256xf32>
    %390 = arith.mulf %388, %389 : vector<2x256xf32>
    %391 = arith.addf %374, %390 : vector<2x256xf32>
    %392 = vector.extract_strided_slice %15 {offsets = [0, 254], sizes = [2, 2], strides = [1, 1]} : vector<2x256xf32> to vector<2x2xf32>
    %393 = vector.extract_strided_slice %15 {offsets = [0, 0], sizes = [2, 254], strides = [1, 1]} : vector<2x256xf32> to vector<2x254xf32>
    %394 = tpu.concatenate %392, %393 in 1 : vector<2x2xf32>, vector<2x254xf32> -> vector<2x256xf32>
    %395 = vector.extract_strided_slice %13 {offsets = [0, 254], sizes = [2, 2], strides = [1, 1]} : vector<2x256xf32> to vector<2x2xf32>
    %396 = vector.extract_strided_slice %13 {offsets = [0, 0], sizes = [2, 254], strides = [1, 1]} : vector<2x256xf32> to vector<2x254xf32>
    %397 = tpu.concatenate %395, %396 in 1 : vector<2x2xf32>, vector<2x254xf32> -> vector<2x256xf32>
    %c22 = arith.constant 22 : index
    %398 = memref.load %arg1[%c22] : memref<98xf32, #tpu.memory_space<smem>>
    %c71 = arith.constant 71 : index
    %399 = memref.load %arg1[%c71] : memref<98xf32, #tpu.memory_space<smem>>
    %c22_57 = arith.constant 22 : index
    %c0_58 = arith.constant 0 : index
    %400 = vector.load %arg3[%c22_57, %c0_58] : memref<49x256xf32, #tpu.memory_space<vmem>>, vector<1x256xf32>
    %401 = vector.broadcast %398 : f32 to vector<2x256xf32>
    %402 = arith.mulf %401, %394 : vector<2x256xf32>
    %403 = vector.broadcast %399 : f32 to vector<2x256xf32>
    %404 = arith.mulf %403, %397 : vector<2x256xf32>
    %405 = arith.addf %402, %404 : vector<2x256xf32>
    %406 = vector.broadcast %400 : vector<1x256xf32> to vector<2x256xf32>
    %407 = arith.mulf %405, %406 : vector<2x256xf32>
    %408 = arith.addf %391, %407 : vector<2x256xf32>
    %409 = vector.extract_strided_slice %15 {offsets = [0, 255], sizes = [2, 1], strides = [1, 1]} : vector<2x256xf32> to vector<2x1xf32>
    %410 = vector.extract_strided_slice %15 {offsets = [0, 0], sizes = [2, 255], strides = [1, 1]} : vector<2x256xf32> to vector<2x255xf32>
    %411 = tpu.concatenate %409, %410 in 1 : vector<2x1xf32>, vector<2x255xf32> -> vector<2x256xf32>
    %412 = vector.extract_strided_slice %13 {offsets = [0, 255], sizes = [2, 1], strides = [1, 1]} : vector<2x256xf32> to vector<2x1xf32>
    %413 = vector.extract_strided_slice %13 {offsets = [0, 0], sizes = [2, 255], strides = [1, 1]} : vector<2x256xf32> to vector<2x255xf32>
    %414 = tpu.concatenate %412, %413 in 1 : vector<2x1xf32>, vector<2x255xf32> -> vector<2x256xf32>
    %c23 = arith.constant 23 : index
    %415 = memref.load %arg1[%c23] : memref<98xf32, #tpu.memory_space<smem>>
    %c72 = arith.constant 72 : index
    %416 = memref.load %arg1[%c72] : memref<98xf32, #tpu.memory_space<smem>>
    %c23_59 = arith.constant 23 : index
    %c0_60 = arith.constant 0 : index
    %417 = vector.load %arg3[%c23_59, %c0_60] : memref<49x256xf32, #tpu.memory_space<vmem>>, vector<1x256xf32>
    %418 = vector.broadcast %415 : f32 to vector<2x256xf32>
    %419 = arith.mulf %418, %411 : vector<2x256xf32>
    %420 = vector.broadcast %416 : f32 to vector<2x256xf32>
    %421 = arith.mulf %420, %414 : vector<2x256xf32>
    %422 = arith.addf %419, %421 : vector<2x256xf32>
    %423 = vector.broadcast %417 : vector<1x256xf32> to vector<2x256xf32>
    %424 = arith.mulf %422, %423 : vector<2x256xf32>
    %425 = arith.addf %408, %424 : vector<2x256xf32>
    %c24 = arith.constant 24 : index
    %426 = memref.load %arg1[%c24] : memref<98xf32, #tpu.memory_space<smem>>
    %c73 = arith.constant 73 : index
    %427 = memref.load %arg1[%c73] : memref<98xf32, #tpu.memory_space<smem>>
    %c24_61 = arith.constant 24 : index
    %c0_62 = arith.constant 0 : index
    %428 = vector.load %arg3[%c24_61, %c0_62] : memref<49x256xf32, #tpu.memory_space<vmem>>, vector<1x256xf32>
    %429 = vector.broadcast %426 : f32 to vector<2x256xf32>
    %430 = arith.mulf %429, %15 : vector<2x256xf32>
    %431 = vector.broadcast %427 : f32 to vector<2x256xf32>
    %432 = arith.mulf %431, %13 : vector<2x256xf32>
    %433 = arith.addf %430, %432 : vector<2x256xf32>
    %434 = vector.broadcast %428 : vector<1x256xf32> to vector<2x256xf32>
    %435 = arith.mulf %433, %434 : vector<2x256xf32>
    %436 = arith.addf %425, %435 : vector<2x256xf32>
    %437 = vector.extract_strided_slice %15 {offsets = [0, 1], sizes = [2, 255], strides = [1, 1]} : vector<2x256xf32> to vector<2x255xf32>
    %438 = vector.extract_strided_slice %15 {offsets = [0, 0], sizes = [2, 1], strides = [1, 1]} : vector<2x256xf32> to vector<2x1xf32>
    %439 = tpu.concatenate %437, %438 in 1 : vector<2x255xf32>, vector<2x1xf32> -> vector<2x256xf32>
    %440 = vector.extract_strided_slice %13 {offsets = [0, 1], sizes = [2, 255], strides = [1, 1]} : vector<2x256xf32> to vector<2x255xf32>
    %441 = vector.extract_strided_slice %13 {offsets = [0, 0], sizes = [2, 1], strides = [1, 1]} : vector<2x256xf32> to vector<2x1xf32>
    %442 = tpu.concatenate %440, %441 in 1 : vector<2x255xf32>, vector<2x1xf32> -> vector<2x256xf32>
    %c25 = arith.constant 25 : index
    %443 = memref.load %arg1[%c25] : memref<98xf32, #tpu.memory_space<smem>>
    %c74 = arith.constant 74 : index
    %444 = memref.load %arg1[%c74] : memref<98xf32, #tpu.memory_space<smem>>
    %c25_63 = arith.constant 25 : index
    %c0_64 = arith.constant 0 : index
    %445 = vector.load %arg3[%c25_63, %c0_64] : memref<49x256xf32, #tpu.memory_space<vmem>>, vector<1x256xf32>
    %446 = vector.broadcast %443 : f32 to vector<2x256xf32>
    %447 = arith.mulf %446, %439 : vector<2x256xf32>
    %448 = vector.broadcast %444 : f32 to vector<2x256xf32>
    %449 = arith.mulf %448, %442 : vector<2x256xf32>
    %450 = arith.addf %447, %449 : vector<2x256xf32>
    %451 = vector.broadcast %445 : vector<1x256xf32> to vector<2x256xf32>
    %452 = arith.mulf %450, %451 : vector<2x256xf32>
    %453 = arith.addf %436, %452 : vector<2x256xf32>
    %454 = vector.extract_strided_slice %15 {offsets = [0, 2], sizes = [2, 254], strides = [1, 1]} : vector<2x256xf32> to vector<2x254xf32>
    %455 = vector.extract_strided_slice %15 {offsets = [0, 0], sizes = [2, 2], strides = [1, 1]} : vector<2x256xf32> to vector<2x2xf32>
    %456 = tpu.concatenate %454, %455 in 1 : vector<2x254xf32>, vector<2x2xf32> -> vector<2x256xf32>
    %457 = vector.extract_strided_slice %13 {offsets = [0, 2], sizes = [2, 254], strides = [1, 1]} : vector<2x256xf32> to vector<2x254xf32>
    %458 = vector.extract_strided_slice %13 {offsets = [0, 0], sizes = [2, 2], strides = [1, 1]} : vector<2x256xf32> to vector<2x2xf32>
    %459 = tpu.concatenate %457, %458 in 1 : vector<2x254xf32>, vector<2x2xf32> -> vector<2x256xf32>
    %c26 = arith.constant 26 : index
    %460 = memref.load %arg1[%c26] : memref<98xf32, #tpu.memory_space<smem>>
    %c75 = arith.constant 75 : index
    %461 = memref.load %arg1[%c75] : memref<98xf32, #tpu.memory_space<smem>>
    %c26_65 = arith.constant 26 : index
    %c0_66 = arith.constant 0 : index
    %462 = vector.load %arg3[%c26_65, %c0_66] : memref<49x256xf32, #tpu.memory_space<vmem>>, vector<1x256xf32>
    %463 = vector.broadcast %460 : f32 to vector<2x256xf32>
    %464 = arith.mulf %463, %456 : vector<2x256xf32>
    %465 = vector.broadcast %461 : f32 to vector<2x256xf32>
    %466 = arith.mulf %465, %459 : vector<2x256xf32>
    %467 = arith.addf %464, %466 : vector<2x256xf32>
    %468 = vector.broadcast %462 : vector<1x256xf32> to vector<2x256xf32>
    %469 = arith.mulf %467, %468 : vector<2x256xf32>
    %470 = arith.addf %453, %469 : vector<2x256xf32>
    %471 = vector.extract_strided_slice %15 {offsets = [0, 3], sizes = [2, 253], strides = [1, 1]} : vector<2x256xf32> to vector<2x253xf32>
    %472 = vector.extract_strided_slice %15 {offsets = [0, 0], sizes = [2, 3], strides = [1, 1]} : vector<2x256xf32> to vector<2x3xf32>
    %473 = tpu.concatenate %471, %472 in 1 : vector<2x253xf32>, vector<2x3xf32> -> vector<2x256xf32>
    %474 = vector.extract_strided_slice %13 {offsets = [0, 3], sizes = [2, 253], strides = [1, 1]} : vector<2x256xf32> to vector<2x253xf32>
    %475 = vector.extract_strided_slice %13 {offsets = [0, 0], sizes = [2, 3], strides = [1, 1]} : vector<2x256xf32> to vector<2x3xf32>
    %476 = tpu.concatenate %474, %475 in 1 : vector<2x253xf32>, vector<2x3xf32> -> vector<2x256xf32>
    %c27 = arith.constant 27 : index
    %477 = memref.load %arg1[%c27] : memref<98xf32, #tpu.memory_space<smem>>
    %c76 = arith.constant 76 : index
    %478 = memref.load %arg1[%c76] : memref<98xf32, #tpu.memory_space<smem>>
    %c27_67 = arith.constant 27 : index
    %c0_68 = arith.constant 0 : index
    %479 = vector.load %arg3[%c27_67, %c0_68] : memref<49x256xf32, #tpu.memory_space<vmem>>, vector<1x256xf32>
    %480 = vector.broadcast %477 : f32 to vector<2x256xf32>
    %481 = arith.mulf %480, %473 : vector<2x256xf32>
    %482 = vector.broadcast %478 : f32 to vector<2x256xf32>
    %483 = arith.mulf %482, %476 : vector<2x256xf32>
    %484 = arith.addf %481, %483 : vector<2x256xf32>
    %485 = vector.broadcast %479 : vector<1x256xf32> to vector<2x256xf32>
    %486 = arith.mulf %484, %485 : vector<2x256xf32>
    %487 = arith.addf %470, %486 : vector<2x256xf32>
    %488 = vector.extract_strided_slice %15 {offsets = [0, 13], sizes = [2, 243], strides = [1, 1]} : vector<2x256xf32> to vector<2x243xf32>
    %489 = vector.extract_strided_slice %15 {offsets = [0, 0], sizes = [2, 13], strides = [1, 1]} : vector<2x256xf32> to vector<2x13xf32>
    %490 = tpu.concatenate %488, %489 in 1 : vector<2x243xf32>, vector<2x13xf32> -> vector<2x256xf32>
    %491 = vector.extract_strided_slice %13 {offsets = [0, 13], sizes = [2, 243], strides = [1, 1]} : vector<2x256xf32> to vector<2x243xf32>
    %492 = vector.extract_strided_slice %13 {offsets = [0, 0], sizes = [2, 13], strides = [1, 1]} : vector<2x256xf32> to vector<2x13xf32>
    %493 = tpu.concatenate %491, %492 in 1 : vector<2x243xf32>, vector<2x13xf32> -> vector<2x256xf32>
    %c28 = arith.constant 28 : index
    %494 = memref.load %arg1[%c28] : memref<98xf32, #tpu.memory_space<smem>>
    %c77 = arith.constant 77 : index
    %495 = memref.load %arg1[%c77] : memref<98xf32, #tpu.memory_space<smem>>
    %c28_69 = arith.constant 28 : index
    %c0_70 = arith.constant 0 : index
    %496 = vector.load %arg3[%c28_69, %c0_70] : memref<49x256xf32, #tpu.memory_space<vmem>>, vector<1x256xf32>
    %497 = vector.broadcast %494 : f32 to vector<2x256xf32>
    %498 = arith.mulf %497, %490 : vector<2x256xf32>
    %499 = vector.broadcast %495 : f32 to vector<2x256xf32>
    %500 = arith.mulf %499, %493 : vector<2x256xf32>
    %501 = arith.addf %498, %500 : vector<2x256xf32>
    %502 = vector.broadcast %496 : vector<1x256xf32> to vector<2x256xf32>
    %503 = arith.mulf %501, %502 : vector<2x256xf32>
    %504 = arith.addf %487, %503 : vector<2x256xf32>
    %505 = vector.extract_strided_slice %15 {offsets = [0, 14], sizes = [2, 242], strides = [1, 1]} : vector<2x256xf32> to vector<2x242xf32>
    %506 = vector.extract_strided_slice %15 {offsets = [0, 0], sizes = [2, 14], strides = [1, 1]} : vector<2x256xf32> to vector<2x14xf32>
    %507 = tpu.concatenate %505, %506 in 1 : vector<2x242xf32>, vector<2x14xf32> -> vector<2x256xf32>
    %508 = vector.extract_strided_slice %13 {offsets = [0, 14], sizes = [2, 242], strides = [1, 1]} : vector<2x256xf32> to vector<2x242xf32>
    %509 = vector.extract_strided_slice %13 {offsets = [0, 0], sizes = [2, 14], strides = [1, 1]} : vector<2x256xf32> to vector<2x14xf32>
    %510 = tpu.concatenate %508, %509 in 1 : vector<2x242xf32>, vector<2x14xf32> -> vector<2x256xf32>
    %c29 = arith.constant 29 : index
    %511 = memref.load %arg1[%c29] : memref<98xf32, #tpu.memory_space<smem>>
    %c78 = arith.constant 78 : index
    %512 = memref.load %arg1[%c78] : memref<98xf32, #tpu.memory_space<smem>>
    %c29_71 = arith.constant 29 : index
    %c0_72 = arith.constant 0 : index
    %513 = vector.load %arg3[%c29_71, %c0_72] : memref<49x256xf32, #tpu.memory_space<vmem>>, vector<1x256xf32>
    %514 = vector.broadcast %511 : f32 to vector<2x256xf32>
    %515 = arith.mulf %514, %507 : vector<2x256xf32>
    %516 = vector.broadcast %512 : f32 to vector<2x256xf32>
    %517 = arith.mulf %516, %510 : vector<2x256xf32>
    %518 = arith.addf %515, %517 : vector<2x256xf32>
    %519 = vector.broadcast %513 : vector<1x256xf32> to vector<2x256xf32>
    %520 = arith.mulf %518, %519 : vector<2x256xf32>
    %521 = arith.addf %504, %520 : vector<2x256xf32>
    %522 = vector.extract_strided_slice %15 {offsets = [0, 15], sizes = [2, 241], strides = [1, 1]} : vector<2x256xf32> to vector<2x241xf32>
    %523 = vector.extract_strided_slice %15 {offsets = [0, 0], sizes = [2, 15], strides = [1, 1]} : vector<2x256xf32> to vector<2x15xf32>
    %524 = tpu.concatenate %522, %523 in 1 : vector<2x241xf32>, vector<2x15xf32> -> vector<2x256xf32>
    %525 = vector.extract_strided_slice %13 {offsets = [0, 15], sizes = [2, 241], strides = [1, 1]} : vector<2x256xf32> to vector<2x241xf32>
    %526 = vector.extract_strided_slice %13 {offsets = [0, 0], sizes = [2, 15], strides = [1, 1]} : vector<2x256xf32> to vector<2x15xf32>
    %527 = tpu.concatenate %525, %526 in 1 : vector<2x241xf32>, vector<2x15xf32> -> vector<2x256xf32>
    %c30 = arith.constant 30 : index
    %528 = memref.load %arg1[%c30] : memref<98xf32, #tpu.memory_space<smem>>
    %c79 = arith.constant 79 : index
    %529 = memref.load %arg1[%c79] : memref<98xf32, #tpu.memory_space<smem>>
    %c30_73 = arith.constant 30 : index
    %c0_74 = arith.constant 0 : index
    %530 = vector.load %arg3[%c30_73, %c0_74] : memref<49x256xf32, #tpu.memory_space<vmem>>, vector<1x256xf32>
    %531 = vector.broadcast %528 : f32 to vector<2x256xf32>
    %532 = arith.mulf %531, %524 : vector<2x256xf32>
    %533 = vector.broadcast %529 : f32 to vector<2x256xf32>
    %534 = arith.mulf %533, %527 : vector<2x256xf32>
    %535 = arith.addf %532, %534 : vector<2x256xf32>
    %536 = vector.broadcast %530 : vector<1x256xf32> to vector<2x256xf32>
    %537 = arith.mulf %535, %536 : vector<2x256xf32>
    %538 = arith.addf %521, %537 : vector<2x256xf32>
    %539 = vector.extract_strided_slice %15 {offsets = [0, 16], sizes = [2, 240], strides = [1, 1]} : vector<2x256xf32> to vector<2x240xf32>
    %540 = vector.extract_strided_slice %15 {offsets = [0, 0], sizes = [2, 16], strides = [1, 1]} : vector<2x256xf32> to vector<2x16xf32>
    %541 = tpu.concatenate %539, %540 in 1 : vector<2x240xf32>, vector<2x16xf32> -> vector<2x256xf32>
    %542 = vector.extract_strided_slice %13 {offsets = [0, 16], sizes = [2, 240], strides = [1, 1]} : vector<2x256xf32> to vector<2x240xf32>
    %543 = vector.extract_strided_slice %13 {offsets = [0, 0], sizes = [2, 16], strides = [1, 1]} : vector<2x256xf32> to vector<2x16xf32>
    %544 = tpu.concatenate %542, %543 in 1 : vector<2x240xf32>, vector<2x16xf32> -> vector<2x256xf32>
    %c31 = arith.constant 31 : index
    %545 = memref.load %arg1[%c31] : memref<98xf32, #tpu.memory_space<smem>>
    %c80 = arith.constant 80 : index
    %546 = memref.load %arg1[%c80] : memref<98xf32, #tpu.memory_space<smem>>
    %c31_75 = arith.constant 31 : index
    %c0_76 = arith.constant 0 : index
    %547 = vector.load %arg3[%c31_75, %c0_76] : memref<49x256xf32, #tpu.memory_space<vmem>>, vector<1x256xf32>
    %548 = vector.broadcast %545 : f32 to vector<2x256xf32>
    %549 = arith.mulf %548, %541 : vector<2x256xf32>
    %550 = vector.broadcast %546 : f32 to vector<2x256xf32>
    %551 = arith.mulf %550, %544 : vector<2x256xf32>
    %552 = arith.addf %549, %551 : vector<2x256xf32>
    %553 = vector.broadcast %547 : vector<1x256xf32> to vector<2x256xf32>
    %554 = arith.mulf %552, %553 : vector<2x256xf32>
    %555 = arith.addf %538, %554 : vector<2x256xf32>
    %556 = vector.extract_strided_slice %15 {offsets = [0, 17], sizes = [2, 239], strides = [1, 1]} : vector<2x256xf32> to vector<2x239xf32>
    %557 = vector.extract_strided_slice %15 {offsets = [0, 0], sizes = [2, 17], strides = [1, 1]} : vector<2x256xf32> to vector<2x17xf32>
    %558 = tpu.concatenate %556, %557 in 1 : vector<2x239xf32>, vector<2x17xf32> -> vector<2x256xf32>
    %559 = vector.extract_strided_slice %13 {offsets = [0, 17], sizes = [2, 239], strides = [1, 1]} : vector<2x256xf32> to vector<2x239xf32>
    %560 = vector.extract_strided_slice %13 {offsets = [0, 0], sizes = [2, 17], strides = [1, 1]} : vector<2x256xf32> to vector<2x17xf32>
    %561 = tpu.concatenate %559, %560 in 1 : vector<2x239xf32>, vector<2x17xf32> -> vector<2x256xf32>
    %c32 = arith.constant 32 : index
    %562 = memref.load %arg1[%c32] : memref<98xf32, #tpu.memory_space<smem>>
    %c81 = arith.constant 81 : index
    %563 = memref.load %arg1[%c81] : memref<98xf32, #tpu.memory_space<smem>>
    %c32_77 = arith.constant 32 : index
    %c0_78 = arith.constant 0 : index
    %564 = vector.load %arg3[%c32_77, %c0_78] : memref<49x256xf32, #tpu.memory_space<vmem>>, vector<1x256xf32>
    %565 = vector.broadcast %562 : f32 to vector<2x256xf32>
    %566 = arith.mulf %565, %558 : vector<2x256xf32>
    %567 = vector.broadcast %563 : f32 to vector<2x256xf32>
    %568 = arith.mulf %567, %561 : vector<2x256xf32>
    %569 = arith.addf %566, %568 : vector<2x256xf32>
    %570 = vector.broadcast %564 : vector<1x256xf32> to vector<2x256xf32>
    %571 = arith.mulf %569, %570 : vector<2x256xf32>
    %572 = arith.addf %555, %571 : vector<2x256xf32>
    %573 = vector.extract_strided_slice %15 {offsets = [0, 18], sizes = [2, 238], strides = [1, 1]} : vector<2x256xf32> to vector<2x238xf32>
    %574 = vector.extract_strided_slice %15 {offsets = [0, 0], sizes = [2, 18], strides = [1, 1]} : vector<2x256xf32> to vector<2x18xf32>
    %575 = tpu.concatenate %573, %574 in 1 : vector<2x238xf32>, vector<2x18xf32> -> vector<2x256xf32>
    %576 = vector.extract_strided_slice %13 {offsets = [0, 18], sizes = [2, 238], strides = [1, 1]} : vector<2x256xf32> to vector<2x238xf32>
    %577 = vector.extract_strided_slice %13 {offsets = [0, 0], sizes = [2, 18], strides = [1, 1]} : vector<2x256xf32> to vector<2x18xf32>
    %578 = tpu.concatenate %576, %577 in 1 : vector<2x238xf32>, vector<2x18xf32> -> vector<2x256xf32>
    %c33 = arith.constant 33 : index
    %579 = memref.load %arg1[%c33] : memref<98xf32, #tpu.memory_space<smem>>
    %c82 = arith.constant 82 : index
    %580 = memref.load %arg1[%c82] : memref<98xf32, #tpu.memory_space<smem>>
    %c33_79 = arith.constant 33 : index
    %c0_80 = arith.constant 0 : index
    %581 = vector.load %arg3[%c33_79, %c0_80] : memref<49x256xf32, #tpu.memory_space<vmem>>, vector<1x256xf32>
    %582 = vector.broadcast %579 : f32 to vector<2x256xf32>
    %583 = arith.mulf %582, %575 : vector<2x256xf32>
    %584 = vector.broadcast %580 : f32 to vector<2x256xf32>
    %585 = arith.mulf %584, %578 : vector<2x256xf32>
    %586 = arith.addf %583, %585 : vector<2x256xf32>
    %587 = vector.broadcast %581 : vector<1x256xf32> to vector<2x256xf32>
    %588 = arith.mulf %586, %587 : vector<2x256xf32>
    %589 = arith.addf %572, %588 : vector<2x256xf32>
    %590 = vector.extract_strided_slice %15 {offsets = [0, 19], sizes = [2, 237], strides = [1, 1]} : vector<2x256xf32> to vector<2x237xf32>
    %591 = vector.extract_strided_slice %15 {offsets = [0, 0], sizes = [2, 19], strides = [1, 1]} : vector<2x256xf32> to vector<2x19xf32>
    %592 = tpu.concatenate %590, %591 in 1 : vector<2x237xf32>, vector<2x19xf32> -> vector<2x256xf32>
    %593 = vector.extract_strided_slice %13 {offsets = [0, 19], sizes = [2, 237], strides = [1, 1]} : vector<2x256xf32> to vector<2x237xf32>
    %594 = vector.extract_strided_slice %13 {offsets = [0, 0], sizes = [2, 19], strides = [1, 1]} : vector<2x256xf32> to vector<2x19xf32>
    %595 = tpu.concatenate %593, %594 in 1 : vector<2x237xf32>, vector<2x19xf32> -> vector<2x256xf32>
    %c34 = arith.constant 34 : index
    %596 = memref.load %arg1[%c34] : memref<98xf32, #tpu.memory_space<smem>>
    %c83 = arith.constant 83 : index
    %597 = memref.load %arg1[%c83] : memref<98xf32, #tpu.memory_space<smem>>
    %c34_81 = arith.constant 34 : index
    %c0_82 = arith.constant 0 : index
    %598 = vector.load %arg3[%c34_81, %c0_82] : memref<49x256xf32, #tpu.memory_space<vmem>>, vector<1x256xf32>
    %599 = vector.broadcast %596 : f32 to vector<2x256xf32>
    %600 = arith.mulf %599, %592 : vector<2x256xf32>
    %601 = vector.broadcast %597 : f32 to vector<2x256xf32>
    %602 = arith.mulf %601, %595 : vector<2x256xf32>
    %603 = arith.addf %600, %602 : vector<2x256xf32>
    %604 = vector.broadcast %598 : vector<1x256xf32> to vector<2x256xf32>
    %605 = arith.mulf %603, %604 : vector<2x256xf32>
    %606 = arith.addf %589, %605 : vector<2x256xf32>
    %607 = vector.extract_strided_slice %15 {offsets = [0, 29], sizes = [2, 227], strides = [1, 1]} : vector<2x256xf32> to vector<2x227xf32>
    %608 = vector.extract_strided_slice %15 {offsets = [0, 0], sizes = [2, 29], strides = [1, 1]} : vector<2x256xf32> to vector<2x29xf32>
    %609 = tpu.concatenate %607, %608 in 1 : vector<2x227xf32>, vector<2x29xf32> -> vector<2x256xf32>
    %610 = vector.extract_strided_slice %13 {offsets = [0, 29], sizes = [2, 227], strides = [1, 1]} : vector<2x256xf32> to vector<2x227xf32>
    %611 = vector.extract_strided_slice %13 {offsets = [0, 0], sizes = [2, 29], strides = [1, 1]} : vector<2x256xf32> to vector<2x29xf32>
    %612 = tpu.concatenate %610, %611 in 1 : vector<2x227xf32>, vector<2x29xf32> -> vector<2x256xf32>
    %c35 = arith.constant 35 : index
    %613 = memref.load %arg1[%c35] : memref<98xf32, #tpu.memory_space<smem>>
    %c84 = arith.constant 84 : index
    %614 = memref.load %arg1[%c84] : memref<98xf32, #tpu.memory_space<smem>>
    %c35_83 = arith.constant 35 : index
    %c0_84 = arith.constant 0 : index
    %615 = vector.load %arg3[%c35_83, %c0_84] : memref<49x256xf32, #tpu.memory_space<vmem>>, vector<1x256xf32>
    %616 = vector.broadcast %613 : f32 to vector<2x256xf32>
    %617 = arith.mulf %616, %609 : vector<2x256xf32>
    %618 = vector.broadcast %614 : f32 to vector<2x256xf32>
    %619 = arith.mulf %618, %612 : vector<2x256xf32>
    %620 = arith.addf %617, %619 : vector<2x256xf32>
    %621 = vector.broadcast %615 : vector<1x256xf32> to vector<2x256xf32>
    %622 = arith.mulf %620, %621 : vector<2x256xf32>
    %623 = arith.addf %606, %622 : vector<2x256xf32>
    %624 = vector.extract_strided_slice %15 {offsets = [0, 30], sizes = [2, 226], strides = [1, 1]} : vector<2x256xf32> to vector<2x226xf32>
    %625 = vector.extract_strided_slice %15 {offsets = [0, 0], sizes = [2, 30], strides = [1, 1]} : vector<2x256xf32> to vector<2x30xf32>
    %626 = tpu.concatenate %624, %625 in 1 : vector<2x226xf32>, vector<2x30xf32> -> vector<2x256xf32>
    %627 = vector.extract_strided_slice %13 {offsets = [0, 30], sizes = [2, 226], strides = [1, 1]} : vector<2x256xf32> to vector<2x226xf32>
    %628 = vector.extract_strided_slice %13 {offsets = [0, 0], sizes = [2, 30], strides = [1, 1]} : vector<2x256xf32> to vector<2x30xf32>
    %629 = tpu.concatenate %627, %628 in 1 : vector<2x226xf32>, vector<2x30xf32> -> vector<2x256xf32>
    %c36 = arith.constant 36 : index
    %630 = memref.load %arg1[%c36] : memref<98xf32, #tpu.memory_space<smem>>
    %c85 = arith.constant 85 : index
    %631 = memref.load %arg1[%c85] : memref<98xf32, #tpu.memory_space<smem>>
    %c36_85 = arith.constant 36 : index
    %c0_86 = arith.constant 0 : index
    %632 = vector.load %arg3[%c36_85, %c0_86] : memref<49x256xf32, #tpu.memory_space<vmem>>, vector<1x256xf32>
    %633 = vector.broadcast %630 : f32 to vector<2x256xf32>
    %634 = arith.mulf %633, %626 : vector<2x256xf32>
    %635 = vector.broadcast %631 : f32 to vector<2x256xf32>
    %636 = arith.mulf %635, %629 : vector<2x256xf32>
    %637 = arith.addf %634, %636 : vector<2x256xf32>
    %638 = vector.broadcast %632 : vector<1x256xf32> to vector<2x256xf32>
    %639 = arith.mulf %637, %638 : vector<2x256xf32>
    %640 = arith.addf %623, %639 : vector<2x256xf32>
    %641 = vector.extract_strided_slice %15 {offsets = [0, 31], sizes = [2, 225], strides = [1, 1]} : vector<2x256xf32> to vector<2x225xf32>
    %642 = vector.extract_strided_slice %15 {offsets = [0, 0], sizes = [2, 31], strides = [1, 1]} : vector<2x256xf32> to vector<2x31xf32>
    %643 = tpu.concatenate %641, %642 in 1 : vector<2x225xf32>, vector<2x31xf32> -> vector<2x256xf32>
    %644 = vector.extract_strided_slice %13 {offsets = [0, 31], sizes = [2, 225], strides = [1, 1]} : vector<2x256xf32> to vector<2x225xf32>
    %645 = vector.extract_strided_slice %13 {offsets = [0, 0], sizes = [2, 31], strides = [1, 1]} : vector<2x256xf32> to vector<2x31xf32>
    %646 = tpu.concatenate %644, %645 in 1 : vector<2x225xf32>, vector<2x31xf32> -> vector<2x256xf32>
    %c37 = arith.constant 37 : index
    %647 = memref.load %arg1[%c37] : memref<98xf32, #tpu.memory_space<smem>>
    %c86 = arith.constant 86 : index
    %648 = memref.load %arg1[%c86] : memref<98xf32, #tpu.memory_space<smem>>
    %c37_87 = arith.constant 37 : index
    %c0_88 = arith.constant 0 : index
    %649 = vector.load %arg3[%c37_87, %c0_88] : memref<49x256xf32, #tpu.memory_space<vmem>>, vector<1x256xf32>
    %650 = vector.broadcast %647 : f32 to vector<2x256xf32>
    %651 = arith.mulf %650, %643 : vector<2x256xf32>
    %652 = vector.broadcast %648 : f32 to vector<2x256xf32>
    %653 = arith.mulf %652, %646 : vector<2x256xf32>
    %654 = arith.addf %651, %653 : vector<2x256xf32>
    %655 = vector.broadcast %649 : vector<1x256xf32> to vector<2x256xf32>
    %656 = arith.mulf %654, %655 : vector<2x256xf32>
    %657 = arith.addf %640, %656 : vector<2x256xf32>
    %658 = vector.extract_strided_slice %15 {offsets = [0, 32], sizes = [2, 224], strides = [1, 1]} : vector<2x256xf32> to vector<2x224xf32>
    %659 = vector.extract_strided_slice %15 {offsets = [0, 0], sizes = [2, 32], strides = [1, 1]} : vector<2x256xf32> to vector<2x32xf32>
    %660 = tpu.concatenate %658, %659 in 1 : vector<2x224xf32>, vector<2x32xf32> -> vector<2x256xf32>
    %661 = vector.extract_strided_slice %13 {offsets = [0, 32], sizes = [2, 224], strides = [1, 1]} : vector<2x256xf32> to vector<2x224xf32>
    %662 = vector.extract_strided_slice %13 {offsets = [0, 0], sizes = [2, 32], strides = [1, 1]} : vector<2x256xf32> to vector<2x32xf32>
    %663 = tpu.concatenate %661, %662 in 1 : vector<2x224xf32>, vector<2x32xf32> -> vector<2x256xf32>
    %c38 = arith.constant 38 : index
    %664 = memref.load %arg1[%c38] : memref<98xf32, #tpu.memory_space<smem>>
    %c87 = arith.constant 87 : index
    %665 = memref.load %arg1[%c87] : memref<98xf32, #tpu.memory_space<smem>>
    %c38_89 = arith.constant 38 : index
    %c0_90 = arith.constant 0 : index
    %666 = vector.load %arg3[%c38_89, %c0_90] : memref<49x256xf32, #tpu.memory_space<vmem>>, vector<1x256xf32>
    %667 = vector.broadcast %664 : f32 to vector<2x256xf32>
    %668 = arith.mulf %667, %660 : vector<2x256xf32>
    %669 = vector.broadcast %665 : f32 to vector<2x256xf32>
    %670 = arith.mulf %669, %663 : vector<2x256xf32>
    %671 = arith.addf %668, %670 : vector<2x256xf32>
    %672 = vector.broadcast %666 : vector<1x256xf32> to vector<2x256xf32>
    %673 = arith.mulf %671, %672 : vector<2x256xf32>
    %674 = arith.addf %657, %673 : vector<2x256xf32>
    %675 = vector.extract_strided_slice %15 {offsets = [0, 33], sizes = [2, 223], strides = [1, 1]} : vector<2x256xf32> to vector<2x223xf32>
    %676 = vector.extract_strided_slice %15 {offsets = [0, 0], sizes = [2, 33], strides = [1, 1]} : vector<2x256xf32> to vector<2x33xf32>
    %677 = tpu.concatenate %675, %676 in 1 : vector<2x223xf32>, vector<2x33xf32> -> vector<2x256xf32>
    %678 = vector.extract_strided_slice %13 {offsets = [0, 33], sizes = [2, 223], strides = [1, 1]} : vector<2x256xf32> to vector<2x223xf32>
    %679 = vector.extract_strided_slice %13 {offsets = [0, 0], sizes = [2, 33], strides = [1, 1]} : vector<2x256xf32> to vector<2x33xf32>
    %680 = tpu.concatenate %678, %679 in 1 : vector<2x223xf32>, vector<2x33xf32> -> vector<2x256xf32>
    %c39 = arith.constant 39 : index
    %681 = memref.load %arg1[%c39] : memref<98xf32, #tpu.memory_space<smem>>
    %c88 = arith.constant 88 : index
    %682 = memref.load %arg1[%c88] : memref<98xf32, #tpu.memory_space<smem>>
    %c39_91 = arith.constant 39 : index
    %c0_92 = arith.constant 0 : index
    %683 = vector.load %arg3[%c39_91, %c0_92] : memref<49x256xf32, #tpu.memory_space<vmem>>, vector<1x256xf32>
    %684 = vector.broadcast %681 : f32 to vector<2x256xf32>
    %685 = arith.mulf %684, %677 : vector<2x256xf32>
    %686 = vector.broadcast %682 : f32 to vector<2x256xf32>
    %687 = arith.mulf %686, %680 : vector<2x256xf32>
    %688 = arith.addf %685, %687 : vector<2x256xf32>
    %689 = vector.broadcast %683 : vector<1x256xf32> to vector<2x256xf32>
    %690 = arith.mulf %688, %689 : vector<2x256xf32>
    %691 = arith.addf %674, %690 : vector<2x256xf32>
    %692 = vector.extract_strided_slice %15 {offsets = [0, 34], sizes = [2, 222], strides = [1, 1]} : vector<2x256xf32> to vector<2x222xf32>
    %693 = vector.extract_strided_slice %15 {offsets = [0, 0], sizes = [2, 34], strides = [1, 1]} : vector<2x256xf32> to vector<2x34xf32>
    %694 = tpu.concatenate %692, %693 in 1 : vector<2x222xf32>, vector<2x34xf32> -> vector<2x256xf32>
    %695 = vector.extract_strided_slice %13 {offsets = [0, 34], sizes = [2, 222], strides = [1, 1]} : vector<2x256xf32> to vector<2x222xf32>
    %696 = vector.extract_strided_slice %13 {offsets = [0, 0], sizes = [2, 34], strides = [1, 1]} : vector<2x256xf32> to vector<2x34xf32>
    %697 = tpu.concatenate %695, %696 in 1 : vector<2x222xf32>, vector<2x34xf32> -> vector<2x256xf32>
    %c40 = arith.constant 40 : index
    %698 = memref.load %arg1[%c40] : memref<98xf32, #tpu.memory_space<smem>>
    %c89 = arith.constant 89 : index
    %699 = memref.load %arg1[%c89] : memref<98xf32, #tpu.memory_space<smem>>
    %c40_93 = arith.constant 40 : index
    %c0_94 = arith.constant 0 : index
    %700 = vector.load %arg3[%c40_93, %c0_94] : memref<49x256xf32, #tpu.memory_space<vmem>>, vector<1x256xf32>
    %701 = vector.broadcast %698 : f32 to vector<2x256xf32>
    %702 = arith.mulf %701, %694 : vector<2x256xf32>
    %703 = vector.broadcast %699 : f32 to vector<2x256xf32>
    %704 = arith.mulf %703, %697 : vector<2x256xf32>
    %705 = arith.addf %702, %704 : vector<2x256xf32>
    %706 = vector.broadcast %700 : vector<1x256xf32> to vector<2x256xf32>
    %707 = arith.mulf %705, %706 : vector<2x256xf32>
    %708 = arith.addf %691, %707 : vector<2x256xf32>
    %709 = vector.extract_strided_slice %15 {offsets = [0, 35], sizes = [2, 221], strides = [1, 1]} : vector<2x256xf32> to vector<2x221xf32>
    %710 = vector.extract_strided_slice %15 {offsets = [0, 0], sizes = [2, 35], strides = [1, 1]} : vector<2x256xf32> to vector<2x35xf32>
    %711 = tpu.concatenate %709, %710 in 1 : vector<2x221xf32>, vector<2x35xf32> -> vector<2x256xf32>
    %712 = vector.extract_strided_slice %13 {offsets = [0, 35], sizes = [2, 221], strides = [1, 1]} : vector<2x256xf32> to vector<2x221xf32>
    %713 = vector.extract_strided_slice %13 {offsets = [0, 0], sizes = [2, 35], strides = [1, 1]} : vector<2x256xf32> to vector<2x35xf32>
    %714 = tpu.concatenate %712, %713 in 1 : vector<2x221xf32>, vector<2x35xf32> -> vector<2x256xf32>
    %c41 = arith.constant 41 : index
    %715 = memref.load %arg1[%c41] : memref<98xf32, #tpu.memory_space<smem>>
    %c90 = arith.constant 90 : index
    %716 = memref.load %arg1[%c90] : memref<98xf32, #tpu.memory_space<smem>>
    %c41_95 = arith.constant 41 : index
    %c0_96 = arith.constant 0 : index
    %717 = vector.load %arg3[%c41_95, %c0_96] : memref<49x256xf32, #tpu.memory_space<vmem>>, vector<1x256xf32>
    %718 = vector.broadcast %715 : f32 to vector<2x256xf32>
    %719 = arith.mulf %718, %711 : vector<2x256xf32>
    %720 = vector.broadcast %716 : f32 to vector<2x256xf32>
    %721 = arith.mulf %720, %714 : vector<2x256xf32>
    %722 = arith.addf %719, %721 : vector<2x256xf32>
    %723 = vector.broadcast %717 : vector<1x256xf32> to vector<2x256xf32>
    %724 = arith.mulf %722, %723 : vector<2x256xf32>
    %725 = arith.addf %708, %724 : vector<2x256xf32>
    %726 = vector.extract_strided_slice %15 {offsets = [0, 45], sizes = [2, 211], strides = [1, 1]} : vector<2x256xf32> to vector<2x211xf32>
    %727 = vector.extract_strided_slice %15 {offsets = [0, 0], sizes = [2, 45], strides = [1, 1]} : vector<2x256xf32> to vector<2x45xf32>
    %728 = tpu.concatenate %726, %727 in 1 : vector<2x211xf32>, vector<2x45xf32> -> vector<2x256xf32>
    %729 = vector.extract_strided_slice %13 {offsets = [0, 45], sizes = [2, 211], strides = [1, 1]} : vector<2x256xf32> to vector<2x211xf32>
    %730 = vector.extract_strided_slice %13 {offsets = [0, 0], sizes = [2, 45], strides = [1, 1]} : vector<2x256xf32> to vector<2x45xf32>
    %731 = tpu.concatenate %729, %730 in 1 : vector<2x211xf32>, vector<2x45xf32> -> vector<2x256xf32>
    %c42 = arith.constant 42 : index
    %732 = memref.load %arg1[%c42] : memref<98xf32, #tpu.memory_space<smem>>
    %c91 = arith.constant 91 : index
    %733 = memref.load %arg1[%c91] : memref<98xf32, #tpu.memory_space<smem>>
    %c42_97 = arith.constant 42 : index
    %c0_98 = arith.constant 0 : index
    %734 = vector.load %arg3[%c42_97, %c0_98] : memref<49x256xf32, #tpu.memory_space<vmem>>, vector<1x256xf32>
    %735 = vector.broadcast %732 : f32 to vector<2x256xf32>
    %736 = arith.mulf %735, %728 : vector<2x256xf32>
    %737 = vector.broadcast %733 : f32 to vector<2x256xf32>
    %738 = arith.mulf %737, %731 : vector<2x256xf32>
    %739 = arith.addf %736, %738 : vector<2x256xf32>
    %740 = vector.broadcast %734 : vector<1x256xf32> to vector<2x256xf32>
    %741 = arith.mulf %739, %740 : vector<2x256xf32>
    %742 = arith.addf %725, %741 : vector<2x256xf32>
    %743 = vector.extract_strided_slice %15 {offsets = [0, 46], sizes = [2, 210], strides = [1, 1]} : vector<2x256xf32> to vector<2x210xf32>
    %744 = vector.extract_strided_slice %15 {offsets = [0, 0], sizes = [2, 46], strides = [1, 1]} : vector<2x256xf32> to vector<2x46xf32>
    %745 = tpu.concatenate %743, %744 in 1 : vector<2x210xf32>, vector<2x46xf32> -> vector<2x256xf32>
    %746 = vector.extract_strided_slice %13 {offsets = [0, 46], sizes = [2, 210], strides = [1, 1]} : vector<2x256xf32> to vector<2x210xf32>
    %747 = vector.extract_strided_slice %13 {offsets = [0, 0], sizes = [2, 46], strides = [1, 1]} : vector<2x256xf32> to vector<2x46xf32>
    %748 = tpu.concatenate %746, %747 in 1 : vector<2x210xf32>, vector<2x46xf32> -> vector<2x256xf32>
    %c43 = arith.constant 43 : index
    %749 = memref.load %arg1[%c43] : memref<98xf32, #tpu.memory_space<smem>>
    %c92 = arith.constant 92 : index
    %750 = memref.load %arg1[%c92] : memref<98xf32, #tpu.memory_space<smem>>
    %c43_99 = arith.constant 43 : index
    %c0_100 = arith.constant 0 : index
    %751 = vector.load %arg3[%c43_99, %c0_100] : memref<49x256xf32, #tpu.memory_space<vmem>>, vector<1x256xf32>
    %752 = vector.broadcast %749 : f32 to vector<2x256xf32>
    %753 = arith.mulf %752, %745 : vector<2x256xf32>
    %754 = vector.broadcast %750 : f32 to vector<2x256xf32>
    %755 = arith.mulf %754, %748 : vector<2x256xf32>
    %756 = arith.addf %753, %755 : vector<2x256xf32>
    %757 = vector.broadcast %751 : vector<1x256xf32> to vector<2x256xf32>
    %758 = arith.mulf %756, %757 : vector<2x256xf32>
    %759 = arith.addf %742, %758 : vector<2x256xf32>
    %760 = vector.extract_strided_slice %15 {offsets = [0, 47], sizes = [2, 209], strides = [1, 1]} : vector<2x256xf32> to vector<2x209xf32>
    %761 = vector.extract_strided_slice %15 {offsets = [0, 0], sizes = [2, 47], strides = [1, 1]} : vector<2x256xf32> to vector<2x47xf32>
    %762 = tpu.concatenate %760, %761 in 1 : vector<2x209xf32>, vector<2x47xf32> -> vector<2x256xf32>
    %763 = vector.extract_strided_slice %13 {offsets = [0, 47], sizes = [2, 209], strides = [1, 1]} : vector<2x256xf32> to vector<2x209xf32>
    %764 = vector.extract_strided_slice %13 {offsets = [0, 0], sizes = [2, 47], strides = [1, 1]} : vector<2x256xf32> to vector<2x47xf32>
    %765 = tpu.concatenate %763, %764 in 1 : vector<2x209xf32>, vector<2x47xf32> -> vector<2x256xf32>
    %c44 = arith.constant 44 : index
    %766 = memref.load %arg1[%c44] : memref<98xf32, #tpu.memory_space<smem>>
    %c93 = arith.constant 93 : index
    %767 = memref.load %arg1[%c93] : memref<98xf32, #tpu.memory_space<smem>>
    %c44_101 = arith.constant 44 : index
    %c0_102 = arith.constant 0 : index
    %768 = vector.load %arg3[%c44_101, %c0_102] : memref<49x256xf32, #tpu.memory_space<vmem>>, vector<1x256xf32>
    %769 = vector.broadcast %766 : f32 to vector<2x256xf32>
    %770 = arith.mulf %769, %762 : vector<2x256xf32>
    %771 = vector.broadcast %767 : f32 to vector<2x256xf32>
    %772 = arith.mulf %771, %765 : vector<2x256xf32>
    %773 = arith.addf %770, %772 : vector<2x256xf32>
    %774 = vector.broadcast %768 : vector<1x256xf32> to vector<2x256xf32>
    %775 = arith.mulf %773, %774 : vector<2x256xf32>
    %776 = arith.addf %759, %775 : vector<2x256xf32>
    %777 = vector.extract_strided_slice %15 {offsets = [0, 48], sizes = [2, 208], strides = [1, 1]} : vector<2x256xf32> to vector<2x208xf32>
    %778 = vector.extract_strided_slice %15 {offsets = [0, 0], sizes = [2, 48], strides = [1, 1]} : vector<2x256xf32> to vector<2x48xf32>
    %779 = tpu.concatenate %777, %778 in 1 : vector<2x208xf32>, vector<2x48xf32> -> vector<2x256xf32>
    %780 = vector.extract_strided_slice %13 {offsets = [0, 48], sizes = [2, 208], strides = [1, 1]} : vector<2x256xf32> to vector<2x208xf32>
    %781 = vector.extract_strided_slice %13 {offsets = [0, 0], sizes = [2, 48], strides = [1, 1]} : vector<2x256xf32> to vector<2x48xf32>
    %782 = tpu.concatenate %780, %781 in 1 : vector<2x208xf32>, vector<2x48xf32> -> vector<2x256xf32>
    %c45 = arith.constant 45 : index
    %783 = memref.load %arg1[%c45] : memref<98xf32, #tpu.memory_space<smem>>
    %c94 = arith.constant 94 : index
    %784 = memref.load %arg1[%c94] : memref<98xf32, #tpu.memory_space<smem>>
    %c45_103 = arith.constant 45 : index
    %c0_104 = arith.constant 0 : index
    %785 = vector.load %arg3[%c45_103, %c0_104] : memref<49x256xf32, #tpu.memory_space<vmem>>, vector<1x256xf32>
    %786 = vector.broadcast %783 : f32 to vector<2x256xf32>
    %787 = arith.mulf %786, %779 : vector<2x256xf32>
    %788 = vector.broadcast %784 : f32 to vector<2x256xf32>
    %789 = arith.mulf %788, %782 : vector<2x256xf32>
    %790 = arith.addf %787, %789 : vector<2x256xf32>
    %791 = vector.broadcast %785 : vector<1x256xf32> to vector<2x256xf32>
    %792 = arith.mulf %790, %791 : vector<2x256xf32>
    %793 = arith.addf %776, %792 : vector<2x256xf32>
    %794 = vector.extract_strided_slice %15 {offsets = [0, 49], sizes = [2, 207], strides = [1, 1]} : vector<2x256xf32> to vector<2x207xf32>
    %795 = vector.extract_strided_slice %15 {offsets = [0, 0], sizes = [2, 49], strides = [1, 1]} : vector<2x256xf32> to vector<2x49xf32>
    %796 = tpu.concatenate %794, %795 in 1 : vector<2x207xf32>, vector<2x49xf32> -> vector<2x256xf32>
    %797 = vector.extract_strided_slice %13 {offsets = [0, 49], sizes = [2, 207], strides = [1, 1]} : vector<2x256xf32> to vector<2x207xf32>
    %798 = vector.extract_strided_slice %13 {offsets = [0, 0], sizes = [2, 49], strides = [1, 1]} : vector<2x256xf32> to vector<2x49xf32>
    %799 = tpu.concatenate %797, %798 in 1 : vector<2x207xf32>, vector<2x49xf32> -> vector<2x256xf32>
    %c46 = arith.constant 46 : index
    %800 = memref.load %arg1[%c46] : memref<98xf32, #tpu.memory_space<smem>>
    %c95 = arith.constant 95 : index
    %801 = memref.load %arg1[%c95] : memref<98xf32, #tpu.memory_space<smem>>
    %c46_105 = arith.constant 46 : index
    %c0_106 = arith.constant 0 : index
    %802 = vector.load %arg3[%c46_105, %c0_106] : memref<49x256xf32, #tpu.memory_space<vmem>>, vector<1x256xf32>
    %803 = vector.broadcast %800 : f32 to vector<2x256xf32>
    %804 = arith.mulf %803, %796 : vector<2x256xf32>
    %805 = vector.broadcast %801 : f32 to vector<2x256xf32>
    %806 = arith.mulf %805, %799 : vector<2x256xf32>
    %807 = arith.addf %804, %806 : vector<2x256xf32>
    %808 = vector.broadcast %802 : vector<1x256xf32> to vector<2x256xf32>
    %809 = arith.mulf %807, %808 : vector<2x256xf32>
    %810 = arith.addf %793, %809 : vector<2x256xf32>
    %811 = vector.extract_strided_slice %15 {offsets = [0, 50], sizes = [2, 206], strides = [1, 1]} : vector<2x256xf32> to vector<2x206xf32>
    %812 = vector.extract_strided_slice %15 {offsets = [0, 0], sizes = [2, 50], strides = [1, 1]} : vector<2x256xf32> to vector<2x50xf32>
    %813 = tpu.concatenate %811, %812 in 1 : vector<2x206xf32>, vector<2x50xf32> -> vector<2x256xf32>
    %814 = vector.extract_strided_slice %13 {offsets = [0, 50], sizes = [2, 206], strides = [1, 1]} : vector<2x256xf32> to vector<2x206xf32>
    %815 = vector.extract_strided_slice %13 {offsets = [0, 0], sizes = [2, 50], strides = [1, 1]} : vector<2x256xf32> to vector<2x50xf32>
    %816 = tpu.concatenate %814, %815 in 1 : vector<2x206xf32>, vector<2x50xf32> -> vector<2x256xf32>
    %c47 = arith.constant 47 : index
    %817 = memref.load %arg1[%c47] : memref<98xf32, #tpu.memory_space<smem>>
    %c96 = arith.constant 96 : index
    %818 = memref.load %arg1[%c96] : memref<98xf32, #tpu.memory_space<smem>>
    %c47_107 = arith.constant 47 : index
    %c0_108 = arith.constant 0 : index
    %819 = vector.load %arg3[%c47_107, %c0_108] : memref<49x256xf32, #tpu.memory_space<vmem>>, vector<1x256xf32>
    %820 = vector.broadcast %817 : f32 to vector<2x256xf32>
    %821 = arith.mulf %820, %813 : vector<2x256xf32>
    %822 = vector.broadcast %818 : f32 to vector<2x256xf32>
    %823 = arith.mulf %822, %816 : vector<2x256xf32>
    %824 = arith.addf %821, %823 : vector<2x256xf32>
    %825 = vector.broadcast %819 : vector<1x256xf32> to vector<2x256xf32>
    %826 = arith.mulf %824, %825 : vector<2x256xf32>
    %827 = arith.addf %810, %826 : vector<2x256xf32>
    %828 = vector.extract_strided_slice %15 {offsets = [0, 51], sizes = [2, 205], strides = [1, 1]} : vector<2x256xf32> to vector<2x205xf32>
    %829 = vector.extract_strided_slice %15 {offsets = [0, 0], sizes = [2, 51], strides = [1, 1]} : vector<2x256xf32> to vector<2x51xf32>
    %830 = tpu.concatenate %828, %829 in 1 : vector<2x205xf32>, vector<2x51xf32> -> vector<2x256xf32>
    %831 = vector.extract_strided_slice %13 {offsets = [0, 51], sizes = [2, 205], strides = [1, 1]} : vector<2x256xf32> to vector<2x205xf32>
    %832 = vector.extract_strided_slice %13 {offsets = [0, 0], sizes = [2, 51], strides = [1, 1]} : vector<2x256xf32> to vector<2x51xf32>
    %833 = tpu.concatenate %831, %832 in 1 : vector<2x205xf32>, vector<2x51xf32> -> vector<2x256xf32>
    %c48 = arith.constant 48 : index
    %834 = memref.load %arg1[%c48] : memref<98xf32, #tpu.memory_space<smem>>
    %c97 = arith.constant 97 : index
    %835 = memref.load %arg1[%c97] : memref<98xf32, #tpu.memory_space<smem>>
    %c48_109 = arith.constant 48 : index
    %c0_110 = arith.constant 0 : index
    %836 = vector.load %arg3[%c48_109, %c0_110] : memref<49x256xf32, #tpu.memory_space<vmem>>, vector<1x256xf32>
    %837 = vector.broadcast %834 : f32 to vector<2x256xf32>
    %838 = arith.mulf %837, %830 : vector<2x256xf32>
    %839 = vector.broadcast %835 : f32 to vector<2x256xf32>
    %840 = arith.mulf %839, %833 : vector<2x256xf32>
    %841 = arith.addf %838, %840 : vector<2x256xf32>
    %842 = vector.broadcast %836 : vector<1x256xf32> to vector<2x256xf32>
    %843 = arith.mulf %841, %842 : vector<2x256xf32>
    %844 = arith.addf %827, %843 : vector<2x256xf32>
    %845 = arith.negf %844 : vector<2x256xf32>
    %846 = math.exp %845 : vector<2x256xf32>
    %cst_111 = arith.constant 1.000000e+00 : f32
    %847 = vector.broadcast %cst_111 : f32 to vector<2x256xf32>
    %848 = arith.addf %847, %846 : vector<2x256xf32>
    %849 = arith.divf %847, %848 : vector<2x256xf32>
    %c0_112 = arith.constant 0 : index
    %c0_113 = arith.constant 0 : index
    %c0_114 = arith.constant 0 : index
    %850 = vector.load %arg4[%c0_112, %c0_113, %c0_114] : memref<2x4x256xf32, #tpu.memory_space<vmem>>, vector<2x4x256xf32>
    %851 = vector.shape_cast %849 : vector<2x256xf32> to vector<2x1x256xf32>
    %852 = vector.broadcast %851 : vector<2x1x256xf32> to vector<2x4x256xf32>
    %853 = arith.mulf %850, %852 : vector<2x4x256xf32>
    %c0_115 = arith.constant 0 : index
    %c0_116 = arith.constant 0 : index
    %c0_117 = arith.constant 0 : index
    %854 = vector.load %arg5[%c0_115, %c0_116, %c0_117] : memref<2x4x256xf32, #tpu.memory_space<vmem>>, vector<2x4x256xf32>
    tpu.vector_store %arg5[%c0_115, %c0_116, %c0_117], %853 {strides = array<i32>} : memref<2x4x256xf32, #tpu.memory_space<vmem>>, vector<2x4x256xf32>,
    return
  }
  func.func @transform_0(%arg0: i32) -> i32 {
    %c0_i32 = arith.constant 0 : i32
    %c0_i32_0 = arith.constant 0 : i32
    return %c0_i32 : i32
  }
  func.func @transform_1(%arg0: i32) -> i32 {
    %c0_i32 = arith.constant 0 : i32
    %c0_i32_0 = arith.constant 0 : i32
    return %c0_i32 : i32
  }
  func.func @transform_2(%arg0: i32) -> (i32, i32) {
    %c0_i32 = arith.constant 0 : i32
    %c0_i32_0 = arith.constant 0 : i32
    %c0_i32_1 = arith.constant 0 : i32
    return %c0_i32, %c0_i32_0 : i32, i32
  }
  func.func @transform_3(%arg0: i32) -> (i32, i32, i32) {
    %c0_i32 = arith.constant 0 : i32
    %c0_i32_0 = arith.constant 0 : i32
    %c0_i32_1 = arith.constant 0 : i32
    return %arg0, %c0_i32, %c0_i32_0 : i32, i32, i32
  }
  func.func @transform_4(%arg0: i32) -> (i32, i32, i32) {
    %c0_i32 = arith.constant 0 : i32
    %c0_i32_0 = arith.constant 0 : i32
    %c0_i32_1 = arith.constant 0 : i32
    return %arg0, %c0_i32, %c0_i32_0 : i32, i32, i32
  }
}

</mosaic_0001>

<bundles_post_ra>
// kernel: tpu_custom_call.1
= control target key start
LH: loop header
LB: loop body
LE: loop exit
PB: predicated region body
PF: predicated region fallthrough
CT: control target
= control target key end

     0   :  { %s4760_s0 = inlined_call_operand.vmem [shape: f32[98], index: 0, kind: input, shape index: {}]   ;;  %s4761_s1 = inlined_call_operand.<no memory space> [shape: f32[1], index: 1, kind: input, shape index: {}]   ;;  %s4762_s2 = inlined_call_operand.hbm [shape: f32[49,256], index: 2, kind: input, shape index: {}]   ;;  %s4763_s3 = inlined_call_operand.hbm [shape: f32[2,4,256], index: 3, kind: input, shape index: {}]   ;;  %s4764_s4 = inlined_call_operand.hbm [shape: f32[2,4,256], index: 4, kind: output, shape index: {}]  }
   0x1   :  { %4832 = sst [smem:[#allocation54_spill]] %s4764_s4 }
   0x2   :  { %10 = vsyncpa [#allocation6], 0 }
   0x3   :  { %11 = vsyncpa [#allocation4], 0 }
   0x4   :  { %12 = vsyncpa [#allocation9], 0 }
   0x5   :  { %13 = vsyncpa [#allocation5], 0  ;;  %s20_s17 = sshll.u32 %s4760_s0, 4  ;;  %s21_s17 = int_to_ptr.vmem [resolvable:$true] %s20_s17 }
   0x6   :  { %s2670_s18 = scalar_lea.vmem %s21_s17, 16  ;;  %p2675_p1 = scmp.lt.s32.totalorder %s21_s17, %s21_s17 }
   0x7   :  { %p2671_p0 = scmp.ne.s32.totalorder %s21_s17, %s2670_s18  ;;  %p2676_p2 = scmp.lt.s32.totalorder %s2670_s18, %s2670_s18 }
   0x9   :  { %p2677_p3 = por %p2676_p2, %p2675_p1 }
   0xb   :  { %p2678_p4 = pnand %p2677_p3, %p2671_p0 }
   0xd   :  { %2681 = shalt.err (!%p2678_p4)
}
   0xe   :  { %s2750_s19 = smov [#allocation3]   ;;  %s2751_s20 = smov [#allocation7]  }
   0xf   :  { %23 = dma.vmem_to_smem %s21_s17, 16, %s2750_s19, [#allocation6]  }
  0x10   :  { %s31_s21 = sshll.u32 %s2751_s20, 4  ;;  %s32_s21 = int_to_ptr.vmem [resolvable:$true] %s31_s21 }
  0x11   :  { %s2690_s22 = scalar_lea.vmem %s32_s21, 1792  ;;  %p2695_p6 = scmp.lt.s32.totalorder %s32_s21, %s32_s21 }
  0x12   :  { %p2691_p5 = scmp.ne.s32.totalorder %s32_s21, %s2690_s22  ;;  %p2696_p7 = scmp.lt.s32.totalorder %s2690_s22, %s2690_s22 }
  0x14   :  { %p2697_p8 = por %p2696_p7, %p2695_p6 }
  0x16   :  { %p2698_p9 = pnand %p2697_p8, %p2691_p5 }
  0x18   :  { %2701 = shalt.err (!%p2698_p9)
}
  0x19   :  { %s2752_s0 = smov 256   ;;  %s2753_s23 = smov 16  }
  0x1a   :  { %37 = dma.hbm_to_vmem [thread:$0]  %s4762_s2, 1792, %s32_s21, [#allocation4], %s2752_s0, %s2752_s0, %s2753_s23  }
  0x1b   :  { %s2754_s26 = smov [#allocation8]  }
  0x1c   :  { %s43_s27 = sshll.u32 %s2754_s26, 4  ;;  %s44_s27 = int_to_ptr.vmem [resolvable:$true] %s43_s27 }
  0x1d   :  { %s2710_s28 = scalar_lea.vmem %s44_s27, 256  ;;  %p2715_p11 = scmp.lt.s32.totalorder %s44_s27, %s44_s27 }
  0x1e   :  { %p2711_p10 = scmp.ne.s32.totalorder %s44_s27, %s2710_s28  ;;  %p2716_p12 = scmp.lt.s32.totalorder %s2710_s28, %s2710_s28 }
  0x20   :  { %p2717_p13 = por %p2716_p12, %p2715_p11 }
  0x22   :  { %p2718_p0 = pnand %p2717_p13, %p2711_p10 }
  0x24   :  { %2721 = shalt.err (!%p2718_p0)
}
  0x25   :  { %s4774_s29 = smov 128   ;;  %s4775_s30 = smov 8  }
  0x26   :  { %49 = dma.hbm_to_vmem [thread:$0]  %s4763_s3, 256, %s44_s27, [#allocation9], %s4774_s29, %s4774_s29, %s4775_s30  }
  0x27   :  { %2742 = dma.done.wait [#allocation6], 16  }
  0x28   :  { %2743 = vsyncadd [#allocation6], 4294967280 }
  0x29   :  { %2744 = dma.done.wait [#allocation4], 1792  }
  0x2a   :  { %2745 = vsyncadd [#allocation4], 4294965504 }
  0x2b   :  { %2746 = dma.done.wait [#allocation9], 256  }
  0x2c   :  { %2747 = vsyncadd [#allocation9], 4294967040 }
  0x2d   :  { %59 = sfence }
  0x2e   :  { %v60_v0 = vld [vmem:[#allocation8] ss:$4 sm:$0x3]  ;;  %v62_v1 = vld [vmem:[#allocation8 + $0x8] ss:$4 sm:$0x3]  ;;  %v97_v4 = vlaneseq }
  0x2f   :  { %v64_v2 = vld [vmem:[#allocation8 + $0x1] ss:$4 sm:$0x3]  ;;  %v66_v3 = vld [vmem:[#allocation8 + $0x9] ss:$4 sm:$0x3] }
  0x30   :  { %v69_v5 = vmax.f32 %v60_v0, %v64_v2  ;;  %v70_v6 = vmax.f32 %v62_v1, %v66_v3  ;;  %v72_v7 = vld [vmem:[#allocation8 + $0x2] ss:$4 sm:$0x3]  ;;  %v74_v8 = vld [vmem:[#allocation8 + $0xa] ss:$4 sm:$0x3]  ;;  %v67_v9 = vadd.f32 %v64_v2, %v60_v0  ;;  %v68_v10 = vadd.f32 %v66_v3, %v62_v1 }
  0x31   :  { %v80_v11 = vld [vmem:[#allocation8 + $0x3] ss:$4 sm:$0x3]  ;;  %v82_v12 = vld [vmem:[#allocation8 + $0xb] ss:$4 sm:$0x3] }
  0x32   :  { %v77_v13 = vmax.f32 %v69_v5, %v72_v7  ;;  %v78_v14 = vmax.f32 %v70_v6, %v74_v8  ;;  %v2757_v15 = vmov 1966171168   ;;  %v2844_v17 = vshrl.u32 %v97_v4, 7  ;;  %s2758_s2 = smov 51   ;;  %s2759_s3 = smov 50  }
  0x33   :  { %v95_v16 = vunpack.c.l.s4 %v2757_v15  ;;  %v75_v18 = vadd.f32 %v72_v7, %v67_v9  ;;  %v76_v19 = vadd.f32 %v74_v8, %v68_v10  ;;  %s2760_s7 = smov 49   ;;  %s2761_s8 = smov 48   ;;  %vm121_vm0 = vcmask 416768  }
  0x34   :  { %v2846_v20 = vmax.f32 %v77_v13, %v80_v11  ;;  %v2848_v21 = vmax.f32 %v78_v14, %v82_v12  ;;  %s2762_s9 = smov 47   ;;  %s2763_s10 = smov 46   ;;  %v3087_v14 = vsub.s32 0, %v2844_v17  ;;  %v3090_v15 = vsub.s32 1, %v2844_v17 }
  0x35   :  { %v96_v22 = vunpack.c.0.s8 %v95_v16  ;;  %v83_v23 = vadd.f32 %v80_v11, %v75_v18  ;;  %v84_v24 = vadd.f32 %v82_v12, %v76_v19  ;;  %s2764_s11 = smov 45   ;;  %s2765_s12 = smov 35   ;;  %v3094_v16 = vld [vmem:[#allocation7] ss:$8 sm:$0x3]  ;;  %vm191_vm1 = vcmask 408576  }
  0x36   :  { %v128_v25 = vcombine.low %v2846_v20, %v2848_v21  ;;  %s2766_s13 = smov 34   ;;  %s2767_s14 = smov 33   ;;  %v3101_v19 = vld [vmem:[#allocation7 + $0x1] ss:$8 sm:$0x3]  ;;  %vm237_vm2 = vcmask 400384  }
  0x37   :  { %v2853_v26 = vsub.s32 %v96_v22, %v2844_v17  ;;  %v2855_v27 = vmul.f32 0.25, %v83_v23  ;;  %v2857_v28 = vmul.f32 0.25, %v84_v24  ;;  %s2768_s15 = smov 32   ;;  %s2769_s16 = smov 31   ;;  %vm283_vm3 = vcmask 392192  }
  0x38   :  { %s2770_s17 = smov 30   ;;  %s2771_s18 = smov 29   ;;  %vm329_vm4 = vcmask 384000   ;;  %vm375_vm5 = vcmask 375808   ;;  %vm421_vm6 = vcmask 367616   ;;  %vm467_vm7 = vcmask 285696  }
  0x39   :  { %4833 = vst [vmem:[#allocation15_spill] sm:$0xff] %v2853_v26  ;;  %v135_v29 = vrot.slane %v128_v25, %v2853_v26  ;;  %v93_v30 = vcombine.low %v2855_v27, %v2857_v28  ;;  %s2772_s19 = smov 19   ;;  %s2773_s20 = smov 18   ;;  %v3117_v25 = vld [vmem:[#allocation7 + $0x2] ss:$8 sm:$0x3] }
  0x3a   :  { %s2774_s21 = smov 17   ;;  %s2775_s22 = smov 15   ;;  %vm513_vm8 = vcmask 277504   ;;  %vm559_vm9 = vcmask 269312   ;;  %vm605_vm10 = vcmask 261120   ;;  %vm651_vm11 = vcmask 252928  }
  0x3b   :  { %v2863_v31 = vrot.slane %v135_v29, %v2853_v26  ;;  %v100_v32 = vrot.slane %v93_v30, %v2853_v26  ;;  %v136_v33 = vcombine.high %v135_v29, %v135_v29  ;;  %s2776_s0 = smov 14   ;;  %s2778_s24 = smov 3   ;;  %v3162_v29 = vld [vmem:[#allocation7 + $0x6] ss:$8 sm:$0x3]  ;;  %vm697_vm12 = vcmask 244736  }
  0x3c   :  { %s2779_s25 = smov 2   ;;  %s3032_s26 = sld [smem:[#allocation3 + $0x32]]  ;;  %vm743_vm13 = vcmask 236544   ;;  %vm789_vm14 = vcmask 154624   ;;  %vm835_vm15 = vcmask 146432  }
  0x3d   :  { %154 = vrot.lane.b32.xlu1 %v2863_v31, %s2758_s2  ;;  %v2868_v34 = vrot.slane %v100_v32, %v2853_v26  ;;  %v2872_v35 = vrot.slane %v136_v33, %v2853_v26  ;;  %v101_v36 = vcombine.high %v100_v32, %v100_v32  ;;  %s3037_s27 = sld [smem:[#allocation3 + $0x31]]  ;;  %v3138_v32 = vld [vmem:[#allocation7 + $0x4] ss:$8 sm:$0x3] }
  0x3e   :  { %s3039_s28 = sld [smem:[#allocation3]]  ;;  %v3224_v33 = vld [vmem:[#allocation7 + $0x13] ss:$8 sm:$0x3] }
  0x3f   :  { %119 = vrot.lane.b32.xlu0 %v2868_v34, %s2758_s2  ;;  %v2877_v37 = vrot.slane %v101_v36, %v2853_v26  ;;  %s3044_s5 = sld [smem:[#allocation3 + $0x1]]  ;;  %v3126_v36 = vld [vmem:[#allocation7 + $0x3] ss:$8 sm:$0x3]  ;;  %4857 = vst [vmem:[#allocation39_spill] sm:$0xff] %v3224_v33 }
  0x40   :  { %s3046_s6 = sld [smem:[#allocation3 + $0x2]] }
  0x41   :  { %199 = vrot.lane.b32.xlu1 %v2863_v31, %s2759_s3  ;;  %s3202_s29 = sld [smem:[#allocation3 + $0xd]] }
  0x42   :  { %s3212_s30 = sld [smem:[#allocation3 + $0x3e]] }
  0x43   :  { %196 = vrot.lane.b32.xlu0 %v2872_v35, %s2759_s3  ;;  %s3226_s4 = sld [smem:[#allocation3 + $0xe]] }
  0x44   :  { %v4865_v33 = vstv %s3039_s28 }
  0x45   :  { %144 = vrot.lane.b32.xlu1 %v2872_v35, %s2758_s2 }
  0x47   :  { %109 = vrot.lane.b32.xlu0 %v2877_v37, %s2758_s2  ;;  %s3051_s2 = sld [smem:[#allocation3 + $0x33]] }
  0x49   :  { %189 = vrot.lane.b32.xlu1 %v2868_v34, %s2759_s3 }
  0x4b   :  { %186 = vrot.lane.b32.xlu0 %v2877_v37, %s2759_s3  ;;  %s3053_s3 = sld [smem:[#allocation3 + $0x3]] }
  0x4d   :  { %235 = vrot.lane.b32.xlu1 %v2868_v34, %s2760_s7 }
  0x4f   :  { %232 = vrot.lane.b32.xlu0 %v2877_v37, %s2760_s7 }
  0x51   :  { %245 = vrot.lane.b32.xlu1 %v2863_v31, %s2760_s7 }
  0x53   :  { %242 = vrot.lane.b32.xlu0 %v2872_v35, %s2760_s7  ;;  %s2780_s7 = smov 1  }
  0x55   :  { %281 = vrot.lane.b32.xlu1 %v2868_v34, %s2761_s8 }
  0x57   :  { %278 = vrot.lane.b32.xlu0 %v2877_v37, %s2761_s8 }
  0x59   :  { %291 = vrot.lane.b32.xlu1 %v2863_v31, %s2761_s8 }
  0x5b   :  { %288 = vrot.lane.b32.xlu0 %v2872_v35, %s2761_s8  ;;  %s3058_s8 = sld [smem:[#allocation3 + $0x34]] }
  0x5d   :  { %327 = vrot.lane.b32.xlu1 %v2868_v34, %s2762_s9 }
  0x5f   :  { %324 = vrot.lane.b32.xlu0 %v2877_v37, %s2762_s9 }
  0x61   :  { %337 = vrot.lane.b32.xlu1 %v2863_v31, %s2762_s9 }
  0x63   :  { %334 = vrot.lane.b32.xlu0 %v2872_v35, %s2762_s9  ;;  %s3060_s9 = sld [smem:[#allocation3 + $0x4]] }
  0x65   :  { %373 = vrot.lane.b32.xlu1 %v2868_v34, %s2763_s10 }
  0x67   :  { %370 = vrot.lane.b32.xlu0 %v2877_v37, %s2763_s10 }
  0x69   :  { %383 = vrot.lane.b32.xlu1 %v2863_v31, %s2763_s10 }
  0x6b   :  { %380 = vrot.lane.b32.xlu0 %v2872_v35, %s2763_s10  ;;  %s3065_s10 = sld [smem:[#allocation3 + $0x35]] }
  0x6d   :  { %419 = vrot.lane.b32.xlu1 %v2868_v34, %s2764_s11 }
  0x6f   :  { %416 = vrot.lane.b32.xlu0 %v2877_v37, %s2764_s11 }
  0x71   :  { %429 = vrot.lane.b32.xlu1 %v2863_v31, %s2764_s11 }
  0x73   :  { %426 = vrot.lane.b32.xlu0 %v2872_v35, %s2764_s11  ;;  %s3067_s11 = sld [smem:[#allocation3 + $0x5]] }
  0x75   :  { %465 = vrot.lane.b32.xlu1 %v2868_v34, %s2765_s12 }
  0x77   :  { %462 = vrot.lane.b32.xlu0 %v2877_v37, %s2765_s12 }
  0x79   :  { %475 = vrot.lane.b32.xlu1 %v2863_v31, %s2765_s12 }
  0x7b   :  { %472 = vrot.lane.b32.xlu0 %v2872_v35, %s2765_s12  ;;  %s3072_s12 = sld [smem:[#allocation3 + $0x36]] }
  0x7d   :  { %511 = vrot.lane.b32.xlu1 %v2868_v34, %s2766_s13 }
  0x7f   :  { %508 = vrot.lane.b32.xlu0 %v2877_v37, %s2766_s13 }
  0x81   :  { %521 = vrot.lane.b32.xlu1 %v2863_v31, %s2766_s13 }
  0x83   :  { %518 = vrot.lane.b32.xlu0 %v2872_v35, %s2766_s13  ;;  %s3074_s13 = sld [smem:[#allocation3 + $0x6]] }
  0x85   :  { %557 = vrot.lane.b32.xlu1 %v2868_v34, %s2767_s14 }
  0x87   :  { %554 = vrot.lane.b32.xlu0 %v2877_v37, %s2767_s14 }
  0x89   :  { %567 = vrot.lane.b32.xlu1 %v2863_v31, %s2767_s14 }
  0x8b   :  { %564 = vrot.lane.b32.xlu0 %v2872_v35, %s2767_s14  ;;  %s3079_s14 = sld [smem:[#allocation3 + $0x37]] }
  0x8d   :  { %603 = vrot.lane.b32.xlu1 %v2868_v34, %s2768_s15 }
  0x8f   :  { %600 = vrot.lane.b32.xlu0 %v2877_v37, %s2768_s15 }
  0x91   :  { %613 = vrot.lane.b32.xlu1 %v2863_v31, %s2768_s15 }
  0x93   :  { %610 = vrot.lane.b32.xlu0 %v2872_v35, %s2768_s15  ;;  %s3081_s15 = sld [smem:[#allocation3 + $0x7]] }
  0x95   :  { %649 = vrot.lane.b32.xlu1 %v2868_v34, %s2769_s16 }
  0x97   :  { %646 = vrot.lane.b32.xlu0 %v2877_v37, %s2769_s16 }
  0x99   :  { %659 = vrot.lane.b32.xlu1 %v2863_v31, %s2769_s16 }
  0x9b   :  { %656 = vrot.lane.b32.xlu0 %v2872_v35, %s2769_s16  ;;  %s2781_s16 = smov 127  }
  0x9d   :  { %695 = vrot.lane.b32.xlu1 %v2868_v34, %s2770_s17 }
  0x9f   :  { %692 = vrot.lane.b32.xlu0 %v2877_v37, %s2770_s17 }
  0xa1   :  { %705 = vrot.lane.b32.xlu1 %v2863_v31, %s2770_s17 }
  0xa3   :  { %702 = vrot.lane.b32.xlu0 %v2872_v35, %s2770_s17  ;;  %s3092_s17 = sld [smem:[#allocation3 + $0x38]] }
  0xa5   :  { %741 = vrot.lane.b32.xlu1 %v2868_v34, %s2771_s18 }
  0xa7   :  { %738 = vrot.lane.b32.xlu0 %v2877_v37, %s2771_s18 }
  0xa9   :  { %751 = vrot.lane.b32.xlu1 %v2863_v31, %s2771_s18 }
  0xab   :  { %748 = vrot.lane.b32.xlu0 %v2872_v35, %s2771_s18  ;;  %s3096_s18 = sld [smem:[#allocation3 + $0x8]] }
  0xad   :  { %787 = vrot.lane.b32.xlu1 %v2868_v34, %s2772_s19 }
  0xaf   :  { %v2932_v38 = vpop.permute.xlu1 %154  ;;  %784 = vrot.lane.b32.xlu0 %v2877_v37, %s2772_s19 }
  0xb1   :  { %v2935_v39 = vpop.permute.xlu0 %119  ;;  %797 = vrot.lane.b32.xlu1 %v2863_v31, %s2772_s19 }
  0xb3   :  { %v2938_v40 = vpop.permute.xlu1 %199  ;;  %794 = vrot.lane.b32.xlu0 %v2872_v35, %s2772_s19  ;;  %s3103_s19 = sld [smem:[#allocation3 + $0x39]] }
  0xb5   :  { %v2941_v41 = vpop.permute.xlu0 %196  ;;  %833 = vrot.lane.b32.xlu1 %v2868_v34, %s2773_s20 }
  0xb7   :  { %v2944_v42 = vpop.permute.xlu1 %144  ;;  %830 = vrot.lane.b32.xlu0 %v2877_v37, %s2773_s20 }
  0xb9   :  { %v2947_v43 = vpop.permute.xlu0 %109  ;;  %843 = vrot.lane.b32.xlu1 %v2863_v31, %s2773_s20 }
  0xbb   :  { %840 = vrot.lane.b32.xlu0 %v2872_v35, %s2773_s20  ;;  %v2951_v44 = vpop.permute.xlu1 %189  ;;  %s3105_s20 = sld [smem:[#allocation3 + $0x9]] }
  0xbd   :  { %v2953_v45 = vpop.permute.xlu0 %186  ;;  %879 = vrot.lane.b32.xlu1 %v2868_v34, %s2774_s21 }
  0xbf   :  { %876 = vrot.lane.b32.xlu0 %v2877_v37, %s2774_s21  ;;  %v2957_v46 = vpop.permute.xlu1 %235 }
  0xc1   :  { %v2959_v47 = vpop.permute.xlu0 %232  ;;  %889 = vrot.lane.b32.xlu1 %v2863_v31, %s2774_s21  ;;  %4841 = sst [smem:[#allocation23_spill]] %s3105_s20  ;;  %s4788_s20 = smov 125  }
  0xc3   :  { %886 = vrot.lane.b32.xlu0 %v2872_v35, %s2774_s21  ;;  %v2963_v48 = vpop.permute.xlu1 %245  ;;  %s3178_s21 = sld [smem:[#allocation3 + $0xc]] }
  0xc5   :  { %v2965_v49 = vpop.permute.xlu0 %242  ;;  %925 = vrot.lane.b32.xlu1 %v2868_v34, %s2753_s23 }
  0xc7   :  { %922 = vrot.lane.b32.xlu0 %v2877_v37, %s2753_s23  ;;  %v2971_v50 = vpop.permute.xlu1 %281 }
  0xc9   :  { %v2973_v51 = vpop.permute.xlu0 %278  ;;  %935 = vrot.lane.b32.xlu1 %v2863_v31, %s2753_s23  ;;  %4850 = sst [smem:[#allocation32_spill]] %s3178_s21 }
  0xca   :  { %s3301_s21 = sld [smem:[#allocation3 + $0x41]] }
  0xcb   :  { %932 = vrot.lane.b32.xlu0 %v2872_v35, %s2753_s23  ;;  %v2979_v52 = vpop.permute.xlu1 %291  ;;  %s2777_s23 = smov 13  }
  0xcd   :  { %v2981_v53 = vpop.permute.xlu0 %288  ;;  %971 = vrot.lane.b32.xlu1 %v2868_v34, %s2775_s22 }
  0xcf   :  { %968 = vrot.lane.b32.xlu0 %v2877_v37, %s2775_s22  ;;  %v2985_v54 = vpop.permute.xlu1 %327 }
  0xd1   :  { %v2987_v55 = vpop.permute.xlu0 %324  ;;  %981 = vrot.lane.b32.xlu1 %v2863_v31, %s2775_s22 }
  0xd3   :  { %978 = vrot.lane.b32.xlu0 %v2872_v35, %s2775_s22  ;;  %v2991_v56 = vpop.permute.xlu1 %337  ;;  %s3188_s22 = sld [smem:[#allocation3 + $0x3d]] }
  0xd5   :  { %v2993_v57 = vpop.permute.xlu0 %334  ;;  %1017 = vrot.lane.b32.xlu1 %v2868_v34, %s2776_s0 }
  0xd7   :  { %1014 = vrot.lane.b32.xlu0 %v2877_v37, %s2776_s0  ;;  %v2997_v58 = vpop.permute.xlu1 %373 }
  0xd9   :  { %v2999_v59 = vpop.permute.xlu0 %370  ;;  %1027 = vrot.lane.b32.xlu1 %v2863_v31, %s2776_s0  ;;  %4852 = sst [smem:[#allocation34_spill]] %s3188_s22 }
  0xda   :  { %s3324_s22 = sld [smem:[#allocation3 + $0x42]] }
  0xdb   :  { %1024 = vrot.lane.b32.xlu0 %v2872_v35, %s2776_s0  ;;  %v3003_v60 = vpop.permute.xlu1 %383  ;;  %s3119_s0 = sld [smem:[#allocation3 + $0x3a]] }
  0xdd   :  { %v3005_v61 = vpop.permute.xlu0 %380  ;;  %1063 = vrot.lane.b32.xlu1 %v2868_v34, %s2777_s23 }
  0xdf   :  { %1060 = vrot.lane.b32.xlu0 %v2877_v37, %s2777_s23  ;;  %v3009_v62 = vpop.permute.xlu1 %419 }
  0xe1   :  { %v3011_v63 = vpop.permute.xlu0 %416  ;;  %1073 = vrot.lane.b32.xlu1 %v2863_v31, %s2777_s23 }
  0xe3   :  { %1070 = vrot.lane.b32.xlu0 %v2872_v35, %s2777_s23  ;;  %v3015_v0 = vpop.permute.xlu1 %429  ;;  %s3128_s23 = sld [smem:[#allocation3 + $0xa]] }
  0xe5   :  { %v3017_v1 = vpop.permute.xlu0 %426  ;;  %1109 = vrot.lane.b32.xlu1 %v2868_v34, %s2778_s24 }
  0xe7   :  { %1106 = vrot.lane.b32.xlu0 %v2877_v37, %s2778_s24  ;;  %v3021_v2 = vpop.permute.xlu1 %465 }
  0xe9   :  { %v3023_v3 = vpop.permute.xlu0 %462  ;;  %1119 = vrot.lane.b32.xlu1 %v2863_v31, %s2778_s24  ;;  %4843 = sst [smem:[#allocation25_spill]] %s3128_s23 }
  0xea   :  { %s3250_s23 = sld [smem:[#allocation3 + $0xf]] }
  0xeb   :  { %1116 = vrot.lane.b32.xlu0 %v2872_v35, %s2778_s24  ;;  %v3027_v4 = vpop.permute.xlu1 %475  ;;  %s3140_s24 = sld [smem:[#allocation3 + $0x3b]] }
  0xed   :  { %v3029_v5 = vpop.permute.xlu0 %472  ;;  %1155 = vrot.lane.b32.xlu1 %v2868_v34, %s2779_s25 }
  0xef   :  { %1152 = vrot.lane.b32.xlu0 %v2877_v37, %s2779_s25  ;;  %v3035_v6 = vpop.permute.xlu1 %511 }
  0xf0   :  { %4834 = vst [vmem:[#allocation16_spill] sm:$0xff] %v3035_v6  ;;  %v4860_v6 = vstv %s3039_s28  ;;  %s3312_s28 = sld [smem:[#allocation3 + $0x11]] }
  0xf1   :  { %v3041_v7 = vpop.permute.xlu0 %508  ;;  %1165 = vrot.lane.b32.xlu1 %v2863_v31, %s2779_s25 }
  0xf2   :  { %4835 = vst [vmem:[#allocation17_spill] sm:$0xff] %v3041_v7 }
  0xf3   :  { %1162 = vrot.lane.b32.xlu0 %v2872_v35, %s2779_s25  ;;  %v3049_v8 = vpop.permute.xlu1 %521  ;;  %s2782_s25 = smov 126  }
  0xf5   :  { %v3055_v9 = vpop.permute.xlu0 %518  ;;  %1201 = vrot.lane.b32.xlu1 %v2868_v34, %s2780_s7 }
  0xf7   :  { %1198 = vrot.lane.b32.xlu0 %v2877_v37, %s2780_s7  ;;  %v3063_v10 = vpop.permute.xlu1 %557 }
  0xf8   :  { %4836 = vst [vmem:[#allocation18_spill] sm:$0xff] %v3063_v10  ;;  %v3186_v10 = vld [vmem:[#allocation7 + $0x10] ss:$8 sm:$0x3] }
  0xf9   :  { %v3069_v11 = vpop.permute.xlu0 %554  ;;  %1211 = vrot.lane.b32.xlu1 %v2863_v31, %s2780_s7  ;;  %4851 = vst [vmem:[#allocation33_spill] sm:$0xff] %v3186_v10  ;;  %v159_v10 = vsel %vm121_vm0, %v2944_v42, %v2932_v38 }
  0xfa   :  { %4837 = vst [vmem:[#allocation19_spill] sm:$0xff] %v3069_v11  ;;  %v3172_v11 = vld [vmem:[#allocation7 + $0x7] ss:$8 sm:$0x3] }
  0xfb   :  { %1208 = vrot.lane.b32.xlu0 %v2872_v35, %s2780_s7  ;;  %v3077_v12 = vpop.permute.xlu1 %567  ;;  %s3154_s7 = sld [smem:[#allocation3 + $0xb]]  ;;  %4848 = vst [vmem:[#allocation30_spill] sm:$0xff] %v3172_v11  ;;  %v122_v11 = vsel %vm121_vm0, %v2935_v39, %v2947_v43 }
  0xfc   :  { %4838 = vst [vmem:[#allocation20_spill] sm:$0xff] %v3077_v12  ;;  %v3248_v12 = vld [vmem:[#allocation7 + $0x14] ss:$8 sm:$0x3] }
  0xfd   :  { %v3083_v13 = vpop.permute.xlu0 %564  ;;  %1323 = vrot.lane.b32.xlu1 %v2877_v37, %s2781_s16  ;;  %4859 = vst [vmem:[#allocation41_spill] sm:$0xff] %v3248_v12 }
  0xfe   :  { %4839 = vst [vmem:[#allocation21_spill] sm:$0xff] %v3083_v13  ;;  %v3196_v13 = vld [vmem:[#allocation7 + $0x11] ss:$8 sm:$0x3] }
  0xff   :  { %1321 = vrot.lane.b32.xlu0 %v2868_v34, %s2781_s16  ;;  %v3099_v18 = vpop.permute.xlu1 %603  ;;  %4853 = vst [vmem:[#allocation35_spill] sm:$0xff] %v3196_v13  ;;  %v201_v13 = vsel %vm191_vm1, %v2938_v40, %v2941_v41 }
 0x100   :  { %4840 = vst [vmem:[#allocation22_spill] sm:$0xff] %v3099_v18 }
 0x101   :  { %v3107_v17 = vpop.permute.xlu0 %600  ;;  %1333 = vrot.lane.b32.xlu1 %v2872_v35, %s2781_s16  ;;  %4846 = sst [smem:[#allocation28_spill]] %s3154_s7  ;;  %s4861_s7 = smov 125  }
 0x102   :  { %4842 = vst [vmem:[#allocation24_spill] sm:$0xff] %v3107_v17  ;;  %v3210_v17 = vld [vmem:[#allocation7 + $0x12] ss:$8 sm:$0x3] }
 0x103   :  { %1331 = vrot.lane.b32.xlu0 %v2863_v31, %s2781_s16  ;;  %v3131_v22 = vpop.permute.xlu1 %613  ;;  %s3164_s16 = sld [smem:[#allocation3 + $0x3c]]  ;;  %4855 = vst [vmem:[#allocation37_spill] sm:$0xff] %v3210_v17  ;;  %v195_v17 = vsel %vm191_vm1, %v2953_v45, %v2951_v44 }
 0x104   :  { %4844 = vst [vmem:[#allocation26_spill] sm:$0xff] %v3131_v22  ;;  %v3148_v22 = vld [vmem:[#allocation7 + $0x5] ss:$8 sm:$0x3] }
 0x105   :  { %v3150_v23 = vpop.permute.xlu0 %610  ;;  %1369 = vrot.lane.b32.xlu1 %v2877_v37, %s2782_s25 }
 0x106   :  { %4845 = vst [vmem:[#allocation27_spill] sm:$0xff] %v3150_v23 }
 0x107   :  { %1367 = vrot.lane.b32.xlu0 %v2868_v34, %s2782_s25  ;;  %v3176_v18 = vpop.permute.xlu1 %649 }
 0x108   :  { %4849 = vst [vmem:[#allocation31_spill] sm:$0xff] %v3176_v18  ;;  %v125_v18 = vsel %vm121_vm0, %v2947_v43, %v2935_v39  ;;  %v204_v43 = vsel %vm191_vm1, %v2941_v41, %v2938_v40  ;;  %v4875_v41 = vrot.slane %v3094_v16, %v3087_v14 }
 0x109   :  { %4847 = sst [smem:[#allocation29_spill]] %s3164_s16  ;;  %v3198_v30 = vpop.permute.xlu0 %646  ;;  %1379 = vrot.lane.b32.xlu1 %v2872_v35, %s2782_s25  ;;  %v164_v23 = vmul.f32 %v4860_v6, %v125_v18  ;;  %v192_v6 = vsel %vm191_vm1, %v2951_v44, %v2953_v45  ;;  %v4867_v18 = vstv %s3044_s5  ;;  %v4869_v45 = vstv %s3037_s27 }
 0x10a   :  { %4854 = vst [vmem:[#allocation36_spill] sm:$0xff] %v3198_v30  ;;  %v3284_v30 = vld [vmem:[#allocation7 + $0x15] ss:$8 sm:$0x3]  ;;  %s3286_s16 = sld [smem:[#allocation3 + $0x10]]  ;;  %vm927_vm1 = vcmask 130048  }
 0x10b   :  { %1377 = vrot.lane.b32.xlu0 %v2863_v31, %s2782_s25  ;;  %v3222_v24 = vpop.permute.xlu1 %659  ;;  %s3236_s25 = sld [smem:[#allocation3 + $0x3f]] }
 0x10c   :  { %4856 = vst [vmem:[#allocation38_spill] sm:$0xff] %v3222_v24  ;;  %v156_v24 = vsel %vm121_vm0, %v2932_v38, %v2944_v42  ;;  %v4864_v38 = vstv %s3037_s27  ;;  %s2784_s27 = smov 115   ;;  %s3373_s5 = sld [smem:[#allocation3 + $0x43]]  ;;  %vm881_vm0 = vcmask 138240  }
 0x10d   :  { %v3244_v7 = vpop.permute.xlu0 %656  ;;  %1415 = vrot.lane.b32.xlu1 %v2877_v37, %s4788_s20  ;;  %s3261_s20 = sld [smem:[#allocation3 + $0x40]]  ;;  %v167_v42 = vmul.f32 %v4864_v38, %v159_v10  ;;  %v210_v10 = vmul.f32 %v4867_v18, %v195_v17  ;;  %v3310_v38 = vld [vmem:[#allocation7 + $0x16] ss:$8 sm:$0x3]  ;;  %v168_v12 = vmul.f32 %v4869_v45, %v156_v24  ;;  %v4871_v17 = vstv %s3032_s26 }
 0x10e   :  { %4858 = vst [vmem:[#allocation40_spill] sm:$0xff] %v3244_v7  ;;  %4868 = vst [vmem:[#allocation45_spill] sm:$0xff] %v3310_v38  ;;  %v4870_v7 = vmov %v4867_v18  ;;  %v213_v18 = vmul.f32 %v4871_v17, %v204_v43  ;;  %s3351_s26 = sld [smem:[#allocation3 + $0x12]] }
 0x10f   :  { %1413 = vrot.lane.b32.xlu0 %v2868_v34, %s4861_s7  ;;  %v3272_v39 = vpop.permute.xlu1 %695  ;;  %v211_v26 = vmul.f32 %v4870_v7, %v192_v6  ;;  %v4872_v7 = vmov %v4871_v17  ;;  %v3343_v17 = vld [vmem:[#allocation7 + $0x17] ss:$8 sm:$0x3] }
 0x110   :  { %4862 = vst [vmem:[#allocation42_spill] sm:$0xff] %v3272_v39  ;;  %4863 = sst [smem:[#allocation43_spill]] %s3286_s16  ;;  %v165_v39 = vmul.f32 %v4865_v33, %v122_v11  ;;  %v214_v6 = vmul.f32 %v4872_v7, %v201_v13  ;;  %v250_v11 = vsel %vm237_vm2, %v2965_v49, %v2963_v48  ;;  %4873 = vst [vmem:[#allocation46_spill] sm:$0xff] %v3343_v17  ;;  %v3349_v7 = vld [vmem:[#allocation7 + $0x20] ss:$8 sm:$0x3]  ;;  %v4876_v13 = vstv %s3051_s2 }
 0x111   :  { %v3295_v44 = vpop.permute.xlu0 %692  ;;  %1425 = vrot.lane.b32.xlu1 %v2872_v35, %s4861_s7  ;;  %v215_v24 = vadd.f32 %v213_v18, %v210_v10  ;;  %4874 = vst [vmem:[#allocation47_spill] sm:$0xff] %v3349_v7  ;;  %v241_v10 = vsel %vm237_vm2, %v2959_v47, %v2957_v46  ;;  %v247_v18 = vsel %vm237_vm2, %v2963_v48, %v2965_v49  ;;  %s3546_s2 = sld [smem:[#allocation3 + $0x18]] }
 0x112   :  { %4866 = vst [vmem:[#allocation44_spill] sm:$0xff] %v3295_v44  ;;  %v169_v44 = vadd.f32 %v167_v42, %v164_v23  ;;  %v170_v45 = vadd.f32 %v168_v12, %v165_v39  ;;  %v216_v43 = vadd.f32 %v214_v6, %v211_v26  ;;  %v259_v39 = vmul.f32 %v4876_v13, %v250_v11  ;;  %s3568_s16 = sld [smem:[#allocation3 + $0x47]] }
 0x113   :  { %1423 = vrot.lane.b32.xlu0 %v2863_v31, %s4861_s7  ;;  %v3320_v40 = vpop.permute.xlu1 %705  ;;  %v4877_v48 = vrot.slane %v3094_v16, %v3090_v15  ;;  %v238_v11 = vsel %vm237_vm2, %v2957_v46, %v2959_v47  ;;  %v4878_v16 = vrot.slane %v3101_v19, %v3087_v14  ;;  %v3397_v47 = vld [vmem:[#allocation7 + $0x21] ss:$8 sm:$0x3]  ;;  %s2786_s7 = smov 113   ;;  %vm973_vm2 = vcmask 121856  }
 0x114   :  { %v182_v23 = vmul.f32 %v4875_v41, %v169_v44  ;;  %v4880_v41 = vmov %v4876_v13  ;;  %4881 = vst [vmem:[#allocation48_spill] sm:$0xff] %v3397_v47  ;;  %v4882_v13 = vstv %s4761_s1  ;;  %v4883_v44 = vrot.slane %v3101_v19, %v3090_v15  ;;  %s3463_s1 = sld [smem:[#allocation3 + $0x44]]  ;;  %v4951_v47 = vld [vmem:[#allocation31_spill] sm:$0xff] }
 0x115   :  { %v3337_v33 = vpop.permute.xlu0 %702  ;;  %1461 = vrot.lane.b32.xlu1 %v2877_v37, %s2784_s27  ;;  %v183_v49 = vmul.f32 %v4877_v48, %v170_v45  ;;  %v228_v26 = vmul.f32 %v4878_v16, %v215_v24  ;;  %v4879_v45 = vstv %s3046_s6  ;;  %v260_v42 = vmul.f32 %v4880_v41, %v247_v18  ;;  %s2785_s6 = smov 114  }
 0x116   :  { %v256_v48 = vmul.f32 %v4879_v45, %v241_v10  ;;  %v184_v17 = vadd.f32 %v182_v23, %v4882_v13  ;;  %v229_v38 = vmul.f32 %v4883_v44, %v216_v43  ;;  %v4884_v41 = vmov %v4879_v45 }
 0x117   :  { %1459 = vrot.lane.b32.xlu0 %v2868_v34, %s2784_s27  ;;  %v3364_v12 = vpop.permute.xlu1 %741  ;;  %v257_v16 = vmul.f32 %v4884_v41, %v238_v11  ;;  %v293_v23 = vsel %vm283_vm3, %v2979_v52, %v2981_v53  ;;  %v296_v19 = vsel %vm283_vm3, %v2981_v53, %v2979_v52  ;;  %v4885_v43 = vmov %v4882_v13 }
 0x118   :  { %v261_v45 = vadd.f32 %v259_v39, %v256_v48  ;;  %v185_v44 = vadd.f32 %v183_v49, %v4885_v43  ;;  %v287_v11 = vsel %vm283_vm3, %v2973_v51, %v2971_v50  ;;  %v230_v53 = vadd.f32 %v228_v26, %v184_v17 }
 0x119   :  { %v3381_v6 = vpop.permute.xlu0 %738  ;;  %1471 = vrot.lane.b32.xlu1 %v2872_v35, %s2784_s27  ;;  %v262_v49 = vadd.f32 %v260_v42, %v257_v16  ;;  %v284_v48 = vsel %vm283_vm3, %v2971_v50, %v2973_v51  ;;  %v4886_v43 = vstv %s3058_s8  ;;  %v339_v52 = vsel %vm329_vm4, %v2991_v56, %v2993_v57  ;;  %s3501_s8 = sld [smem:[#allocation3 + $0x45]] }
 0x11a   :  { %v305_v46 = vmul.f32 %v4886_v43, %v296_v19  ;;  %v4887_v10 = vmov %v4886_v43  ;;  %v342_v17 = vsel %vm329_vm4, %v2993_v57, %v2991_v56  ;;  %v231_v50 = vadd.f32 %v229_v38, %v185_v44 }
 0x11b   :  { %1469 = vrot.lane.b32.xlu0 %v2863_v31, %s2784_s27  ;;  %v3408_v24 = vpop.permute.xlu1 %751  ;;  %s3435_s27 = sld [smem:[#allocation3 + $0x13]]  ;;  %v306_v13 = vmul.f32 %v4887_v10, %v293_v23  ;;  %v4888_v51 = vrot.slane %v3117_v25, %v3087_v14  ;;  %v4889_v10 = vstv %s3053_s3  ;;  %v3460_v23 = vld [vmem:[#allocation7 + $0x22] ss:$8 sm:$0x3]  ;;  %v330_v43 = vsel %vm329_vm4, %v2985_v54, %v2987_v55 }
 0x11c   :  { %v302_v16 = vmul.f32 %v4889_v10, %v287_v11  ;;  %4890 = vst [vmem:[#allocation49_spill] sm:$0xff] %v3460_v23  ;;  %v4891_v56 = vmov %v4889_v10  ;;  %v333_v38 = vsel %vm329_vm4, %v2987_v55, %v2985_v54  ;;  %s3480_s3 = sld [smem:[#allocation3 + $0x14]]  ;;  %v4892_v11 = vrot.slane %v3117_v25, %v3090_v15  ;;  %v4950_v23 = vld [vmem:[#allocation36_spill] sm:$0xff] }
 0x11d   :  { %v3427_v39 = vpop.permute.xlu0 %748  ;;  %1507 = vrot.lane.b32.xlu1 %v2877_v37, %s2785_s6  ;;  %v274_v26 = vmul.f32 %v4888_v51, %v261_v45  ;;  %v303_v57 = vmul.f32 %v4891_v56, %v284_v48  ;;  %v388_v45 = vsel %vm375_vm5, %v3005_v61, %v3003_v60  ;;  %v4893_v51 = vstv %s3065_s10  ;;  %s3512_s10 = sld [smem:[#allocation3 + $0x15]] }
 0x11e   :  { %v275_v48 = vmul.f32 %v4892_v11, %v262_v49  ;;  %v351_v54 = vmul.f32 %v4893_v51, %v342_v17  ;;  %v4894_v55 = vmov %v4893_v51  ;;  %v385_v56 = vsel %vm375_vm5, %v3003_v60, %v3005_v61 }
 0x11f   :  { %1505 = vrot.lane.b32.xlu0 %v2868_v34, %s2785_s6  ;;  %v3453_v42 = vpop.permute.xlu1 %787  ;;  %v352_v10 = vmul.f32 %v4894_v55, %v339_v52  ;;  %v307_v41 = vadd.f32 %v305_v46, %v302_v16  ;;  %v308_v19 = vadd.f32 %v306_v13, %v303_v57  ;;  %v379_v18 = vsel %vm375_vm5, %v2999_v59, %v2997_v58 }
 0x120   :  { %v4895_v52 = vstv %s3060_s9  ;;  %v376_v46 = vsel %vm375_vm5, %v2997_v58, %v2999_v59  ;;  %v4897_v13 = vstv %s3072_s12  ;;  %v276_v57 = vadd.f32 %v274_v26, %v230_v53  ;;  %s3525_s9 = sld [smem:[#allocation3 + $0x46]] }
 0x121   :  { %v3476_v44 = vpop.permute.xlu0 %784  ;;  %1517 = vrot.lane.b32.xlu1 %v2872_v35, %s2785_s6  ;;  %v348_v17 = vmul.f32 %v4895_v52, %v333_v38  ;;  %v4896_v60 = vmov %v4895_v52  ;;  %v397_v16 = vmul.f32 %v4897_v13, %v388_v45  ;;  %v4898_v11 = vmov %v4897_v13  ;;  %v3523_v52 = vld [vmem:[#allocation7 + $0x23] ss:$8 sm:$0x3]  ;;  %s3529_s12 = sld [smem:[#allocation3 + $0x16]] }
 0x122   :  { %v349_v61 = vmul.f32 %v4896_v60, %v330_v43  ;;  %v398_v51 = vmul.f32 %v4898_v11, %v385_v56  ;;  %4899 = vst [vmem:[#allocation50_spill] sm:$0xff] %v3523_v52  ;;  %v277_v58 = vadd.f32 %v275_v48, %v231_v50  ;;  %v4900_v26 = vstv %s3067_s11  ;;  %s3554_s11 = sld [smem:[#allocation3 + $0x49]] }
 0x123   :  { %1515 = vrot.lane.b32.xlu0 %v2863_v31, %s2785_s6  ;;  %v3497_v25 = vpop.permute.xlu1 %797  ;;  %v353_v59 = vadd.f32 %v351_v54, %v348_v17  ;;  %v394_v45 = vmul.f32 %v4900_v26, %v379_v18  ;;  %v4901_v56 = vrot.slane %v3126_v36, %v3087_v14  ;;  %v4902_v13 = vrot.slane %v3126_v36, %v3090_v15  ;;  %s2787_s6 = smov 112  }
 0x124   :  { %v354_v53 = vadd.f32 %v352_v10, %v349_v61  ;;  %v4903_v43 = vmov %v4900_v26  ;;  %v434_v50 = vsel %vm421_vm6, %v3017_v1, %v3015_v0  ;;  %v431_v36 = vsel %vm421_vm6, %v3015_v0, %v3017_v1  ;;  %v3566_v61 = vld [vmem:[#allocation7 + $0x24] ss:$8 sm:$0x3] }
 0x125   :  { %v3516_v55 = vpop.permute.xlu0 %794  ;;  %1553 = vrot.lane.b32.xlu1 %v2877_v37, %s2786_s7  ;;  %v320_v60 = vmul.f32 %v4901_v56, %v307_v41  ;;  %v321_v11 = vmul.f32 %v4902_v13, %v308_v19  ;;  %v395_v49 = vmul.f32 %v4903_v43, %v376_v46  ;;  %v399_v48 = vadd.f32 %v397_v16, %v394_v45  ;;  %v1247_v56 = vld [vmem:[#allocation7 + $0x30] ss:$8 sm:$0x3] }
 0x126   :  { %v425_v10 = vsel %vm421_vm6, %v3011_v63, %v3009_v62  ;;  %4904 = vst [vmem:[#allocation51_spill] sm:$0xff] %v3566_v61  ;;  %v4906_v16 = vrot.slane %v3138_v32, %v3090_v15  ;;  %v422_v43 = vsel %vm421_vm6, %v3009_v62, %v3011_v63  ;;  %v4907_v26 = vstv %s3079_s14  ;;  %s3599_s14 = sld [smem:[#allocation3 + $0x17]]  ;;  %v4936_v61 = vld [vmem:[#allocation26_spill] sm:$0xff] }
 0x127   :  { %1551 = vrot.lane.b32.xlu0 %v2868_v34, %s2786_s7  ;;  %v3544_v18 = vpop.permute.xlu1 %833  ;;  %v400_v54 = vadd.f32 %v398_v51, %v395_v49  ;;  %v4905_v49 = vrot.slane %v3138_v32, %v3087_v14  ;;  %v443_v45 = vmul.f32 %v4907_v26, %v434_v50  ;;  %v322_v13 = vadd.f32 %v320_v60, %v276_v57  ;;  %v3620_v57 = vld [vmem:[#allocation7 + $0x26] ss:$8 sm:$0x3] }
 0x128   :  { %v367_v51 = vmul.f32 %v4906_v16, %v354_v53  ;;  %v323_v0 = vadd.f32 %v321_v11, %v277_v58  ;;  %v4908_v19 = vmov %v4907_v26  ;;  %v4909_v32 = vrot.slane %v3148_v22, %v3087_v14  ;;  %v3597_v58 = vld [vmem:[#allocation7 + $0x25] ss:$8 sm:$0x3]  ;;  %4914 = vst [vmem:[#allocation53_spill] sm:$0xff] %v3620_v57 }
 0x129   :  { %v3559_v17 = vpop.permute.xlu0 %830  ;;  %1563 = vrot.lane.b32.xlu1 %v2872_v35, %s2786_s7  ;;  %v366_v46 = vmul.f32 %v4905_v49, %v353_v59  ;;  %v444_v1 = vmul.f32 %v4908_v19, %v431_v36  ;;  %v4910_v16 = vstv %s3074_s13  ;;  %4911 = vst [vmem:[#allocation52_spill] sm:$0xff] %v3597_v58  ;;  %v4912_v60 = vrot.slane %v3148_v22, %v3090_v15  ;;  %s2788_s13 = smov 111   ;;  %v4935_v58 = vld [vmem:[#allocation27_spill] sm:$0xff] }
 0x12a   :  { %v412_v53 = vmul.f32 %v4909_v32, %v399_v48  ;;  %v440_v62 = vmul.f32 %v4910_v16, %v425_v10  ;;  %v4913_v50 = vmov %v4910_v16  ;;  %v1260_v19 = vrot.slane %v1247_v56, %v3087_v14 }
 0x12b   :  { %1561 = vrot.lane.b32.xlu0 %v2863_v31, %s2786_s7  ;;  %v3585_v59 = vpop.permute.xlu1 %843  ;;  %v413_v11 = vmul.f32 %v4912_v60, %v400_v54  ;;  %v441_v48 = vmul.f32 %v4913_v50, %v422_v43  ;;  %v1264_v10 = vrot.slane %v1247_v56, %v3090_v15  ;;  %v368_v26 = vadd.f32 %v366_v46, %v322_v13  ;;  %v4921_v54 = vld [vmem:[#allocation17_spill] sm:$0xff]  ;;  %v4922_v60 = vld [vmem:[#allocation16_spill] sm:$0xff]  ;;  %s4952_s7 = sld [smem:[#allocation28_spill]] }
 0x12c   :  { %v369_v32 = vadd.f32 %v367_v51, %v323_v0  ;;  %v445_v22 = vadd.f32 %v443_v45, %v440_v62  ;;  %v1248_v56 = vstv %s3546_s2  ;;  %v1251_v51 = vstv %s3554_s11  ;;  %s2790_s2 = smov 109   ;;  %s4968_s11 = sld [smem:[#allocation32_spill]] }
 0x12d   :  { %v3606_v36 = vpop.permute.xlu0 %840  ;;  %1599 = vrot.lane.b32.xlu1 %v2877_v37, %s2787_s6  ;;  %v446_v43 = vadd.f32 %v444_v1, %v441_v48  ;;  %v414_v63 = vadd.f32 %v412_v53, %v368_v26  ;;  %v471_v1 = vsel %vm467_vm7, %v3023_v3, %v3021_v2  ;;  %v1265_v48 = vcombine.low %v1260_v19, %v1264_v10 }
 0x12e   :  { %v415_v45 = vadd.f32 %v413_v11, %v369_v32  ;;  %v4915_v53 = vrot.slane %v3162_v29, %v3087_v14  ;;  %v468_v11 = vsel %vm467_vm7, %v3021_v2, %v3023_v3  ;;  %v1249_v0 = vmul.f32 %v1248_v56, %v2855_v27 }
 0x12f   :  { %1597 = vrot.lane.b32.xlu0 %v2868_v34, %s2787_s6  ;;  %v3615_v16 = vpop.permute.xlu1 %879  ;;  %v4916_v50 = vrot.slane %v3162_v29, %v3090_v15  ;;  %v477_v19 = vsel %vm467_vm7, %v3027_v4, %v3029_v5  ;;  %v480_v10 = vsel %vm467_vm7, %v3029_v5, %v3027_v4  ;;  %v1252_v27 = vmul.f32 %v1251_v51, %v2846_v20 }
 0x130   :  { %v458_v26 = vmul.f32 %v4915_v53, %v445_v22  ;;  %v4917_v3 = vstv %s3081_s15  ;;  %v523_v4 = vsel %vm513_vm8, %v3049_v8, %v3055_v9  ;;  %v526_v5 = vsel %vm513_vm8, %v3055_v9, %v3049_v8  ;;  %v4918_v53 = vld [vmem:[#allocation15_spill] sm:$0xff]  ;;  %s4930_s15 = sld [smem:[#allocation23_spill]] }
 0x131   :  { %v3630_v13 = vpop.permute.xlu0 %876  ;;  %1609 = vrot.lane.b32.xlu1 %v2872_v35, %s2787_s6  ;;  %v459_v46 = vmul.f32 %v4916_v50, %v446_v43  ;;  %v486_v29 = vmul.f32 %v4917_v3, %v471_v1  ;;  %v1250_v50 = vmul.f32 %v1248_v56, %v2857_v28  ;;  %v1253_v1 = vmul.f32 %v1251_v51, %v2848_v21 }
 0x132   :  { %v3676_v28 = vrot.slane %v1265_v48, %v4918_v53  ;;  %v3678_v56 = vadd.f32 %v458_v26, %v414_v63  ;;  %v487_v22 = vmul.f32 %v4917_v3, %v468_v11  ;;  %v4919_v32 = vstv %s3092_s17  ;;  %v4926_v11 = vld [vmem:[#allocation21_spill] sm:$0xff]  ;;  %s4943_s17 = sld [smem:[#allocation25_spill]] }
 0x133   :  { %1607 = vrot.lane.b32.xlu0 %v2863_v31, %s2787_s6  ;;  %v3655_v2 = vpop.permute.xlu1 %889  ;;  %v489_v43 = vmul.f32 %v4919_v32, %v480_v10  ;;  %v4920_v8 = vmov %v4919_v32  ;;  %v3686_v62 = vadd.f32 %v459_v46, %v415_v45  ;;  %v514_v49 = vsel %vm513_vm8, %v4922_v60, %v4921_v54  ;;  %v4927_v32 = vld [vmem:[#allocation20_spill] sm:$0xff]  ;;  %v4929_v10 = vld [vmem:[#allocation18_spill] sm:$0xff]  ;;  %s2791_s6 = smov 99  }
 0x134   :  { %v490_v9 = vmul.f32 %v4920_v8, %v477_v19  ;;  %v517_v21 = vsel %vm513_vm8, %v4921_v54, %v4922_v60  ;;  %v3698_v51 = vadd.f32 %v1252_v27, %v1249_v0  ;;  %v4924_v46 = vstv %s3103_s19  ;;  %v4928_v60 = vld [vmem:[#allocation19_spill] sm:$0xff]  ;;  %s4944_s19 = sld [smem:[#allocation29_spill]] }
 0x135   :  { %v3670_v20 = vpop.permute.xlu0 %886  ;;  %1645 = vrot.lane.b32.xlu1 %v2877_v37, %s2788_s13  ;;  %v535_v45 = vmul.f32 %v4924_v46, %v526_v5  ;;  %v4925_v48 = vmov %v4924_v46  ;;  %v569_v19 = vsel %vm559_vm9, %v4927_v32, %v4926_v11  ;;  %v572_v54 = vsel %vm559_vm9, %v4926_v11, %v4927_v32 }
 0x136   :  { %v536_v26 = vmul.f32 %v4925_v48, %v523_v4  ;;  %v560_v3 = vsel %vm559_vm9, %v4929_v10, %v4928_v60  ;;  %v563_v0 = vsel %vm559_vm9, %v4928_v60, %v4929_v10  ;;  %v3720_v4 = vadd.f32 %v1253_v1, %v1250_v50 }
 0x137   :  { %1643 = vrot.lane.b32.xlu0 %v2868_v34, %s2788_s13  ;;  %v3696_v63 = vpop.permute.xlu1 %925  ;;  %v1273_v5 = vcombine.high %v3676_v28, %v3676_v28  ;;  %v491_v8 = vadd.f32 %v489_v43, %v486_v29  ;;  %v492_v46 = vadd.f32 %v490_v9, %v487_v22  ;;  %v4931_v48 = vstv %s3096_s18  ;;  %s2789_s18 = smov 110  }
 0x138   :  { %4923 = vst [vmem:[#allocation15_spill] sm:$0xff] %v3696_v63  ;;  %v532_v11 = vmul.f32 %v4931_v48, %v517_v21  ;;  %v4932_v32 = vmov %v4931_v48  ;;  %v4933_v41 = vstv %s3119_s0  ;;  %v615_v52 = vsel %vm605_vm10, %v4936_v61, %v4935_v58  ;;  %v4939_v21 = vld [vmem:[#allocation24_spill] sm:$0xff]  ;;  %v4942_v48 = vld [vmem:[#allocation38_spill] sm:$0xff]  ;;  %s3762_s0 = sld [smem:[#allocation3 + $0x48]] }
 0x139   :  { %v3716_v27 = vpop.permute.xlu0 %922  ;;  %1655 = vrot.lane.b32.xlu1 %v2872_v35, %s2788_s13  ;;  %v533_v38 = vmul.f32 %v4932_v32, %v514_v49  ;;  %v581_v60 = vmul.f32 %v4933_v41, %v572_v54  ;;  %v4934_v10 = vmov %v4933_v41  ;;  %v618_v50 = vsel %vm605_vm10, %v4935_v58, %v4936_v61  ;;  %v4941_v58 = vld [vmem:[#allocation40_spill] sm:$0xff] }
 0x13a   :  { %v582_v57 = vmul.f32 %v4934_v10, %v569_v19  ;;  %v537_v49 = vadd.f32 %v535_v45, %v532_v11  ;;  %v4937_v22 = vstv %s4930_s15  ;;  %v4940_v19 = vld [vmem:[#allocation22_spill] sm:$0xff]  ;;  %v661_v32 = vsel %vm651_vm11, %v4942_v48, %v4941_v58  ;;  %s2800_s15 = smov 81  }
 0x13b   :  { %1653 = vrot.lane.b32.xlu0 %v2863_v31, %s2788_s13  ;;  %v3740_v29 = vpop.permute.xlu1 %935  ;;  %v538_v41 = vadd.f32 %v536_v26, %v533_v38  ;;  %v578_v43 = vmul.f32 %v4937_v22, %v563_v0  ;;  %v4938_v1 = vmov %v4937_v22  ;;  %v606_v54 = vsel %vm605_vm10, %v4940_v19, %v4939_v21  ;;  %v4945_v26 = vld [vmem:[#allocation30_spill] sm:$0xff]  ;;  %s4283_s13 = sld [smem:[#allocation3 + $0x4f]] }
 0x13c   :  { %v579_v9 = vmul.f32 %v4938_v1, %v560_v3  ;;  %v609_v61 = vsel %vm605_vm10, %v4939_v21, %v4940_v19  ;;  %v664_v38 = vsel %vm651_vm11, %v4941_v58, %v4942_v48  ;;  %v4946_v3 = vrot.slane %v4945_v26, %v3087_v14 }
 0x13d   :  { %v3758_v45 = vpop.permute.xlu0 %932  ;;  %1691 = vrot.lane.b32.xlu1 %v2877_v37, %s2789_s18  ;;  %v4947_v11 = vrot.slane %v4945_v26, %v3090_v15  ;;  %v4948_v22 = vstv %s3140_s24  ;;  %v583_v58 = vadd.f32 %v581_v60, %v578_v43  ;;  %v652_v7 = vsel %vm651_vm11, %v4951_v47, %v4950_v23  ;;  %s4965_s24 = sld [smem:[#allocation34_spill]] }
 0x13e   :  { %v504_v0 = vmul.f32 %v4946_v3, %v491_v8  ;;  %v627_v1 = vmul.f32 %v4948_v22, %v618_v50  ;;  %v4949_v21 = vmov %v4948_v22  ;;  %v584_v48 = vadd.f32 %v582_v57, %v579_v9  ;;  %v4957_v3 = vld [vmem:[#allocation33_spill] sm:$0xff] }
 0x13f   :  { %v505_v10 = vmul.f32 %v4947_v11, %v492_v46  ;;  %v628_v19 = vmul.f32 %v4949_v21, %v615_v52  ;;  %v655_v63 = vsel %vm651_vm11, %v4950_v23, %v4951_v47  ;;  %1689 = vrot.lane.b32.xlu0 %v2868_v34, %s2789_s18  ;;  %v3782_v8 = vpop.permute.xlu1 %971  ;;  %v4953_v46 = vstv %s4943_s17  ;;  %s4295_s17 = sld [smem:[#allocation3 + $0x1f]] }
 0x140   :  { %v624_v52 = vmul.f32 %v4953_v46, %v609_v61  ;;  %v4954_v60 = vmov %v4953_v46  ;;  %v4955_v50 = vstv %s4944_s19  ;;  %v4958_v11 = vrot.slane %v4957_v3, %v3087_v14  ;;  %s2801_s19 = smov 80  }
 0x141   :  { %v625_v57 = vmul.f32 %v4954_v60, %v606_v54  ;;  %v673_v43 = vmul.f32 %v4955_v50, %v664_v38  ;;  %v4956_v9 = vmov %v4955_v50  ;;  %v4959_v23 = vrot.slane %v4957_v3, %v3090_v15  ;;  %v3798_v21 = vpop.permute.xlu0 %968  ;;  %1701 = vrot.lane.b32.xlu1 %v2872_v35, %s2789_s18 }
 0x142   :  { %v674_v26 = vmul.f32 %v4956_v9, %v661_v32  ;;  %v550_v47 = vmul.f32 %v4958_v11, %v537_v49  ;;  %v1280_v54 = vrot.slane %v3676_v28, %v4918_v53  ;;  %v1287_v61 = vrot.slane %v1273_v5, %v4918_v53  ;;  %v3809_v9 = vld [vmem:[#allocation7 + $0x27] ss:$8 sm:$0x3] }
 0x143   :  { %v551_v22 = vmul.f32 %v4959_v23, %v538_v41  ;;  %v629_v38 = vadd.f32 %v627_v1, %v624_v52  ;;  %v630_v32 = vadd.f32 %v628_v19, %v625_v57  ;;  %v4960_v46 = vstv %s4952_s7  ;;  %v4962_v11 = vld [vmem:[#allocation35_spill] sm:$0xff]  ;;  %1699 = vrot.lane.b32.xlu0 %v2863_v31, %s2789_s18  ;;  %v4966_v57 = vld [vmem:[#allocation37_spill] sm:$0xff]  ;;  %s4299_s18 = sld [smem:[#allocation3 + $0x50]] }
 0x144   :  { %v670_v60 = vmul.f32 %v4960_v46, %v655_v63  ;;  %v4961_v50 = vmov %v4960_v46  ;;  %v506_v41 = vadd.f32 %v504_v0, %v3678_v56  ;;  %v507_v3 = vadd.f32 %v505_v10, %v3686_v62  ;;  %s4315_s7 = sld [smem:[#allocation3 + $0x51]] }
 0x145   :  { %v671_v49 = vmul.f32 %v4961_v50, %v652_v7  ;;  %v4963_v23 = vrot.slane %v4962_v11, %v3087_v14  ;;  %v4964_v5 = vrot.slane %v4962_v11, %v3090_v15  ;;  %v3821_v7 = vpop.permute.xlu1 %981  ;;  %v707_v62 = vsel %vm697_vm12, %v3320_v40, %v3337_v33  ;;  %1737 = vrot.lane.b32.xlu1 %v2877_v37, %s2790_s2 }
 0x146   :  { %v675_v63 = vadd.f32 %v673_v43, %v670_v60  ;;  %v710_v56 = vsel %vm697_vm12, %v3337_v33, %v3320_v40  ;;  %v552_v0 = vadd.f32 %v550_v47, %v506_v41  ;;  %v553_v10 = vadd.f32 %v551_v22, %v507_v3  ;;  %v4970_v47 = vld [vmem:[#allocation44_spill] sm:$0xff]  ;;  %v4971_v22 = vld [vmem:[#allocation42_spill] sm:$0xff] }
 0x147   :  { %v596_v28 = vmul.f32 %v4963_v23, %v583_v58  ;;  %v597_v1 = vmul.f32 %v4964_v5, %v584_v48  ;;  %v676_v19 = vadd.f32 %v674_v26, %v671_v49  ;;  %v3829_v58 = vpop.permute.xlu0 %978  ;;  %v1224_v48 = vstv %s3762_s0  ;;  %1735 = vrot.lane.b32.xlu0 %v2868_v34, %s2790_s2  ;;  %s4311_s0 = sld [smem:[#allocation3 + $0x20]] }
 0x148   :  { %v1233_v52 = vrot.slane %v3809_v9, %v3087_v14  ;;  %v4967_v43 = vrot.slane %v4966_v57, %v3087_v14  ;;  %v4969_v33 = vrot.slane %v4966_v57, %v3090_v15  ;;  %v698_v46 = vsel %vm697_vm12, %v4971_v22, %v4970_v47  ;;  %v4974_v57 = vld [vmem:[#allocation39_spill] sm:$0xff] }
 0x149   :  { %v701_v60 = vsel %vm697_vm12, %v4970_v47, %v4971_v22  ;;  %v4972_v50 = vstv %s4965_s24  ;;  %v3857_v11 = vmul.f32 %v1280_v54, %v3698_v51  ;;  %v598_v23 = vadd.f32 %v596_v28, %v552_v0  ;;  %1747 = vrot.lane.b32.xlu1 %v2872_v35, %s2790_s2  ;;  %s2802_s24 = smov 79  }
 0x14a   :  { %v642_v26 = vmul.f32 %v4967_v43, %v629_v38  ;;  %v643_v40 = vmul.f32 %v4969_v33, %v630_v32  ;;  %v719_v49 = vmul.f32 %v4972_v50, %v710_v56  ;;  %v4973_v41 = vmov %v4972_v50  ;;  %v3854_v38 = vpop.permute.xlu1 %1017 }
 0x14b   :  { %v720_v3 = vmul.f32 %v4973_v41, %v707_v62  ;;  %v3860_v32 = vmul.f32 %v1287_v61, %v3720_v4  ;;  %v599_v5 = vadd.f32 %v597_v1, %v553_v10  ;;  %v4975_v43 = vrot.slane %v4974_v57, %v3087_v14  ;;  %v3878_v54 = vpop.permute.xlu0 %1014  ;;  %1745 = vrot.lane.b32.xlu0 %v2863_v31, %s2790_s2  ;;  %s4327_s2 = sld [smem:[#allocation3 + $0x21]] }
 0x14c   :  { %v4976_v62 = vrot.slane %v4974_v57, %v3090_v15  ;;  %v4977_v47 = vstv %s4968_s11  ;;  %v753_v51 = vsel %vm743_vm13, %v3408_v24, %v3427_v39  ;;  %v756_v4 = vsel %vm743_vm13, %v3427_v39, %v3408_v24  ;;  %s4331_s11 = sld [smem:[#allocation3 + $0x52]] }
 0x14d   :  { %v688_v33 = vmul.f32 %v4975_v43, %v675_v63  ;;  %v716_v22 = vmul.f32 %v4977_v47, %v701_v60  ;;  %v4978_v50 = vmov %v4977_v47  ;;  %v644_v61 = vadd.f32 %v642_v26, %v598_v23  ;;  %1783 = vrot.lane.b32.xlu1 %v2877_v37, %s2791_s6 }
 0x14e   :  { %v689_v56 = vmul.f32 %v4976_v62, %v676_v19  ;;  %v717_v41 = vmul.f32 %v4978_v50, %v698_v46  ;;  %v645_v28 = vadd.f32 %v643_v40, %v599_v5  ;;  %v744_v1 = vsel %vm743_vm13, %v3364_v12, %v3381_v6  ;;  %v3896_v10 = vpop.permute.xlu1 %1027 }
 0x14f   :  { %v747_v63 = vsel %vm743_vm13, %v3381_v6, %v3364_v12  ;;  %v721_v24 = vadd.f32 %v719_v49, %v716_v22  ;;  %v799_v19 = vsel %vm789_vm14, %v3497_v25, %v3516_v55  ;;  %v802_v0 = vsel %vm789_vm14, %v3516_v55, %v3497_v25  ;;  %v3912_v55 = vpop.permute.xlu0 %1024  ;;  %1781 = vrot.lane.b32.xlu0 %v2868_v34, %s2791_s6 }
 0x150   :  { %v722_v39 = vadd.f32 %v720_v3, %v717_v41  ;;  %v690_v26 = vadd.f32 %v688_v33, %v644_v61  ;;  %v691_v12 = vadd.f32 %v689_v56, %v645_v28  ;;  %v4979_v6 = vstv %s3212_s30  ;;  %s2793_s30 = smov 97  }
 0x151   :  { %v765_v40 = vmul.f32 %v4979_v6, %v756_v4  ;;  %v4980_v46 = vmov %v4979_v6  ;;  %v4981_v49 = vstv %s3202_s29  ;;  %v790_v57 = vsel %vm789_vm14, %v3453_v42, %v3476_v44  ;;  %1793 = vrot.lane.b32.xlu1 %v2872_v35, %s2791_s6  ;;  %s2792_s29 = smov 98  }
 0x152   :  { %v766_v60 = vmul.f32 %v4980_v46, %v753_v51  ;;  %v762_v3 = vmul.f32 %v4981_v49, %v747_v63  ;;  %v4982_v23 = vmov %v4981_v49  ;;  %v793_v25 = vsel %vm789_vm14, %v3476_v44, %v3453_v42  ;;  %v4985_v44 = vld [vmem:[#allocation41_spill] sm:$0xff] }
 0x153   :  { %v763_v5 = vmul.f32 %v4982_v23, %v744_v1  ;;  %v4983_v43 = vstv %s3236_s25  ;;  %v845_v47 = vsel %vm835_vm15, %v3585_v59, %v3606_v36  ;;  %v848_v42 = vsel %vm835_vm15, %v3606_v36, %v3585_v59  ;;  %v3940_v59 = vpop.permute.xlu1 %1063  ;;  %1791 = vrot.lane.b32.xlu0 %v2863_v31, %s2791_s6  ;;  %s4213_s25 = sld [smem:[#allocation3 + $0x1a]]  ;;  %s2803_s6 = smov 78  }
 0x154   :  { %v811_v33 = vmul.f32 %v4983_v43, %v802_v0  ;;  %v4984_v62 = vmov %v4983_v43  ;;  %v4986_v22 = vrot.slane %v4985_v44, %v3087_v14  ;;  %v4987_v41 = vrot.slane %v4985_v44, %v3090_v15 }
 0x155   :  { %v812_v56 = vmul.f32 %v4984_v62, %v799_v19  ;;  %v836_v4 = vsel %vm835_vm15, %v3544_v18, %v3559_v17  ;;  %v839_v61 = vsel %vm835_vm15, %v3559_v17, %v3544_v18  ;;  %v767_v36 = vadd.f32 %v765_v40, %v762_v3  ;;  %v3956_v40 = vpop.permute.xlu0 %1060  ;;  %1829 = vrot.lane.b32.xlu1 %v2877_v37, %s2792_s29 }
 0x156   :  { %v734_v50 = vmul.f32 %v4986_v22, %v721_v24  ;;  %v735_v51 = vmul.f32 %v4987_v41, %v722_v39  ;;  %v768_v28 = vadd.f32 %v766_v60, %v763_v5  ;;  %v4988_v1 = vstv %s3226_s4  ;;  %s4994_s4 = sld [smem:[#allocation43_spill]]  ;;  %v4999_v41 = vld [vmem:[#allocation15_spill] sm:$0xff] }
 0x157   :  { %v808_v63 = vmul.f32 %v4988_v1, %v793_v25  ;;  %v4989_v24 = vmov %v4988_v1  ;;  %v4990_v19 = vstv %s3261_s20  ;;  %v891_v18 = vsel %vm881_vm0, %v3655_v2, %v3670_v20  ;;  %1827 = vrot.lane.b32.xlu0 %v2868_v34, %s2792_s29  ;;  %s2794_s20 = smov 96  }
 0x158   :  { %v809_v39 = vmul.f32 %v4989_v24, %v790_v57  ;;  %v857_v0 = vmul.f32 %v4990_v19, %v848_v42  ;;  %v4991_v6 = vmov %v4990_v19  ;;  %v894_v17 = vsel %vm881_vm0, %v3670_v20, %v3655_v2 }
 0x159   :  { %v858_v46 = vmul.f32 %v4991_v6, %v845_v47  ;;  %v813_v60 = vadd.f32 %v811_v33, %v808_v63  ;;  %v4992_v3 = vstv %s3250_s23  ;;  %v882_v25 = vsel %vm881_vm0, %v3615_v16, %v3630_v13  ;;  %v3978_v33 = vpop.permute.xlu1 %1073  ;;  %1839 = vrot.lane.b32.xlu1 %v2872_v35, %s2792_s29  ;;  %s4152_s23 = sld [smem:[#allocation3 + $0x19]] }
 0x15a   :  { %v814_v49 = vadd.f32 %v812_v56, %v809_v39  ;;  %v854_v23 = vmul.f32 %v4992_v3, %v839_v61  ;;  %v4993_v5 = vmov %v4992_v3  ;;  %v885_v2 = vsel %vm881_vm0, %v3630_v13, %v3615_v16 }
 0x15b   :  { %v855_v57 = vmul.f32 %v4993_v5, %v836_v4  ;;  %v937_v20 = vsel %vm927_vm1, %v3740_v29, %v3758_v45  ;;  %v940_v43 = vsel %vm927_vm1, %v3758_v45, %v3740_v29  ;;  %v4995_v62 = vrot.slane %v3284_v30, %v3087_v14  ;;  %1837 = vrot.lane.b32.xlu0 %v2863_v31, %s2792_s29  ;;  %s4347_s29 = sld [smem:[#allocation3 + $0x53]] }
 0x15c   :  { %v4996_v13 = vrot.slane %v3284_v30, %v3090_v15  ;;  %v4997_v47 = vstv %s3301_s21  ;;  %vm1019_vm3 = vcmask 113664   ;;  %v859_v45 = vadd.f32 %v857_v0, %v854_v23  ;;  %s4174_s21 = sld [smem:[#allocation3 + $0x4a]] }
 0x15d   :  { %v780_v16 = vmul.f32 %v4995_v62, %v767_v36  ;;  %v903_v42 = vmul.f32 %v4997_v47, %v894_v17  ;;  %v4998_v44 = vmov %v4997_v47  ;;  %v860_v22 = vadd.f32 %v858_v46, %v855_v57  ;;  %v1071_v36 = vpop.permute.xlu0 %1070  ;;  %v4012_v5 = vpop.permute.xlu1 %1109  ;;  %1875 = vrot.lane.b32.xlu1 %v2877_v37, %s2793_s30 }
 0x15e   :  { %v781_v56 = vmul.f32 %v4996_v13, %v768_v28  ;;  %v904_v29 = vmul.f32 %v4998_v44, %v891_v18  ;;  %v928_v4 = vsel %vm927_vm1, %v4999_v41, %v3716_v27  ;;  %v931_v61 = vsel %vm927_vm1, %v3716_v27, %v4999_v41  ;;  %v5004_v18 = vld [vmem:[#allocation45_spill] sm:$0xff] }
 0x15f   :  { %v5000_v30 = vstv %s4994_s4  ;;  %v5002_v24 = vstv %s3324_s22  ;;  %v736_v6 = vadd.f32 %v734_v50, %v690_v26  ;;  %v737_v46 = vadd.f32 %v735_v51, %v691_v12  ;;  %v5009_v51 = vld [vmem:[#allocation46_spill] sm:$0xff]  ;;  %1873 = vrot.lane.b32.xlu0 %v2868_v34, %s2793_s30  ;;  %s2795_s22 = smov 95   ;;  %s4343_s4 = sld [smem:[#allocation3 + $0x22]] }
 0x160   :  { %v900_v28 = vmul.f32 %v5000_v30, %v885_v2  ;;  %v5001_v1 = vmov %v5000_v30  ;;  %v949_v39 = vmul.f32 %v5002_v24, %v940_v43  ;;  %v5003_v19 = vmov %v5002_v24 }
 0x161   :  { %v901_v63 = vmul.f32 %v5001_v1, %v882_v25  ;;  %v950_v0 = vmul.f32 %v5003_v19, %v937_v20  ;;  %v5005_v17 = vrot.slane %v5004_v18, %v3087_v14  ;;  %v5006_v3 = vrot.slane %v5004_v18, %v3090_v15  ;;  %v4024_v47 = vpop.permute.xlu0 %1106  ;;  %1885 = vrot.lane.b32.xlu1 %v2872_v35, %s2793_s30 }
 0x162   :  { %vm1065_vm4 = vcmask 105472   ;;  %v905_v57 = vadd.f32 %v903_v42, %v900_v28  ;;  %v5007_v2 = vstv %s3312_s28  ;;  %v782_v12 = vadd.f32 %v780_v16, %v736_v6  ;;  %s4218_s28 = sld [smem:[#allocation3 + $0x4b]] }
 0x163   :  { %v826_v27 = vmul.f32 %v5005_v17, %v813_v60  ;;  %v827_v23 = vmul.f32 %v5006_v3, %v814_v49  ;;  %v906_v25 = vadd.f32 %v904_v29, %v901_v63  ;;  %v946_v43 = vmul.f32 %v5007_v2, %v931_v61  ;;  %v5012_v61 = vld [vmem:[#allocation47_spill] sm:$0xff]  ;;  %v5017_v17 = vld [vmem:[#allocation48_spill] sm:$0xff]  ;;  %1883 = vrot.lane.b32.xlu0 %v2863_v31, %s2793_s30  ;;  %s2804_s30 = smov 77  }
 0x164   :  { %v5008_v20 = vmov %v5007_v2  ;;  %v783_v50 = vadd.f32 %v781_v56, %v737_v46  ;;  %v5010_v60 = vrot.slane %v5009_v51, %v3087_v14  ;;  %v5011_v49 = vrot.slane %v5009_v51, %v3090_v15 }
 0x165   :  { %v947_v26 = vmul.f32 %v5008_v20, %v928_v4  ;;  %v951_v42 = vadd.f32 %v949_v39, %v946_v43  ;;  %v983_v16 = vsel %vm973_vm2, %v3821_v7, %v3829_v58  ;;  %v986_v56 = vsel %vm973_vm2, %v3829_v58, %v3821_v7  ;;  %v1117_v18 = vpop.permute.xlu0 %1116  ;;  %1921 = vrot.lane.b32.xlu1 %v2877_v37, %s2794_s20 }
 0x166   :  { %v872_v62 = vmul.f32 %v5010_v60, %v859_v45  ;;  %v873_v13 = vmul.f32 %v5011_v49, %v860_v22  ;;  %vm1111_vm5 = vcmask 23552   ;;  %v828_v29 = vadd.f32 %v826_v27, %v782_v12  ;;  %v1120_v22 = vpop.permute.xlu1 %1119 }
 0x167   :  { %v952_v44 = vadd.f32 %v950_v0, %v947_v26  ;;  %v829_v45 = vadd.f32 %v827_v23, %v783_v50  ;;  %v1237_v41 = vrot.slane %v3809_v9, %v3090_v15  ;;  %v1294_v4 = vcombine.low %v3857_v11, %v3860_v32  ;;  %1919 = vrot.lane.b32.xlu0 %v2868_v34, %s2794_s20 }
 0x168   :  { %v5013_v30 = vrot.slane %v5012_v61, %v3087_v14  ;;  %v5014_v1 = vrot.slane %v5012_v61, %v3090_v15  ;;  %v974_v58 = vsel %vm973_vm2, %v3782_v8, %v3798_v21  ;;  %v977_v63 = vsel %vm973_vm2, %v3798_v21, %v3782_v8 }
 0x169   :  { %v5015_v24 = vstv %s3373_s5  ;;  %v1029_v6 = vsel %vm1019_vm3, %v3896_v10, %v3912_v55  ;;  %v1032_v46 = vsel %vm1019_vm3, %v3912_v55, %v3896_v10  ;;  %vm1157_vm6 = vcmask 15360   ;;  %1931 = vrot.lane.b32.xlu1 %v2872_v35, %s2794_s20  ;;  %s4231_s5 = sld [smem:[#allocation3 + $0x1b]] }
 0x16a   :  { %v918_v28 = vmul.f32 %v5013_v30, %v905_v57  ;;  %v919_v7 = vmul.f32 %v5014_v1, %v906_v25  ;;  %v995_v39 = vmul.f32 %v5015_v24, %v986_v56  ;;  %v5016_v19 = vmov %v5015_v24  ;;  %v1156_v26 = vpop.permute.xlu1 %1155 }
 0x16b   :  { %v996_v0 = vmul.f32 %v5016_v19, %v983_v16  ;;  %v874_v8 = vadd.f32 %v872_v62, %v828_v29  ;;  %v875_v21 = vadd.f32 %v873_v13, %v829_v45  ;;  %v5018_v27 = vrot.slane %v5017_v17, %v3087_v14  ;;  %1929 = vrot.lane.b32.xlu0 %v2863_v31, %s2794_s20  ;;  %s4359_s20 = sld [smem:[#allocation3 + $0x23]] }
 0x16c   :  { %v5019_v23 = vrot.slane %v5017_v17, %v3090_v15  ;;  %v5020_v25 = vstv %s3351_s26  ;;  %v1020_v43 = vsel %vm1019_vm3, %v3854_v38, %v3878_v54  ;;  %v1023_v20 = vsel %vm1019_vm3, %v3878_v54, %v3854_v38  ;;  %v1153_v54 = vpop.permute.xlu0 %1152  ;;  %s2796_s26 = smov 94  }
 0x16d   :  { %v964_v3 = vmul.f32 %v5018_v27, %v951_v42  ;;  %v992_v2 = vmul.f32 %v5020_v25, %v977_v63  ;;  %v5021_v10 = vmov %v5020_v25  ;;  %v5022_v12 = vstv %s3463_s1  ;;  %v5032_v25 = vld [vmem:[#allocation49_spill] sm:$0xff]  ;;  %1967 = vrot.lane.b32.xlu1 %v2877_v37, %s2795_s22  ;;  %s2797_s1 = smov 93  }
 0x16e   :  { %v965_v57 = vmul.f32 %v5019_v23, %v952_v44  ;;  %v993_v55 = vmul.f32 %v5021_v10, %v974_v58  ;;  %v1041_v50 = vmul.f32 %v5022_v12, %v1032_v46  ;;  %v5023_v51 = vmov %v5022_v12  ;;  %v1166_v63 = vpop.permute.xlu1 %1165 }
 0x16f   :  { %v1042_v60 = vmul.f32 %v5023_v51, %v1029_v6  ;;  %v1075_v62 = vsel %vm1065_vm4, %v3978_v33, %v1071_v36  ;;  %v1078_v49 = vsel %vm1065_vm4, %v1071_v36, %v3978_v33  ;;  %v920_v13 = vadd.f32 %v918_v28, %v874_v8  ;;  %1965 = vrot.lane.b32.xlu0 %v2868_v34, %s2795_s22 }
 0x170   :  { %v921_v42 = vadd.f32 %v919_v7, %v875_v21  ;;  %v997_v44 = vadd.f32 %v995_v39, %v992_v2  ;;  %v998_v38 = vadd.f32 %v996_v0, %v993_v55  ;;  %vm1203_vm7 = vcmask 7168  }
 0x171   :  { %v5024_v16 = vstv %s3435_s27  ;;  %v1066_v61 = vsel %vm1065_vm4, %v3940_v59, %v3956_v40  ;;  %v1069_v33 = vsel %vm1065_vm4, %v3956_v40, %v3940_v59  ;;  %v5026_v36 = vstv %s3501_s8  ;;  %1977 = vrot.lane.b32.xlu1 %v2872_v35, %s2795_s22  ;;  %s4235_s27 = sld [smem:[#allocation3 + $0x4c]] }
 0x172   :  { %v1038_v56 = vmul.f32 %v5024_v16, %v1023_v20  ;;  %v5025_v29 = vmov %v5024_v16  ;;  %v1087_v30 = vmul.f32 %v5026_v36, %v1078_v49  ;;  %v5027_v28 = vmov %v5026_v36  ;;  %v1202_v20 = vpop.permute.xlu1 %1201  ;;  %s4251_s8 = sld [smem:[#allocation3 + $0x4d]] }
 0x173   :  { %v1039_v45 = vmul.f32 %v5025_v29, %v1020_v43  ;;  %v1088_v1 = vmul.f32 %v5027_v28, %v1075_v62  ;;  %v1121_v7 = vsel %vm1111_vm5, %v1120_v22, %v1117_v18  ;;  %v1124_v58 = vsel %vm1111_vm5, %v1117_v18, %v1120_v22  ;;  %v1163_v18 = vpop.permute.xlu0 %1162  ;;  %1975 = vrot.lane.b32.xlu0 %v2863_v31, %s2795_s22  ;;  %s4375_s22 = sld [smem:[#allocation3 + $0x55]] }
 0x174   :  { %v966_v24 = vadd.f32 %v964_v3, %v920_v13  ;;  %v967_v39 = vadd.f32 %v965_v57, %v921_v42  ;;  %v1043_v19 = vadd.f32 %v1041_v50, %v1038_v56  ;;  %v5028_v6 = vstv %s3480_s3  ;;  %v5037_v13 = vld [vmem:[#allocation50_spill] sm:$0xff]  ;;  %s4247_s3 = sld [smem:[#allocation3 + $0x1c]] }
 0x175   :  { %v1044_v0 = vadd.f32 %v1042_v60, %v1039_v45  ;;  %v1084_v59 = vmul.f32 %v5028_v6, %v1069_v33  ;;  %v5029_v40 = vmov %v5028_v6  ;;  %v1112_v8 = vsel %vm1111_vm5, %v4012_v5, %v4024_v47  ;;  %2013 = vrot.lane.b32.xlu1 %v2877_v37, %s2796_s26 }
 0x176   :  { %v1085_v46 = vmul.f32 %v5029_v40, %v1066_v61  ;;  %v1115_v22 = vsel %vm1111_vm5, %v4024_v47, %v4012_v5  ;;  %v5030_v21 = vstv %s3525_s9  ;;  %v1167_v23 = vsel %vm1157_vm6, %v1166_v63, %v1163_v18  ;;  %s4263_s9 = sld [smem:[#allocation3 + $0x1d]] }
 0x177   :  { %v1133_v17 = vmul.f32 %v5030_v21, %v1124_v58  ;;  %v5031_v27 = vmov %v5030_v21  ;;  %v1170_v57 = vsel %vm1157_vm6, %v1163_v18, %v1166_v63  ;;  %v5033_v2 = vrot.slane %v5032_v25, %v3087_v14  ;;  %v1199_v33 = vpop.permute.xlu0 %1198  ;;  %v5047_v18 = vld [vmem:[#allocation52_spill] sm:$0xff]  ;;  %2011 = vrot.lane.b32.xlu0 %v2868_v34, %s2796_s26 }
 0x178   :  { %v1134_v3 = vmul.f32 %v5031_v27, %v1121_v7  ;;  %v5034_v5 = vrot.slane %v5032_v25, %v3090_v15  ;;  %v1089_v55 = vadd.f32 %v1087_v30, %v1084_v59  ;;  %v1090_v43 = vadd.f32 %v1088_v1, %v1085_v46 }
 0x179   :  { %v1010_v10 = vmul.f32 %v5033_v2, %v997_v44  ;;  %v5035_v12 = vstv %s3512_s10  ;;  %v1158_v62 = vsel %vm1157_vm6, %v1156_v26, %v1153_v54  ;;  %v1161_v49 = vsel %vm1157_vm6, %v1153_v54, %v1156_v26  ;;  %2023 = vrot.lane.b32.xlu1 %v2872_v35, %s2796_s26  ;;  %s2798_s10 = smov 83  }
 0x17a   :  { %v1011_v47 = vmul.f32 %v5034_v5, %v998_v38  ;;  %v1130_v50 = vmul.f32 %v5035_v12, %v1115_v22  ;;  %v5036_v51 = vmov %v5035_v12  ;;  %v5038_v42 = vrot.slane %v5037_v13, %v3087_v14 }
 0x17b   :  { %v1131_v60 = vmul.f32 %v5036_v51, %v1112_v8  ;;  %v5039_v38 = vrot.slane %v5037_v13, %v3090_v15  ;;  %v5040_v56 = vstv %s3568_s16  ;;  %vm1325_vm8 = vcmask 1039360   ;;  %v1209_v22 = vpop.permute.xlu0 %1208  ;;  %v5052_v51 = vld [vmem:[#allocation53_spill] sm:$0xff]  ;;  %2021 = vrot.lane.b32.xlu0 %v2863_v31, %s2796_s26  ;;  %s2799_s16 = smov 82   ;;  %s4395_s26 = sld [smem:[#allocation3 + $0x26]] }
 0x17c   :  { %v1056_v44 = vmul.f32 %v5038_v42, %v1043_v19  ;;  %v1179_v29 = vmul.f32 %v5040_v56, %v1170_v57  ;;  %v5041_v45 = vmov %v5040_v56  ;;  %v1135_v36 = vadd.f32 %v1133_v17, %v1130_v50  ;;  %v1212_v19 = vpop.permute.xlu1 %1211 }
 0x17d   :  { %v1057_v16 = vmul.f32 %v5039_v38, %v1044_v0  ;;  %v1180_v61 = vmul.f32 %v5041_v45, %v1167_v23  ;;  %v1136_v30 = vadd.f32 %v1134_v3, %v1131_v60  ;;  %v4158_v26 = vrot.slane %v1294_v4, %v4918_v53  ;;  %v5044_v0 = vld [vmem:[#allocation51_spill] sm:$0xff]  ;;  %2059 = vrot.lane.b32.xlu1 %v2877_v37, %s2797_s1 }
 0x17e   :  { %v1012_v54 = vadd.f32 %v1010_v10, %v966_v24  ;;  %v1013_v28 = vadd.f32 %v1011_v47, %v967_v39  ;;  %v5042_v1 = vstv %s3529_s12  ;;  %v5045_v6 = vrot.slane %v5044_v0, %v3087_v14  ;;  %v1343_v38 = vld [vmem:[#allocation7 + $0x31] ss:$8 sm:$0x3]  ;;  %s4267_s12 = sld [smem:[#allocation3 + $0x4e]] }
 0x17f   :  { %v1176_v7 = vmul.f32 %v5042_v1, %v1161_v49  ;;  %v5043_v58 = vmov %v5042_v1  ;;  %v5046_v40 = vrot.slane %v5044_v0, %v3090_v15  ;;  %v1204_v32 = vsel %vm1203_vm7, %v1202_v20, %v1199_v33  ;;  %2057 = vrot.lane.b32.xlu0 %v2868_v34, %s2797_s1 }
 0x180   :  { %v1177_v63 = vmul.f32 %v5043_v58, %v1158_v62  ;;  %v1102_v59 = vmul.f32 %v5045_v6, %v1089_v55  ;;  %v1207_v4 = vsel %vm1203_vm7, %v1199_v33, %v1202_v20  ;;  %v1058_v24 = vadd.f32 %v1056_v44, %v1012_v54 }
 0x181   :  { %v1103_v11 = vmul.f32 %v5046_v40, %v1090_v43  ;;  %v1059_v39 = vadd.f32 %v1057_v16, %v1013_v28  ;;  %v1181_v46 = vadd.f32 %v1179_v29, %v1176_v7  ;;  %v5048_v21 = vrot.slane %v5047_v18, %v3087_v14  ;;  %v1324_v43 = vpop.permute.xlu1 %1323  ;;  %2069 = vrot.lane.b32.xlu1 %v2872_v35, %s2797_s1 }
 0x182   :  { %v1182_v8 = vadd.f32 %v1180_v61, %v1177_v63  ;;  %v5049_v27 = vrot.slane %v5047_v18, %v3090_v15  ;;  %v1213_v23 = vsel %vm1203_vm7, %v1212_v19, %v1209_v22  ;;  %v1216_v57 = vsel %vm1203_vm7, %v1209_v22, %v1212_v19  ;;  %v1389_v22 = vld [vmem:[#allocation7 + $0x32] ss:$8 sm:$0x3] }
 0x183   :  { %v1148_v17 = vmul.f32 %v5048_v21, %v1135_v36  ;;  %v5050_v25 = vstv %s3599_s14  ;;  %v1225_v47 = vmul.f32 %v1224_v48, %v1216_v57  ;;  %v1226_v55 = vmul.f32 %v1224_v48, %v1213_v23  ;;  %v1322_v48 = vpop.permute.xlu0 %1321  ;;  %2067 = vrot.lane.b32.xlu0 %v2863_v31, %s2797_s1  ;;  %s4279_s14 = sld [smem:[#allocation3 + $0x1e]] }
 0x184   :  { %v1149_v3 = vmul.f32 %v5049_v27, %v1136_v30  ;;  %v1222_v2 = vmul.f32 %v5050_v25, %v1207_v4  ;;  %v5051_v10 = vmov %v5050_v25  ;;  %v1104_v20 = vadd.f32 %v1102_v59, %v1058_v24  ;;  %s4437_s1 = sld [smem:[#allocation3 + $0x58]] }
 0x185   :  { %v1223_v5 = vmul.f32 %v5051_v10, %v1204_v32  ;;  %v1105_v12 = vadd.f32 %v1103_v11, %v1059_v39  ;;  %v1302_v50 = vcombine.high %v4158_v26, %v4158_v26  ;;  %v5053_v60 = vrot.slane %v5052_v51, %v3087_v14  ;;  %v1334_v30 = vpop.permute.xlu1 %1333  ;;  %2105 = vrot.lane.b32.xlu1 %v2877_v37, %s2798_s10 }
 0x186   :  { %v5054_v49 = vrot.slane %v5052_v51, %v3090_v15  ;;  %v1227_v42 = vadd.f32 %v1225_v47, %v1222_v2  ;;  %v1344_v16 = vstv %s4152_s23  ;;  %v1326_v56 = vsel %vm1325_vm8, %v1322_v48, %v1324_v43  ;;  %s4363_s23 = sld [smem:[#allocation3 + $0x54]] }
 0x187   :  { %v1194_v62 = vmul.f32 %v5053_v60, %v1181_v46  ;;  %v1228_v44 = vadd.f32 %v1226_v55, %v1223_v5  ;;  %v1330_v29 = vsel %vm1325_vm8, %v1324_v43, %v1322_v48  ;;  %v1150_v45 = vadd.f32 %v1148_v17, %v1104_v20  ;;  %v1435_v48 = vld [vmem:[#allocation7 + $0x33] ss:$8 sm:$0x3]  ;;  %2103 = vrot.lane.b32.xlu0 %v2868_v34, %s2798_s10 }
 0x188   :  { %v1195_v13 = vmul.f32 %v5054_v49, %v1182_v8  ;;  %v1151_v61 = vadd.f32 %v1149_v3, %v1105_v12  ;;  %v1240_v33 = vmul.f32 %v1233_v52, %v1227_v42  ;;  %v1347_v54 = vstv %s4174_s21  ;;  %s4371_s21 = sld [smem:[#allocation3 + $0x24]] }
 0x189   :  { %v1241_v36 = vmul.f32 %v1237_v41, %v1228_v44  ;;  %v1356_v28 = vrot.slane %v1343_v38, %v3087_v14  ;;  %v1360_v1 = vrot.slane %v1343_v38, %v3090_v15  ;;  %vm1371_vm9 = vcmask 1031168   ;;  %v1332_v41 = vpop.permute.xlu0 %1331  ;;  %2115 = vrot.lane.b32.xlu1 %v2872_v35, %s2798_s10 }
 0x18a   :  { %v1196_v7 = vadd.f32 %v1194_v62, %v1150_v45  ;;  %v1197_v58 = vadd.f32 %v1195_v13, %v1151_v61  ;;  %v1309_v52 = vrot.slane %v4158_v26, %v4918_v53  ;;  %v1316_v9 = vrot.slane %v1302_v50, %v4918_v53  ;;  %v1370_v26 = vpop.permute.xlu1 %1369 }
 0x18b   :  { %v1345_v63 = vmul.f32 %v1344_v16, %v1326_v56  ;;  %v1346_v19 = vmul.f32 %v1344_v16, %v1330_v29  ;;  %v1335_v0 = vsel %vm1325_vm8, %v1332_v41, %v1334_v30  ;;  %v1339_v6 = vsel %vm1325_vm8, %v1334_v30, %v1332_v41  ;;  %2113 = vrot.lane.b32.xlu0 %v2863_v31, %s2798_s10  ;;  %s4447_s10 = sld [smem:[#allocation3 + $0x29]] }
 0x18c   :  { %v1242_v59 = vadd.f32 %v1240_v33, %v1196_v7  ;;  %v1243_v40 = vadd.f32 %v1241_v36, %v1197_v58  ;;  %v1348_v11 = vmul.f32 %v1347_v54, %v1335_v0  ;;  %v1349_v32 = vmul.f32 %v1347_v54, %v1339_v6 }
 0x18d   :  { %v1368_v39 = vpop.permute.xlu0 %1367  ;;  %v1390_v23 = vstv %s4213_s25  ;;  %v1393_v57 = vstv %s4218_s28  ;;  %v1402_v10 = vrot.slane %v1389_v22, %v3087_v14  ;;  %v1406_v47 = vrot.slane %v1389_v22, %v3090_v15  ;;  %2151 = vrot.lane.b32.xlu1 %v2877_v37, %s2799_s16  ;;  %s4383_s25 = sld [smem:[#allocation3 + $0x25]] }
 0x18e   :  { %v1350_v4 = vadd.f32 %v1348_v11, %v1345_v63  ;;  %v1351_v24 = vadd.f32 %v1349_v32, %v1346_v19  ;;  %v1372_v46 = vsel %vm1371_vm9, %v1368_v39, %v1370_v26  ;;  %v1376_v8 = vsel %vm1371_vm9, %v1370_v26, %v1368_v39  ;;  %v1380_v3 = vpop.permute.xlu1 %1379  ;;  %s4387_s28 = sld [smem:[#allocation3 + $0x56]] }
 0x18f   :  { %v1319_v18 = vadd.f32 %v1309_v52, %v1242_v59  ;;  %v1320_v21 = vadd.f32 %v1316_v9, %v1243_v40  ;;  %vm1417_vm10 = vcmask 1022976   ;;  %v1391_v20 = vmul.f32 %v1390_v23, %v1372_v46  ;;  %v1481_v40 = vld [vmem:[#allocation7 + $0x34] ss:$8 sm:$0x3]  ;;  %2149 = vrot.lane.b32.xlu0 %v2868_v34, %s2799_s16 }
 0x190   :  { %v1363_v17 = vmul.f32 %v1356_v28, %v1350_v4  ;;  %v1364_v27 = vmul.f32 %v1360_v1, %v1351_v24  ;;  %v1392_v12 = vmul.f32 %v1390_v23, %v1376_v8  ;;  %v1436_v29 = vstv %s4231_s5  ;;  %s4399_s5 = sld [smem:[#allocation3 + $0x57]] }
 0x191   :  { %v1378_v5 = vpop.permute.xlu0 %1377  ;;  %v1439_v45 = vstv %s4235_s27  ;;  %v1448_v36 = vrot.slane %v1435_v48, %v3087_v14  ;;  %v1452_v54 = vrot.slane %v1435_v48, %v3090_v15  ;;  %vm1463_vm11 = vcmask 941056   ;;  %2161 = vrot.lane.b32.xlu1 %v2872_v35, %s2799_s16  ;;  %s4435_s27 = sld [smem:[#allocation3 + $0x27]] }
 0x192   :  { %v1365_v25 = vadd.f32 %v1363_v17, %v1319_v18  ;;  %v1366_v2 = vadd.f32 %v1364_v27, %v1320_v21  ;;  %v1381_v55 = vsel %vm1371_vm9, %v1378_v5, %v1380_v3  ;;  %v1385_v43 = vsel %vm1371_vm9, %v1380_v3, %v1378_v5  ;;  %v1416_v60 = vpop.permute.xlu1 %1415 }
 0x193   :  { %v1394_v50 = vmul.f32 %v1393_v57, %v1381_v55  ;;  %v1395_v51 = vmul.f32 %v1393_v57, %v1385_v43  ;;  %v1482_v4 = vstv %s4247_s3  ;;  %v1485_v24 = vstv %s4251_s8  ;;  %v1527_v43 = vld [vmem:[#allocation7 + $0x35] ss:$8 sm:$0x3]  ;;  %2159 = vrot.lane.b32.xlu0 %v2863_v31, %s2799_s16  ;;  %s4441_s3 = sld [smem:[#allocation3 + $0x28]] }
 0x194   :  { %v1494_v8 = vrot.slane %v1481_v40, %v3087_v14  ;;  %v1498_v18 = vrot.slane %v1481_v40, %v3090_v15  ;;  %vm1509_vm12 = vcmask 932864   ;;  %vm1555_vm13 = vcmask 924672   ;;  %s4443_s8 = sld [smem:[#allocation3 + $0x59]] }
 0x195   :  { %v1396_v62 = vadd.f32 %v1394_v50, %v1391_v20  ;;  %v1397_v49 = vadd.f32 %v1395_v51, %v1392_v12  ;;  %v1414_v13 = vpop.permute.xlu0 %1413  ;;  %v1528_v51 = vstv %s4263_s9  ;;  %2197 = vrot.lane.b32.xlu1 %v2877_v37, %s2800_s15  ;;  %vm1601_vm14 = vcmask 916480   ;;  %s4449_s9 = sld [smem:[#allocation3 + $0x5a]] }
 0x196   :  { %v1418_v42 = vsel %vm1417_vm10, %v1414_v13, %v1416_v60  ;;  %v1422_v44 = vsel %vm1417_vm10, %v1416_v60, %v1414_v13  ;;  %v1426_v56 = vpop.permute.xlu1 %1425  ;;  %v1531_v60 = vstv %s4267_s12  ;;  %v1540_v13 = vrot.slane %v1527_v43, %v3087_v14  ;;  %s4453_s12 = sld [smem:[#allocation3 + $0x2a]] }
 0x197   :  { %v1409_v38 = vmul.f32 %v1402_v10, %v1396_v62  ;;  %v1410_v16 = vmul.f32 %v1406_v47, %v1397_v49  ;;  %v1437_v7 = vmul.f32 %v1436_v29, %v1418_v42  ;;  %v1438_v58 = vmul.f32 %v1436_v29, %v1422_v44  ;;  %2195 = vrot.lane.b32.xlu0 %v2868_v34, %s2800_s15  ;;  %s4455_s16 = sld [smem:[#allocation3 + $0x5b]] }
 0x198   :  { %v1544_v44 = vrot.slane %v1527_v43, %v3090_v15  ;;  %vm1647_vm15 = vcmask 908288   ;;  %vm1693_vm0 = vcmask 900096   ;;  %vm1739_vm1 = vcmask 891904  }
 0x199   :  { %v1411_v61 = vadd.f32 %v1409_v38, %v1365_v25  ;;  %v1412_v33 = vadd.f32 %v1410_v16, %v1366_v2  ;;  %v1424_v30 = vpop.permute.xlu0 %1423  ;;  %2207 = vrot.lane.b32.xlu1 %v2872_v35, %s2800_s15  ;;  %vm1785_vm2 = vcmask 809984   ;;  %vm1831_vm3 = vcmask 801792  }
 0x19a   :  { %v1427_v28 = vsel %vm1417_vm10, %v1424_v30, %v1426_v56  ;;  %v1431_v1 = vsel %vm1417_vm10, %v1426_v56, %v1424_v30  ;;  %v1462_v41 = vpop.permute.xlu1 %1461  ;;  %vm1877_vm4 = vcmask 793600   ;;  %vm1923_vm5 = vcmask 785408  }
 0x19b   :  { %v1440_v52 = vmul.f32 %v1439_v45, %v1427_v28  ;;  %v1441_v9 = vmul.f32 %v1439_v45, %v1431_v1  ;;  %v1573_v1 = vld [vmem:[#allocation7 + $0x36] ss:$8 sm:$0x3]  ;;  %2205 = vrot.lane.b32.xlu0 %v2863_v31, %s2800_s15  ;;  %vm1969_vm6 = vcmask 777216   ;;  %s4479_s15 = sld [smem:[#allocation3 + $0x2c]]  ;;  %vm2015_vm7 = vcmask 769024  }
 0x19c   :  { %vm2061_vm8 = vcmask 760832   ;;  %vm2107_vm9 = vcmask 678912   ;;  %vm2153_vm10 = vcmask 670720  }
 0x19d   :  { %v1442_v63 = vadd.f32 %v1440_v52, %v1437_v7  ;;  %v1443_v19 = vadd.f32 %v1441_v9, %v1438_v58  ;;  %v1460_v0 = vpop.permute.xlu0 %1459  ;;  %v1574_v9 = vstv %s4279_s14  ;;  %2243 = vrot.lane.b32.xlu1 %v2877_v37, %s2801_s19  ;;  %s4461_s14 = sld [smem:[#allocation3 + $0x2b]] }
 0x19e   :  { %v1464_v6 = vsel %vm1463_vm11, %v1460_v0, %v1462_v41  ;;  %v1468_v59 = vsel %vm1463_vm11, %v1462_v41, %v1460_v0  ;;  %v1472_v26 = vpop.permute.xlu1 %1471  ;;  %v1577_v41 = vstv %s4283_s13  ;;  %v1586_v0 = vrot.slane %v1573_v1, %v3087_v14  ;;  %s4467_s13 = sld [smem:[#allocation3 + $0x5c]] }
 0x19f   :  { %v1455_v11 = vmul.f32 %v1448_v36, %v1442_v63  ;;  %v1456_v32 = vmul.f32 %v1452_v54, %v1443_v19  ;;  %v1483_v27 = vmul.f32 %v1482_v4, %v1464_v6  ;;  %v1484_v3 = vmul.f32 %v1482_v4, %v1468_v59  ;;  %2241 = vrot.lane.b32.xlu0 %v2868_v34, %s2801_s19 }
 0x1a0   :  { %v1590_v59 = vrot.slane %v1573_v1, %v3090_v15 }
 0x1a1   :  { %v1457_v39 = vadd.f32 %v1455_v11, %v1411_v61  ;;  %v1458_v46 = vadd.f32 %v1456_v32, %v1412_v33  ;;  %v1470_v22 = vpop.permute.xlu0 %1469  ;;  %2253 = vrot.lane.b32.xlu1 %v2872_v35, %s2801_s19 }
 0x1a2   :  { %v1473_v21 = vsel %vm1463_vm11, %v1470_v22, %v1472_v26  ;;  %v1477_v17 = vsel %vm1463_vm11, %v1472_v26, %v1470_v22  ;;  %v1508_v25 = vpop.permute.xlu1 %1507  ;;  %vm2199_vm11 = vcmask 662528  }
 0x1a3   :  { %v1486_v23 = vmul.f32 %v1485_v24, %v1473_v21  ;;  %v1487_v57 = vmul.f32 %v1485_v24, %v1477_v17  ;;  %v1619_v17 = vld [vmem:[#allocation7 + $0x37] ss:$8 sm:$0x3]  ;;  %2251 = vrot.lane.b32.xlu0 %v2863_v31, %s2801_s19  ;;  %s4503_s19 = sld [smem:[#allocation3 + $0x5e]] }
 0x1a5   :  { %v1488_v2 = vadd.f32 %v1486_v23, %v1483_v27  ;;  %v1489_v10 = vadd.f32 %v1487_v57, %v1484_v3  ;;  %v1506_v5 = vpop.permute.xlu0 %1505  ;;  %v1620_v57 = vstv %s4295_s17  ;;  %2289 = vrot.lane.b32.xlu1 %v2877_v37, %s2802_s24  ;;  %s4485_s17 = sld [smem:[#allocation3 + $0x5d]] }
 0x1a6   :  { %v1510_v47 = vsel %vm1509_vm12, %v1506_v5, %v1508_v25  ;;  %v1514_v55 = vsel %vm1509_vm12, %v1508_v25, %v1506_v5  ;;  %v1518_v50 = vpop.permute.xlu1 %1517  ;;  %v1623_v25 = vstv %s4299_s18  ;;  %v1632_v5 = vrot.slane %v1619_v17, %v3087_v14  ;;  %s4493_s18 = sld [smem:[#allocation3 + $0x2d]] }
 0x1a7   :  { %v1501_v20 = vmul.f32 %v1494_v8, %v1488_v2  ;;  %v1502_v12 = vmul.f32 %v1498_v18, %v1489_v10  ;;  %v1529_v16 = vmul.f32 %v1528_v51, %v1510_v47  ;;  %v1530_v56 = vmul.f32 %v1528_v51, %v1514_v55  ;;  %2287 = vrot.lane.b32.xlu0 %v2868_v34, %s2802_s24 }
 0x1a8   :  { %v1636_v55 = vrot.slane %v1619_v17, %v3090_v15 }
 0x1a9   :  { %v1503_v62 = vadd.f32 %v1501_v20, %v1457_v39  ;;  %v1504_v49 = vadd.f32 %v1502_v12, %v1458_v46  ;;  %v1516_v42 = vpop.permute.xlu0 %1515  ;;  %2299 = vrot.lane.b32.xlu1 %v2872_v35, %s2802_s24 }
 0x1aa   :  { %v1519_v48 = vsel %vm1509_vm12, %v1516_v42, %v1518_v50  ;;  %v1523_v38 = vsel %vm1509_vm12, %v1518_v50, %v1516_v42  ;;  %v1554_v61 = vpop.permute.xlu1 %1553  ;;  %vm2245_vm12 = vcmask 654336  }
 0x1ab   :  { %v1532_v29 = vmul.f32 %v1531_v60, %v1519_v48  ;;  %v1533_v45 = vmul.f32 %v1531_v60, %v1523_v38  ;;  %v1665_v38 = vld [vmem:[#allocation7 + $0x40] ss:$8 sm:$0x3]  ;;  %2297 = vrot.lane.b32.xlu0 %v2863_v31, %s2802_s24  ;;  %s4617_s24 = sld [smem:[#allocation3 + $0x2f]] }
 0x1ad   :  { %v1534_v33 = vadd.f32 %v1532_v29, %v1529_v16  ;;  %v1535_v36 = vadd.f32 %v1533_v45, %v1530_v56  ;;  %v1552_v30 = vpop.permute.xlu0 %1551  ;;  %v1666_v45 = vstv %s4311_s0  ;;  %2335 = vrot.lane.b32.xlu1 %v2877_v37, %s2803_s6  ;;  %s4531_s0 = sld [smem:[#allocation3 + $0x2e]] }
 0x1ae   :  { %v1556_v54 = vsel %vm1555_vm13, %v1552_v30, %v1554_v61  ;;  %v1560_v28 = vsel %vm1555_vm13, %v1554_v61, %v1552_v30  ;;  %v1564_v52 = vpop.permute.xlu1 %1563  ;;  %v1669_v61 = vstv %s4315_s7  ;;  %v1678_v30 = vrot.slane %v1665_v38, %v3087_v14  ;;  %s4541_s7 = sld [smem:[#allocation3 + $0x5f]] }
 0x1af   :  { %v1547_v7 = vmul.f32 %v1540_v13, %v1534_v33  ;;  %v1548_v58 = vmul.f32 %v1544_v44, %v1535_v36  ;;  %v1575_v32 = vmul.f32 %v1574_v9, %v1556_v54  ;;  %v1576_v26 = vmul.f32 %v1574_v9, %v1560_v28  ;;  %2333 = vrot.lane.b32.xlu0 %v2868_v34, %s2803_s6 }
 0x1b0   :  { %v1682_v28 = vrot.slane %v1665_v38, %v3090_v15 }
 0x1b1   :  { %v1549_v63 = vadd.f32 %v1547_v7, %v1503_v62  ;;  %v1550_v19 = vadd.f32 %v1548_v58, %v1504_v49  ;;  %v1562_v6 = vpop.permute.xlu0 %1561  ;;  %2345 = vrot.lane.b32.xlu1 %v2872_v35, %s2803_s6 }
 0x1b2   :  { %v1565_v40 = vsel %vm1555_vm13, %v1562_v6, %v1564_v52  ;;  %v1569_v11 = vsel %vm1555_vm13, %v1564_v52, %v1562_v6  ;;  %v1600_v39 = vpop.permute.xlu1 %1599  ;;  %vm2291_vm13 = vcmask 646144  }
 0x1b3   :  { %v1578_v4 = vmul.f32 %v1577_v41, %v1565_v40  ;;  %v1579_v24 = vmul.f32 %v1577_v41, %v1569_v11  ;;  %v1711_v11 = vld [vmem:[#allocation7 + $0x41] ss:$8 sm:$0x3]  ;;  %2343 = vrot.lane.b32.xlu0 %v2863_v31, %s2803_s6  ;;  %s4701_s6 = sld [smem:[#allocation3 + $0x61]] }
 0x1b5   :  { %v1580_v46 = vadd.f32 %v1578_v4, %v1575_v32  ;;  %v1581_v8 = vadd.f32 %v1579_v24, %v1576_v26  ;;  %v1598_v22 = vpop.permute.xlu0 %1597  ;;  %v1712_v24 = vstv %s4327_s2  ;;  %2381 = vrot.lane.b32.xlu1 %v2877_v37, %s2804_s30  ;;  %s4625_s2 = sld [smem:[#allocation3 + $0x60]] }
 0x1b6   :  { %v1602_v18 = vsel %vm1601_vm14, %v1598_v22, %v1600_v39  ;;  %v1606_v21 = vsel %vm1601_vm14, %v1600_v39, %v1598_v22  ;;  %v1610_v23 = vpop.permute.xlu1 %1609  ;;  %v1715_v39 = vstv %s4331_s11  ;;  %v1724_v22 = vrot.slane %v1711_v11, %v3087_v14  ;;  %s4693_s11 = sld [smem:[#allocation3 + $0x30]] }
 0x1b7   :  { %v1593_v27 = vmul.f32 %v1586_v0, %v1580_v46  ;;  %v1594_v3 = vmul.f32 %v1590_v59, %v1581_v8  ;;  %v1621_v12 = vmul.f32 %v1620_v57, %v1602_v18  ;;  %v1622_v50 = vmul.f32 %v1620_v57, %v1606_v21  ;;  %2379 = vrot.lane.b32.xlu0 %v2868_v34, %s2804_s30 }
 0x1b8   :  { %v1728_v21 = vrot.slane %v1711_v11, %v3090_v15  ;;  %v1761_v34 = vstv %s4347_s29 }
 0x1b9   :  { %v1595_v2 = vadd.f32 %v1593_v27, %v1549_v63  ;;  %v1596_v10 = vadd.f32 %v1594_v3, %v1550_v19  ;;  %v1608_v47 = vpop.permute.xlu0 %1607  ;;  %2391 = vrot.lane.b32.xlu1 %v2872_v35, %s2804_s30 }
 0x1ba   :  { %v1611_v43 = vsel %vm1601_vm14, %v1608_v47, %v1610_v23  ;;  %v1615_v20 = vsel %vm1601_vm14, %v1610_v23, %v1608_v47  ;;  %v1646_v62 = vpop.permute.xlu1 %1645  ;;  %vm2337_vm14 = vcmask 637952  }
 0x1bb   :  { %v1624_v51 = vmul.f32 %v1623_v25, %v1611_v43  ;;  %v1625_v60 = vmul.f32 %v1623_v25, %v1615_v20  ;;  %v1757_v43 = vld [vmem:[#allocation7 + $0x42] ss:$8 sm:$0x3]  ;;  %2389 = vrot.lane.b32.xlu0 %v2863_v31, %s2804_s30 }
 0x1bc   :  { %v1770_v35 = vrot.slane %v1757_v43, %v3087_v14 }
 0x1bd   :  { %v1626_v49 = vadd.f32 %v1624_v51, %v1621_v12  ;;  %v1627_v13 = vadd.f32 %v1625_v60, %v1622_v50  ;;  %v1644_v42 = vpop.permute.xlu0 %1643  ;;  %v1758_v51 = vstv %s4343_s4  ;;  %s2805_s4 = smov [#allocation10]  }
 0x1be   :  { %v1648_v44 = vsel %vm1647_vm15, %v1644_v42, %v1646_v62  ;;  %v1652_v48 = vsel %vm1647_vm15, %v1646_v62, %v1644_v42  ;;  %v1656_v29 = vpop.permute.xlu1 %1655  ;;  %s2493_s29 = sshll.u32 %s2805_s4, 4  ;;  %s2494_s29 = int_to_ptr.vmem [resolvable:$true] %s2493_s29 }
 0x1bf   :  { %v1639_v16 = vmul.f32 %v1632_v5, %v1626_v49  ;;  %v1640_v56 = vmul.f32 %v1636_v55, %v1627_v13  ;;  %v1667_v58 = vmul.f32 %v1666_v45, %v1648_v44  ;;  %v1668_v52 = vmul.f32 %v1666_v45, %v1652_v48  ;;  %s2722_s30 = scalar_lea.vmem %s2494_s29, 256  ;;  %p2727_p2 = scmp.lt.s32.totalorder %s2494_s29, %s2494_s29 }
 0x1c0   :  { %v1774_v13 = vrot.slane %v1757_v43, %v3090_v15  ;;  %p2723_p1 = scmp.ne.s32.totalorder %s2494_s29, %s2722_s30  ;;  %p2728_p3 = scmp.lt.s32.totalorder %s2722_s30, %s2722_s30 }
 0x1c1   :  { %v1641_v33 = vadd.f32 %v1639_v16, %v1595_v2  ;;  %v1642_v36 = vadd.f32 %v1640_v56, %v1596_v10  ;;  %v1654_v54 = vpop.permute.xlu0 %1653 }
 0x1c2   :  { %v1657_v1 = vsel %vm1647_vm15, %v1654_v54, %v1656_v29  ;;  %v1661_v7 = vsel %vm1647_vm15, %v1656_v29, %v1654_v54  ;;  %v1692_v63 = vpop.permute.xlu1 %1691  ;;  %vm2383_vm15 = vcmask 629760   ;;  %p2729_p4 = por %p2728_p3, %p2727_p2 }
 0x1c3   :  { %v1670_v9 = vmul.f32 %v1669_v61, %v1657_v1  ;;  %v1671_v41 = vmul.f32 %v1669_v61, %v1661_v7  ;;  %v1804_v7 = vstv %s4359_s20 }
 0x1c4   :  { %p2730_p5 = pnand %p2729_p4, %p2723_p1 }
 0x1c5   :  { %v1672_v19 = vadd.f32 %v1670_v9, %v1667_v58  ;;  %v1673_v0 = vadd.f32 %v1671_v41, %v1668_v52  ;;  %v1690_v6 = vpop.permute.xlu0 %1689  ;;  %v1807_v58 = vstv %s4363_s23 }
 0x1c6   :  { %v1694_v59 = vsel %vm1693_vm0, %v1690_v6, %v1692_v63  ;;  %v1698_v40 = vsel %vm1693_vm0, %v1692_v63, %v1690_v6  ;;  %v1702_v4 = vpop.permute.xlu1 %1701 }
 0x1c7   :  { %v1685_v32 = vmul.f32 %v1678_v30, %v1672_v19  ;;  %v1686_v26 = vmul.f32 %v1682_v28, %v1673_v0  ;;  %v1713_v3 = vmul.f32 %v1712_v24, %v1694_v59  ;;  %v1714_v23 = vmul.f32 %v1712_v24, %v1698_v40  ;;  %v1803_v30 = vld [vmem:[#allocation7 + $0x43] ss:$8 sm:$0x3] }
 0x1c8   :  { %v1816_v41 = vrot.slane %v1803_v30, %v3087_v14  ;;  %v1820_v19 = vrot.slane %v1803_v30, %v3090_v15 }
 0x1c9   :  { %v1687_v46 = vadd.f32 %v1685_v32, %v1641_v33  ;;  %v1688_v8 = vadd.f32 %v1686_v26, %v1642_v36  ;;  %v1700_v18 = vpop.permute.xlu0 %1699 }
 0x1ca   :  { %v1703_v17 = vsel %vm1693_vm0, %v1700_v18, %v1702_v4  ;;  %v1707_v27 = vsel %vm1693_vm0, %v1702_v4, %v1700_v18  ;;  %v1738_v2 = vpop.permute.xlu1 %1737 }
 0x1cb   :  { %v1716_v57 = vmul.f32 %v1715_v39, %v1703_v17  ;;  %v1717_v25 = vmul.f32 %v1715_v39, %v1707_v27  ;;  %v1850_v27 = vstv %s4371_s21 }
 0x1cd   :  { %v1718_v10 = vadd.f32 %v1716_v57, %v1713_v3  ;;  %v1719_v5 = vadd.f32 %v1717_v25, %v1714_v23  ;;  %v1736_v47 = vpop.permute.xlu0 %1735  ;;  %v1853_v3 = vstv %s4375_s22 }
 0x1ce   :  { %v1740_v37 = vsel %vm1739_vm1, %v1736_v47, %v1738_v2  ;;  %v1744_v55 = vsel %vm1739_vm1, %v1738_v2, %v1736_v47  ;;  %v1748_v50 = vpop.permute.xlu1 %1747 }
 0x1cf   :  { %v1731_v20 = vmul.f32 %v1724_v22, %v1718_v10  ;;  %v1732_v12 = vmul.f32 %v1728_v21, %v1719_v5  ;;  %v1759_v31 = vmul.f32 %v1758_v51, %v1740_v37  ;;  %v1760_v48 = vmul.f32 %v1758_v51, %v1744_v55  ;;  %v1849_v22 = vld [vmem:[#allocation7 + $0x44] ss:$8 sm:$0x3] }
 0x1d0   :  { %v1862_v25 = vrot.slane %v1849_v22, %v3087_v14  ;;  %v1866_v10 = vrot.slane %v1849_v22, %v3090_v15 }
 0x1d1   :  { %v1733_v60 = vadd.f32 %v1731_v20, %v1687_v46  ;;  %v1734_v62 = vadd.f32 %v1732_v12, %v1688_v8  ;;  %v1746_v49 = vpop.permute.xlu0 %1745 }
 0x1d2   :  { %v1749_v42 = vsel %vm1739_vm1, %v1746_v49, %v1748_v50  ;;  %v1753_v44 = vsel %vm1739_vm1, %v1748_v50, %v1746_v49  ;;  %v1784_v56 = vpop.permute.xlu1 %1783 }
 0x1d3   :  { %v1762_v38 = vmul.f32 %v1761_v34, %v1749_v42  ;;  %v1763_v16 = vmul.f32 %v1761_v34, %v1753_v44  ;;  %v1896_v44 = vstv %s4383_s25 }
 0x1d5   :  { %v1764_v29 = vadd.f32 %v1762_v38, %v1759_v31  ;;  %v1765_v45 = vadd.f32 %v1763_v16, %v1760_v48  ;;  %v1782_v61 = vpop.permute.xlu0 %1781  ;;  %v1899_v31 = vstv %s4387_s28 }
 0x1d6   :  { %v1786_v33 = vsel %vm1785_vm2, %v1782_v61, %v1784_v56  ;;  %v1790_v36 = vsel %vm1785_vm2, %v1784_v56, %v1782_v61  ;;  %v1794_v1 = vpop.permute.xlu1 %1793 }
 0x1d7   :  { %v1777_v54 = vmul.f32 %v1770_v35, %v1764_v29  ;;  %v1778_v28 = vmul.f32 %v1774_v13, %v1765_v45  ;;  %v1805_v59 = vmul.f32 %v1804_v7, %v1786_v33  ;;  %v1806_v40 = vmul.f32 %v1804_v7, %v1790_v36  ;;  %v1895_v35 = vld [vmem:[#allocation7 + $0x45] ss:$8 sm:$0x3] }
 0x1d8   :  { %v1908_v16 = vrot.slane %v1895_v35, %v3087_v14  ;;  %v1912_v29 = vrot.slane %v1895_v35, %v3090_v15 }
 0x1d9   :  { %v1779_v52 = vadd.f32 %v1777_v54, %v1733_v60  ;;  %v1780_v9 = vadd.f32 %v1778_v28, %v1734_v62  ;;  %v1792_v63 = vpop.permute.xlu0 %1791 }
 0x1da   :  { %v1795_v0 = vsel %vm1785_vm2, %v1792_v63, %v1794_v1  ;;  %v1799_v6 = vsel %vm1785_vm2, %v1794_v1, %v1792_v63  ;;  %v1830_v26 = vpop.permute.xlu1 %1829 }
 0x1db   :  { %v1808_v11 = vmul.f32 %v1807_v58, %v1795_v0  ;;  %v1809_v32 = vmul.f32 %v1807_v58, %v1799_v6  ;;  %v1941_v0 = vld [vmem:[#allocation7 + $0x46] ss:$8 sm:$0x3]  ;;  %v1942_v6 = vstv %s4395_s26 }
 0x1dd   :  { %v1810_v4 = vadd.f32 %v1808_v11, %v1805_v59  ;;  %v1811_v24 = vadd.f32 %v1809_v32, %v1806_v40  ;;  %v1828_v39 = vpop.permute.xlu0 %1827  ;;  %v1945_v59 = vstv %s4399_s5 }
 0x1de   :  { %v1832_v46 = vsel %vm1831_vm3, %v1828_v39, %v1830_v26  ;;  %v1836_v8 = vsel %vm1831_vm3, %v1830_v26, %v1828_v39  ;;  %v1840_v17 = vpop.permute.xlu1 %1839  ;;  %v1954_v26 = vrot.slane %v1941_v0, %v3087_v14 }
 0x1df   :  { %v1823_v18 = vmul.f32 %v1816_v41, %v1810_v4  ;;  %v1824_v21 = vmul.f32 %v1820_v19, %v1811_v24  ;;  %v1851_v37 = vmul.f32 %v1850_v27, %v1832_v46  ;;  %v1852_v55 = vmul.f32 %v1850_v27, %v1836_v8 }
 0x1e0   :  { %v1958_v4 = vrot.slane %v1941_v0, %v3090_v15  ;;  %v2126_v0 = vstv %s4453_s12 }
 0x1e1   :  { %v1825_v23 = vadd.f32 %v1823_v18, %v1779_v52  ;;  %v1826_v57 = vadd.f32 %v1824_v21, %v1780_v9  ;;  %v1838_v2 = vpop.permute.xlu0 %1837 }
 0x1e2   :  { %v1841_v5 = vsel %vm1831_vm3, %v1838_v2, %v1840_v17  ;;  %v1845_v47 = vsel %vm1831_vm3, %v1840_v17, %v1838_v2  ;;  %v1876_v12 = vpop.permute.xlu1 %1875 }
 0x1e3   :  { %v1854_v43 = vmul.f32 %v1853_v3, %v1841_v5  ;;  %v1855_v20 = vmul.f32 %v1853_v3, %v1845_v47 }
 0x1e5   :  { %v1856_v50 = vadd.f32 %v1854_v43, %v1851_v37  ;;  %v1857_v51 = vadd.f32 %v1855_v20, %v1852_v55  ;;  %v1874_v34 = vpop.permute.xlu0 %1873 }
 0x1e6   :  { %v1878_v60 = vsel %vm1877_vm4, %v1874_v34, %v1876_v12  ;;  %v1882_v62 = vsel %vm1877_vm4, %v1876_v12, %v1874_v34  ;;  %v1886_v42 = vpop.permute.xlu1 %1885 }
 0x1e7   :  { %v1869_v49 = vmul.f32 %v1862_v25, %v1856_v50  ;;  %v1870_v13 = vmul.f32 %v1866_v10, %v1857_v51  ;;  %v1897_v33 = vmul.f32 %v1896_v44, %v1878_v60  ;;  %v1898_v36 = vmul.f32 %v1896_v44, %v1882_v62  ;;  %v4463_v44 = vld [vmem:[#allocation7 + $0x50] ss:$8 sm:$0x3] }
 0x1e9   :  { %v1871_v48 = vadd.f32 %v1869_v49, %v1825_v23  ;;  %v1872_v38 = vadd.f32 %v1870_v13, %v1826_v57  ;;  %v1884_v56 = vpop.permute.xlu0 %1883 }
 0x1ea   :  { %v1887_v45 = vsel %vm1877_vm4, %v1884_v56, %v1886_v42  ;;  %v1891_v61 = vsel %vm1877_vm4, %v1886_v42, %v1884_v56  ;;  %v1922_v28 = vpop.permute.xlu1 %1921  ;;  %v4459_v42 = vld [vmem:[#allocation7 + $0x47] ss:$8 sm:$0x3] }
 0x1eb   :  { %v1900_v30 = vmul.f32 %v1899_v31, %v1887_v45  ;;  %v1901_v54 = vmul.f32 %v1899_v31, %v1891_v61  ;;  %v2004_v56 = vrot.slane %v4459_v42, %v3090_v15  ;;  %v2034_v61 = vstv %s4441_s3 }
 0x1ed   :  { %v1902_v1 = vadd.f32 %v1900_v30, %v1897_v33  ;;  %v1903_v7 = vadd.f32 %v1901_v54, %v1898_v36  ;;  %v1920_v58 = vpop.permute.xlu0 %1919  ;;  %v2037_v33 = vstv %s4443_s8  ;;  %v2046_v36 = vrot.slane %v4463_v44, %v3087_v14 }
 0x1ee   :  { %v1924_v52 = vsel %vm1923_vm5, %v1920_v58, %v1922_v28  ;;  %v1928_v9 = vsel %vm1923_vm5, %v1922_v28, %v1920_v58  ;;  %v1932_v19 = vpop.permute.xlu1 %1931  ;;  %v2050_v28 = vrot.slane %v4463_v44, %v3090_v15  ;;  %v2083_v58 = vstv %s4449_s9 }
 0x1ef   :  { %v1915_v41 = vmul.f32 %v1908_v16, %v1902_v1  ;;  %v1916_v63 = vmul.f32 %v1912_v29, %v1903_v7  ;;  %v1943_v46 = vmul.f32 %v1942_v6, %v1924_v52  ;;  %v1944_v8 = vmul.f32 %v1942_v6, %v1928_v9  ;;  %v4475_v29 = vld [vmem:[#allocation7 + $0x51] ss:$8 sm:$0x3] }
 0x1f0   :  { %v2000_v16 = vrot.slane %v4459_v42, %v3087_v14  ;;  %v2080_v7 = vstv %s4447_s10  ;;  %v2092_v52 = vrot.slane %v4475_v29, %v3087_v14  ;;  %v2096_v9 = vrot.slane %v4475_v29, %v3090_v15 }
 0x1f1   :  { %v1917_v40 = vadd.f32 %v1915_v41, %v1871_v48  ;;  %v1918_v11 = vadd.f32 %v1916_v63, %v1872_v38  ;;  %v1930_v32 = vpop.permute.xlu0 %1929  ;;  %v1988_v48 = vstv %s4435_s27  ;;  %v1991_v38 = vstv %s4437_s1  ;;  %v4501_v41 = vld [vmem:[#allocation7 + $0x52] ss:$8 sm:$0x3] }
 0x1f2   :  { %v1933_v24 = vsel %vm1923_vm5, %v1930_v32, %v1932_v19  ;;  %v1937_v39 = vsel %vm1923_vm5, %v1932_v19, %v1930_v32  ;;  %v4413_v21 = vpop.permute.xlu1 %1967  ;;  %v2129_v6 = vstv %s4455_s16 }
 0x1f3   :  { %v1946_v22 = vmul.f32 %v1945_v59, %v1933_v24  ;;  %v1947_v18 = vmul.f32 %v1945_v59, %v1937_v39  ;;  %v2138_v24 = vrot.slane %v4501_v41, %v3087_v14  ;;  %v2142_v39 = vrot.slane %v4501_v41, %v3090_v15 }
 0x1f5   :  { %v1948_v17 = vadd.f32 %v1946_v22, %v1943_v46  ;;  %v1949_v27 = vadd.f32 %v1947_v18, %v1944_v8  ;;  %v1966_v3 = vpop.permute.xlu0 %1965  ;;  %v2172_v46 = vstv %s4461_s14  ;;  %v2175_v8 = vstv %s4467_s13 }
 0x1f6   :  { %v1978_v25 = vpop.permute.xlu1 %1977  ;;  %v1970_v63 = vsel %vm1969_vm6, %v1966_v3, %v4413_v21  ;;  %v1974_v19 = vsel %vm1969_vm6, %v4413_v21, %v1966_v3 }
 0x1f7   :  { %v1961_v23 = vmul.f32 %v1954_v26, %v1948_v17  ;;  %v1962_v57 = vmul.f32 %v1958_v4, %v1949_v27  ;;  %v4515_v4 = vld [vmem:[#allocation7 + $0x53] ss:$8 sm:$0x3]  ;;  %v1989_v18 = vmul.f32 %v1988_v48, %v1970_v63  ;;  %v1990_v21 = vmul.f32 %v1988_v48, %v1974_v19 }
 0x1f8   :  { %v2221_v48 = vstv %s4485_s17 }
 0x1f9   :  { %v4415_v2 = vadd.f32 %v1961_v23, %v1917_v40  ;;  %v4417_v10 = vadd.f32 %v1962_v57, %v1918_v11  ;;  %v1976_v5 = vpop.permute.xlu0 %1975  ;;  %v2184_v57 = vrot.slane %v4515_v4, %v3087_v14 }
 0x1fa   :  { %v4419_v47 = vpop.permute.xlu1 %2013  ;;  %v1979_v30 = vsel %vm1969_vm6, %v1976_v5, %v1978_v25  ;;  %v1983_v54 = vsel %vm1969_vm6, %v1978_v25, %v1976_v5  ;;  %v2188_v25 = vrot.slane %v4515_v4, %v3090_v15  ;;  %v4537_v5 = vld [vmem:[#allocation7 + $0x54] ss:$8 sm:$0x3] }
 0x1fb   :  { %v1992_v40 = vmul.f32 %v1991_v38, %v1979_v30  ;;  %v1993_v11 = vmul.f32 %v1991_v38, %v1983_v54  ;;  %v2230_v19 = vrot.slane %v4537_v5, %v3087_v14 }
 0x1fd   :  { %v4421_v37 = vpop.permute.xlu0 %2011 }
 0x1fe   :  { %v2024_v55 = vpop.permute.xlu1 %2023  ;;  %v2016_v17 = vsel %vm2015_vm7, %v4421_v37, %v4419_v47  ;;  %v2020_v27 = vsel %vm2015_vm7, %v4419_v47, %v4421_v37  ;;  %v1995_v47 = vadd.f32 %v1993_v11, %v1990_v21  ;;  %v2218_v37 = vstv %s4479_s15 }
 0x1ff   :  { %v2035_v38 = vmul.f32 %v2034_v61, %v2016_v17  ;;  %v2264_v11 = vstv %s4493_s18 }
 0x201   :  { %v2022_v43 = vpop.permute.xlu0 %2021 }
 0x202   :  { %v4423_v20 = vpop.permute.xlu1 %2059  ;;  %v2025_v32 = vsel %vm2015_vm7, %v2022_v43, %v2024_v55  ;;  %v2029_v26 = vsel %vm2015_vm7, %v2024_v55, %v2022_v43  ;;  %v1994_v43 = vadd.f32 %v1992_v40, %v1989_v18  ;;  %v2234_v40 = vrot.slane %v4537_v5, %v3090_v15 }
 0x203   :  { %v2038_v3 = vmul.f32 %v2037_v33, %v2025_v32  ;;  %v2039_v23 = vmul.f32 %v2037_v33, %v2029_v26  ;;  %v2036_v33 = vmul.f32 %v2034_v61, %v2020_v27  ;;  %v4558_v32 = vld [vmem:[#allocation7 + $0x55] ss:$8 sm:$0x3]  ;;  %v2267_v61 = vstv %s4503_s19 }
 0x204   :  { %v5055_v5 = vrot.slane %v4558_v32, %v3087_v14 }
 0x205   :  { %v4425_v12 = vpop.permute.xlu0 %2057  ;;  %v2040_v26 = vadd.f32 %v2038_v3, %v2035_v38  ;;  %v2041_v18 = vadd.f32 %v2039_v23, %v2036_v33  ;;  %v2007_v38 = vmul.f32 %v2000_v16, %v1994_v43  ;;  %v2313_v33 = vstv %s4541_s7 }
 0x206   :  { %v4427_v50 = vpop.permute.xlu1 %2069 }
 0x207   :  { %v2009_v44 = vadd.f32 %v2007_v38, %v4415_v2 }
 0x209   :  { %v4429_v51 = vpop.permute.xlu0 %2067 }
 0x20a   :  { %v4431_v34 = vpop.permute.xlu1 %2105  ;;  %v2071_v30 = vsel %vm2061_vm8, %v4429_v51, %v4427_v50  ;;  %v2075_v54 = vsel %vm2061_vm8, %v4427_v50, %v4429_v51  ;;  %v2062_v50 = vsel %vm2061_vm8, %v4425_v12, %v4423_v20  ;;  %v2066_v51 = vsel %vm2061_vm8, %v4423_v20, %v4425_v12 }
 0x20b   :  { %v2084_v17 = vmul.f32 %v2083_v58, %v2071_v30  ;;  %v2085_v27 = vmul.f32 %v2083_v58, %v2075_v54  ;;  %v2008_v20 = vmul.f32 %v2004_v56, %v1995_v47  ;;  %v2081_v30 = vmul.f32 %v2080_v7, %v2062_v50  ;;  %v4596_v54 = vld [vmem:[#allocation7 + $0x56] ss:$8 sm:$0x3] }
 0x20c   :  { %v2310_v47 = vstv %s4531_s0  ;;  %v2054_v50 = vmul.f32 %v2050_v28, %v2041_v18  ;;  %v2326_v18 = vrot.slane %v4596_v54, %v3090_v15 }
 0x20d   :  { %v4433_v60 = vpop.permute.xlu0 %2103  ;;  %v2010_v28 = vadd.f32 %v2008_v20, %v4417_v10 }
 0x20e   :  { %v4439_v62 = vpop.permute.xlu1 %2115  ;;  %v2112_v42 = vsel %vm2107_vm9, %v4431_v34, %v4433_v60 }
 0x211   :  { %v4445_v35 = vpop.permute.xlu0 %2113 }
 0x212   :  { %v4451_v49 = vpop.permute.xlu1 %2151  ;;  %v2117_v3 = vsel %vm2107_vm9, %v4445_v35, %v4439_v62  ;;  %v2121_v23 = vsel %vm2107_vm9, %v4439_v62, %v4445_v35  ;;  %v2082_v62 = vmul.f32 %v2080_v7, %v2066_v51  ;;  %v2108_v35 = vsel %vm2107_vm9, %v4433_v60, %v4431_v34 }
 0x213   :  { %v2130_v16 = vmul.f32 %v2129_v6, %v2117_v3  ;;  %v2131_v56 = vmul.f32 %v2129_v6, %v2121_v23  ;;  %v2053_v7 = vmul.f32 %v2046_v36, %v2040_v26  ;;  %v2086_v51 = vadd.f32 %v2084_v17, %v2081_v30 }
 0x214   :  { %v2087_v58 = vadd.f32 %v2085_v27, %v2082_v62  ;;  %v2127_v34 = vmul.f32 %v2126_v0, %v2108_v35  ;;  %v2128_v60 = vmul.f32 %v2126_v0, %v2112_v42  ;;  %v2322_v0 = vrot.slane %v4596_v54, %v3087_v14 }
 0x215   :  { %v4457_v13 = vpop.permute.xlu0 %2149  ;;  %v2055_v20 = vadd.f32 %v2053_v7, %v2009_v44  ;;  %v2056_v30 = vadd.f32 %v2054_v50, %v2010_v28  ;;  %v2356_v7 = vstv %s4617_s24  ;;  %v2359_v50 = vstv %s4625_s2 }
 0x216   :  { %v4465_v31 = vpop.permute.xlu1 %2161  ;;  %v2132_v17 = vadd.f32 %v2130_v16, %v2127_v34  ;;  %v2133_v27 = vadd.f32 %v2131_v56, %v2128_v60  ;;  %v2158_v2 = vsel %vm2153_vm10, %v4451_v49, %v4457_v13 }
 0x217   :  { %v2174_v35 = vmul.f32 %v2172_v46, %v2158_v2 }
 0x218   :  { %v2145_v42 = vmul.f32 %v2138_v24, %v2132_v17 }
 0x219   :  { %v4477_v45 = vpop.permute.xlu0 %2159 }
 0x21a   :  { %v4491_v1 = vpop.permute.xlu1 %2197  ;;  %v2163_v6 = vsel %vm2153_vm10, %v4477_v45, %v4465_v31  ;;  %v2167_v36 = vsel %vm2153_vm10, %v4465_v31, %v4477_v45  ;;  %v2154_v31 = vsel %vm2153_vm10, %v4457_v13, %v4451_v49  ;;  %v2099_v49 = vmul.f32 %v2092_v52, %v2086_v51 }
 0x21b   :  { %v2176_v45 = vmul.f32 %v2175_v8, %v2163_v6  ;;  %v2177_v3 = vmul.f32 %v2175_v8, %v2167_v36  ;;  %v2100_v13 = vmul.f32 %v2096_v9, %v2087_v58  ;;  %v2173_v62 = vmul.f32 %v2172_v46, %v2154_v31 }
 0x21c   :  { %v2101_v51 = vadd.f32 %v2099_v49, %v2055_v20 }
 0x21d   :  { %v4511_v59 = vpop.permute.xlu0 %2195  ;;  %v2179_v16 = vadd.f32 %v2177_v3, %v2174_v35  ;;  %v2102_v34 = vadd.f32 %v2100_v13, %v2056_v30  ;;  %v2355_v13 = vld [vmem:[#allocation7 + $0x57] ss:$8 sm:$0x3] }
 0x21e   :  { %v4523_v22 = vpop.permute.xlu1 %2207  ;;  %v2204_v52 = vsel %vm2199_vm11, %v4491_v1, %v4511_v59 }
 0x221   :  { %v4539_v55 = vpop.permute.xlu0 %2205 }
 0x222   :  { %v4551_v63 = vpop.permute.xlu1 %2243  ;;  %v2209_v23 = vsel %vm2199_vm11, %v4539_v55, %v4523_v22  ;;  %v2213_v38 = vsel %vm2199_vm11, %v4523_v22, %v4539_v55  ;;  %v2200_v22 = vsel %vm2199_vm11, %v4511_v59, %v4491_v1  ;;  %v2146_v1 = vmul.f32 %v2142_v39, %v2133_v27 }
 0x223   :  { %v2222_v29 = vmul.f32 %v2221_v48, %v2209_v23  ;;  %v2223_v9 = vmul.f32 %v2221_v48, %v2213_v38  ;;  %v2178_v59 = vadd.f32 %v2176_v45, %v2173_v62  ;;  %v2219_v56 = vmul.f32 %v2218_v37, %v2200_v22 }
 0x224   :  { %v2220_v48 = vmul.f32 %v2218_v37, %v2204_v52  ;;  %v2148_v28 = vadd.f32 %v2146_v1, %v2102_v34  ;;  %v2192_v27 = vmul.f32 %v2188_v25, %v2179_v16  ;;  %v2368_v1 = vrot.slane %v2355_v13, %v3087_v14 }
 0x225   :  { %v4567_v21 = vpop.permute.xlu0 %2241  ;;  %v2224_v60 = vadd.f32 %v2222_v29, %v2219_v56  ;;  %v2191_v17 = vmul.f32 %v2184_v57, %v2178_v59  ;;  %v2372_v59 = vrot.slane %v2355_v13, %v3090_v15 }
 0x226   :  { %v2254_v12 = vpop.permute.xlu1 %2253  ;;  %v2250_v24 = vsel %vm2245_vm12, %v4551_v63, %v4567_v21  ;;  %v2225_v6 = vadd.f32 %v2223_v9, %v2220_v48  ;;  %v2194_v52 = vadd.f32 %v2192_v27, %v2148_v28  ;;  %v5056_v9 = vrot.slane %v4558_v32, %v3090_v15 }
 0x227   :  { %v2266_v44 = vmul.f32 %v2264_v11, %v2250_v24  ;;  %v2237_v20 = vmul.f32 %v2230_v19, %v2224_v60  ;;  %v2402_v24 = vstv %s4693_s11 }
 0x228   :  { %v2238_v30 = vmul.f32 %v2234_v40, %v2225_v6 }
 0x229   :  { %v2252_v43 = vpop.permute.xlu0 %2251 }
 0x22a   :  { %v4615_v26 = vpop.permute.xlu1 %2289  ;;  %v2255_v55 = vsel %vm2245_vm12, %v2252_v43, %v2254_v12  ;;  %v2259_v46 = vsel %vm2245_vm12, %v2254_v12, %v2252_v43  ;;  %v2246_v12 = vsel %vm2245_vm12, %v4567_v21, %v4551_v63 }
 0x22b   :  { %v2268_v41 = vmul.f32 %v2267_v61, %v2255_v55  ;;  %v2269_v39 = vmul.f32 %v2267_v61, %v2259_v46  ;;  %v2265_v36 = vmul.f32 %v2264_v11, %v2246_v12  ;;  %v2147_v61 = vadd.f32 %v2145_v42, %v2101_v51  ;;  %v2401_v42 = vld [vmem:[#allocation7 + $0x60] ss:$8 sm:$0x3] }
 0x22c   :  { %v2240_v12 = vadd.f32 %v2238_v30, %v2194_v52 }
 0x22d   :  { %v2288_v10 = vpop.permute.xlu0 %2287  ;;  %v2270_v11 = vadd.f32 %v2268_v41, %v2265_v36  ;;  %v2271_v2 = vadd.f32 %v2269_v39, %v2266_v44  ;;  %v2193_v22 = vadd.f32 %v2191_v17, %v2147_v61  ;;  %v2405_v41 = vstv %s4701_s6 }
 0x22e   :  { %v2300_v8 = vpop.permute.xlu1 %2299  ;;  %v2292_v45 = vsel %vm2291_vm13, %v2288_v10, %v4615_v26  ;;  %v2296_v3 = vsel %vm2291_vm13, %v4615_v26, %v2288_v10 }
 0x22f   :  { %v2311_v10 = vmul.f32 %v2310_v47, %v2292_v45  ;;  %v2283_v40 = vmul.f32 %v5055_v5, %v2270_v11  ;;  %v2284_v55 = vmul.f32 %v5056_v9, %v2271_v2  ;;  %v2239_v48 = vadd.f32 %v2237_v20, %v2193_v22  ;;  %v2438_v9 = vld [vmem:[#allocation8 + $0x8] sm:$0xff] }
 0x231   :  { %v2298_v58 = vpop.permute.xlu0 %2297  ;;  %v2285_v51 = vadd.f32 %v2283_v40, %v2239_v48  ;;  %v2286_v34 = vadd.f32 %v2284_v55, %v2240_v12 }
 0x232   :  { %v2336_v43 = vpop.permute.xlu1 %2335  ;;  %v2301_v63 = vsel %vm2291_vm13, %v2298_v58, %v2300_v8  ;;  %v2305_v21 = vsel %vm2291_vm13, %v2300_v8, %v2298_v58 }
 0x233   :  { %v2314_v23 = vmul.f32 %v2313_v33, %v2301_v63  ;;  %v2315_v57 = vmul.f32 %v2313_v33, %v2305_v21  ;;  %v2312_v33 = vmul.f32 %v2310_v47, %v2296_v3 }
 0x235   :  { %v2334_v37 = vpop.permute.xlu0 %2333  ;;  %v2316_v46 = vadd.f32 %v2314_v23, %v2311_v10  ;;  %v2317_v47 = vadd.f32 %v2315_v57, %v2312_v33 }
 0x236   :  { %v2346_v31 = vpop.permute.xlu1 %2345  ;;  %v2338_v4 = vsel %vm2337_vm14, %v2334_v37, %v2336_v43  ;;  %v2342_v25 = vsel %vm2337_vm14, %v2336_v43, %v2334_v37 }
 0x237   :  { %v2357_v19 = vmul.f32 %v2356_v7, %v2338_v4  ;;  %v2358_v29 = vmul.f32 %v2356_v7, %v2342_v25  ;;  %v2414_v7 = vrot.slane %v2401_v42, %v3087_v14  ;;  %v2329_v60 = vmul.f32 %v2322_v0, %v2316_v46 }
 0x238   :  { %v2330_v6 = vmul.f32 %v2326_v18, %v2317_v47 }
 0x239   :  { %v2344_v38 = vpop.permute.xlu0 %2343 }
 0x23a   :  { %v2347_v49 = vsel %vm2337_vm14, %v2344_v38, %v2346_v31  ;;  %v2351_v26 = vsel %vm2337_vm14, %v2346_v31, %v2344_v38  ;;  %v2382_v35 = vpop.permute.xlu1 %2381  ;;  %v2331_v31 = vadd.f32 %v2329_v60, %v2285_v51  ;;  %v2332_v11 = vadd.f32 %v2330_v6, %v2286_v34 }
 0x23b   :  { %v2360_v8 = vmul.f32 %v2359_v50, %v2347_v49  ;;  %v2361_v62 = vmul.f32 %v2359_v50, %v2351_v26  ;;  %v2418_v50 = vrot.slane %v2401_v42, %v3090_v15 }
 0x23d   :  { %v2380_v58 = vpop.permute.xlu0 %2379  ;;  %v2362_v16 = vadd.f32 %v2360_v8, %v2357_v19  ;;  %v2363_v56 = vadd.f32 %v2361_v62, %v2358_v29  ;;  %v2437_v19 = vld [vmem:[#allocation8] sm:$0xff] }
 0x23e   :  { %v2392_v43 = vpop.permute.xlu1 %2391  ;;  %v2384_v39 = vsel %vm2383_vm15, %v2380_v58, %v2382_v35  ;;  %v2388_v32 = vsel %vm2383_vm15, %v2382_v35, %v2380_v58 }
 0x23f   :  { %v2375_v36 = vmul.f32 %v2368_v1, %v2362_v16  ;;  %v2376_v44 = vmul.f32 %v2372_v59, %v2363_v56  ;;  %v2403_v61 = vmul.f32 %v2402_v24, %v2384_v39  ;;  %v2404_v28 = vmul.f32 %v2402_v24, %v2388_v32 }
 0x241   :  { %v2390_v37 = vpop.permute.xlu0 %2389  ;;  %v2377_v0 = vadd.f32 %v2375_v36, %v2331_v31  ;;  %v2378_v3 = vadd.f32 %v2376_v44, %v2332_v11 }
 0x242   :  { %v2393_v63 = vsel %vm2383_vm15, %v2390_v37, %v2392_v43  ;;  %v2397_v21 = vsel %vm2383_vm15, %v2392_v43, %v2390_v37 }
 0x243   :  { %v2406_v17 = vmul.f32 %v2405_v41, %v2393_v63  ;;  %v2407_v27 = vmul.f32 %v2405_v41, %v2397_v21 }
 0x245   :  { %v2408_v2 = vadd.f32 %v2406_v17, %v2403_v61  ;;  %v2409_v45 = vadd.f32 %v2407_v27, %v2404_v28 }
 0x247   :  { %v2421_v23 = vmul.f32 %v2414_v7, %v2408_v2  ;;  %v2422_v54 = vmul.f32 %v2418_v50, %v2409_v45 }
 0x249   :  { %v2423_v18 = vadd.f32 %v2421_v23, %v2377_v0  ;;  %v2424_v57 = vadd.f32 %v2422_v54, %v2378_v3 }
 0x24b   :  { %v2604_v4 = vmul.f32 -1.442695, %v2423_v18  ;;  %v2605_v25 = vmul.f32 -1.442695, %v2424_v57 }
 0x24d   :  { %2662 = vpow2.f32 %v2604_v4 }
 0x24e   :  { %2664 = vpow2.f32 %v2605_v25 }
 0x25a   :  { %v2663_v38 = vpop.eup %2662 }
 0x25b   :  { %v2665_v20 = vpop.eup %2664  ;;  %v2431_v30 = vadd.f32 1.0, %v2663_v38 }
 0x25c   :  { %v2432_v49 = vadd.f32 1.0, %v2665_v20 }
 0x25d   :  { %2666 = vrcp.f32 %v2431_v30 }
 0x25e   :  { %2668 = vrcp.f32 %v2432_v49 }
 0x26a   :  { %v2667_v26 = vpop.eup %2666 }
 0x26b   :  { %v2669_v10 = vpop.eup %2668 }
 0x26c   :  { %v2441_v33 = vcombine.low %v2667_v26, %v2669_v10 }
 0x26e   :  { %v2448_v13 = vrot.slane %v2441_v33, %v4918_v53 }
 0x270   :  { %v2449_v8 = vcombine.high %v2448_v13, %v2448_v13  ;;  %v2456_v62 = vrot.slane %v2448_v13, %v4918_v53 }
 0x272   :  { %v2463_v35 = vrot.slane %v2449_v8, %v4918_v53  ;;  %v2467_v22 = vrot.slane %v2456_v62, %v3087_v14  ;;  %v2471_v52 = vrot.slane %v2456_v62, %v3090_v15 }
 0x274   :  { %v2475_v29 = vrot.slane %v2463_v35, %v3087_v14  ;;  %v2479_v5 = vrot.slane %v2463_v35, %v3090_v15  ;;  %v2480_v40 = vcombine.low %v2467_v22, %v2471_v52 }
 0x276   :  { %v2481_v55 = vcombine.low %v2475_v29, %v2479_v5  ;;  %v2484_v46 = vmul.f32 %v2480_v40, %v2437_v19 }
 0x278   :  { %v2485_v47 = vmul.f32 %v2481_v55, %v2438_v9  ;;  %2486 = vst [vmem:[#allocation10] sm:$0xff] %v2484_v46 }
 0x27a   :  { %2487 = vst [vmem:[#allocation10 + $0x8] sm:$0xff] %v2485_v47 }
 0x27b   :  { %2733 = shalt.err (!%p2730_p5)
}
 0x27c   :  { %s5057_s20 = smov 8   ;;  %s5058_s23 = smov 128  }
 0x27d   :  { %s5059_s25 = sld [smem:[#allocation54_spill]] }
 0x283   :  { %2499 = dma.vmem_to_hbm [thread:$0]  %s2494_s29, 256, %s5059_s25, [#allocation5], %s5058_s23, %s5058_s23, %s5057_s20  }
 0x284   :  { %2748 = dma.done.wait [#allocation5], 256  }
 0x285   :  { %2749 = vsyncadd [#allocation5], 4294967040 }
 0x286   :  { %2503 = vsyncpa [#allocation4], 1 }
 0x287   :  { %2504 = vsyncpa [#allocation9], 1 }
 0x288   :  { %2505 = vsyncpa [#allocation5], 1 }
 0x289   :  { %2506 = vsyncpa [#allocation6], 1 }

</bundles_post_ra>
